<compile_context>
chip_gen: v7x
topology: tpu7x:2x2x1
jax: 0.10.0
libtpu: 0.0.40
codegen_flags: <defaults>
</compile_context>

<pallas_src>
import math
import jax
import jax.numpy as jnp
from jax.experimental import pallas as pl
from jax.experimental.pallas import tpu as pltpu

# ---- config (small, synthetic) ----
NUM_LAYERS = 2
HIDDEN = 32
NUM_HEADS = 4
HEAD_DIM = HIDDEN // NUM_HEADS
INTERMEDIATE = 64
LN_EPS = 1e-12


# ----------------------------- shared math helpers -----------------------------
def _layer_norm(x, gamma, beta):
    mean = jnp.mean(x, axis=-1, keepdims=True)
    var = jnp.mean((x - mean) ** 2, axis=-1, keepdims=True)
    return (x - mean) * jax.lax.rsqrt(var + LN_EPS) * gamma + beta


def _gelu(x):
    # tanh approximation of GELU.  TODO(synk): exact erf GELU if the mirrored config requires it.
    return 0.5 * x * (1.0 + jnp.tanh(0.7978845608028654 * (x + 0.044715 * x * x * x)))


# ----------------------------- in-kernel attention -----------------------------
def _attention_block(x, kv, mask, wq, bq, wkv, bkv, wo, bo, ln):
    """x: [Sq, H]; kv: [Sk, H]; mask: [1, Sk] additive.

    wq: [H, H] (softmax scale pre-folded), bq: [1, H],
    wkv: [H, 2H] (K | V packed on lanes), bkv: [1, 2H],
    wo: [H, H], bo: [1, H], ln: [2, H].
    """
    nh, hd = NUM_HEADS, HEAD_DIM

    # Wide MXU projections (no per-head narrow matmuls, no broadcast_to materialization).
    q = jnp.dot(x, wq, preferred_element_type=jnp.float32) + bq            # [Sq, H]  (scale folded)
    kvp = jnp.dot(kv, wkv, preferred_element_type=jnp.float32) + bkv       # [Sk, 2H]

    # Per-head batch layout via static lane slices (heads are contiguous 8-lane slabs).
    qh = jnp.stack([q[:, n * hd:(n + 1) * hd] for n in range(nh)], axis=0)                 # [NH,Sq,HD]
    kh = jnp.stack([kvp[:, n * hd:(n + 1) * hd] for n in range(nh)], axis=0)               # [NH,Sk,HD]
    vh = jnp.stack([kvp[:, HIDDEN + n * hd:HIDDEN + (n + 1) * hd] for n in range(nh)], axis=0)

    scores = jnp.einsum('nqd,nkd->nqk', qh, kh, preferred_element_type=jnp.float32)        # [NH,Sq,Sk]
    scores = scores + mask                     # [1, Sk] broadcast once over heads & queries

    m = jnp.max(scores, axis=-1, keepdims=True)
    e = jnp.exp(scores - m)
    denom = jnp.sum(e, axis=-1, keepdims=True)
    probs = e * pl.reciprocal(denom, approx=True)        # EUP reciprocal, off the VALU

    ctx = jnp.einsum('nqk,nkd->nqd', probs, vh, preferred_element_type=jnp.float32)        # [NH,Sq,HD]

    # Head-concat back onto lanes, then ONE wide output projection (head sum folded into matmul).
    ctx_flat = jnp.concatenate([ctx[n] for n in range(nh)], axis=-1)                       # [Sq, H]
    attn = jnp.dot(ctx_flat, wo, preferred_element_type=jnp.float32) + bo
    return _layer_norm(attn + x, ln[0], ln[1])           # residual + LN


# ----------------------------- Pallas kernel (all layers, weights resident) -----------------------------
def decoder_stack_kernel(hid_ref, enc_ref, smask_ref, cmask_ref,
                         sa_wq, sa_bq, sa_wkv, sa_bkv, sa_wo, sa_bo, sa_ln,
                         ca_wq, ca_bq, ca_wkv, ca_bkv, ca_wo, ca_bo, ca_ln,
                         ffn_wi, ffn_bi, ffn_wo, ffn_bo, out_ln,
                         out_ref):
    # grid = (batch,) "parallel"; the whole layer stack runs inside one kernel invocation,
    # with the hidden state carried as a VMEM value and all weights VMEM-resident.
    h = hid_ref[...]          # [S_dec, H]
    enc = enc_ref[...]        # [S_enc, H]
    smask = smask_ref[...]    # [1, S_dec]
    cmask = cmask_ref[...]    # [1, S_enc]

    num_layers = sa_wq.shape[0]
    for l in range(num_layers):     # static unroll; per-layer weights indexed in-kernel
        # Self-attention (padding mask only — matches the reference module; no causal mask).
        h = _attention_block(h, h, smask,
                             sa_wq[l], sa_bq[l], sa_wkv[l], sa_bkv[l],
                             sa_wo[l], sa_bo[l], sa_ln[l])
        # Cross-attention over encoder states.
        h = _attention_block(h, enc, cmask,
                             ca_wq[l], ca_bq[l], ca_wkv[l], ca_bkv[l],
                             ca_wo[l], ca_bo[l], ca_ln[l])
        # Feed-forward (GELU) + output projection + residual + LN.
        inter = _gelu(jnp.dot(h, ffn_wi[l], preferred_element_type=jnp.float32) + ffn_bi[l])
        ffn = jnp.dot(inter, ffn_wo[l], preferred_element_type=jnp.float32) + ffn_bo[l]
        oln = out_ln[l]
        h = _layer_norm(ffn + h, oln[0], oln[1])

    out_ref[...] = h


# ----------------------------- wrapper / specs -----------------------------
_LAYER_KEYS = ('sa_wq', 'sa_bq', 'sa_wkv', 'sa_bkv', 'sa_wo', 'sa_bo', 'sa_ln',
               'ca_wq', 'ca_bq', 'ca_wkv', 'ca_bkv', 'ca_wo', 'ca_bo', 'ca_ln',
               'ffn_wi', 'ffn_bi', 'ffn_wo', 'ffn_bo', 'out_ln')


def _batch_spec(arr):
    """Squeeze the leading batch dim and index it by the grid's batch position."""
    zeros = (0,) * (arr.ndim - 1)
    return pl.BlockSpec((None,) + arr.shape[1:], lambda b: (b,) + zeros)


def _resident_spec(arr):
    """Full-extent block with a constant index_map -> fetched once, VMEM-resident."""
    zeros = (0,) * arr.ndim
    return pl.BlockSpec(arr.shape, lambda b: zeros)


def transformer_decoder(hidden_states, attention_mask_add,
                        encoder_hidden_states, encoder_attention_mask_add, packed):
    # mirrors TransformerDecoder.forward with output_attentions/hidden_states=False,
    # head_mask=None, past_key_value=None -> returns (hidden_states,)
    assert encoder_hidden_states is not None
    B, S, H = hidden_states.shape

    batch_args = (hidden_states, encoder_hidden_states,
                  attention_mask_add, encoder_attention_mask_add)
    layer_args = tuple(packed[k] for k in _LAYER_KEYS)

    in_specs = ([_batch_spec(a) for a in batch_args]
                + [_resident_spec(a) for a in layer_args])

    out = pl.pallas_call(
        decoder_stack_kernel,
        out_shape=jax.ShapeDtypeStruct((B, S, H), jnp.float32),
        grid=(B,),
        in_specs=in_specs,
        out_specs=pl.BlockSpec((None, S, H), lambda b: (b, 0, 0)),
        compiler_params=pltpu.CompilerParams(
            dimension_semantics=("parallel",),       # 2-way batch parallel -> both TCs on v7x
            vmem_limit_bytes=32 * 1024 * 1024),
    )(*batch_args, *layer_args)
    return (out,)


# ----------------------- parameter init / packing -----------------------
def init_params(key, num_layers):
    """'Natural' (PyTorch-like) layout: weights [in, out], biases [out]."""
    def nrm(k, shape):
        return jax.random.normal(k, shape, jnp.float32) * 0.02

    def attn_params(k0):
        kk = jax.random.split(k0, 8)
        return {'wq': nrm(kk[0], (HIDDEN, HIDDEN)), 'bq': nrm(kk[1], (HIDDEN,)),
                'wk': nrm(kk[2], (HIDDEN, HIDDEN)), 'bk': nrm(kk[3], (HIDDEN,)),
                'wv': nrm(kk[4], (HIDDEN, HIDDEN)), 'bv': nrm(kk[5], (HIDDEN,)),
                'wo': nrm(kk[6], (HIDDEN, HIDDEN)), 'bo': nrm(kk[7], (HIDDEN,)),
                'ln_g': jnp.ones((HIDDEN,), jnp.float32),
                'ln_b': jnp.zeros((HIDDEN,), jnp.float32)}

    params = []
    for l in range(num_layers):
        ks = jax.random.split(jax.random.fold_in(key, l), 6)
        ffn = {'wi': nrm(ks[2], (HIDDEN, INTERMEDIATE)), 'bi': nrm(ks[3], (INTERMEDIATE,)),
               'wo': nrm(ks[4], (INTERMEDIATE, HIDDEN)), 'bo': nrm(ks[5], (HIDDEN,)),
               'ln_g': jnp.ones((HIDDEN,), jnp.float32),
               'ln_b': jnp.zeros((HIDDEN,), jnp.float32)}
        params.append({'sa': attn_params(ks[0]), 'ca': attn_params(ks[1]), 'ffn': ffn})
    return params


def pack_params(params):
    """Repack into layer-stacked arrays for the fused kernel (host-side, once).
    Softmax scale is folded into Wq/bq; K and V are packed side-by-side on lanes."""
    scale = 1.0 / math.sqrt(HEAD_DIM)

    def attn(p):
        return (p['wq'] * scale,
                (p['bq'] * scale)[None, :],
                jnp.concatenate([p['wk'], p['wv']], axis=1),       # [H, 2H]
                jnp.concatenate([p['bk'], p['bv']])[None, :],      # [1, 2H]
                p['wo'],
                p['bo'][None, :],
                jnp.stack([p['ln_g'], p['ln_b']]))

    acc = {k: [] for k in _LAYER_KEYS}
    for p in params:
        for pre, blk in (('sa', p['sa']), ('ca', p['ca'])):
            wq, bq, wkv, bkv, wo, bo, ln = attn(blk)
            acc[f'{pre}_wq'].append(wq);   acc[f'{pre}_bq'].append(bq)
            acc[f'{pre}_wkv'].append(wkv); acc[f'{pre}_bkv'].append(bkv)
            acc[f'{pre}_wo'].append(wo);   acc[f'{pre}_bo'].append(bo)
            acc[f'{pre}_ln'].append(ln)
        f = p['ffn']
        acc['ffn_wi'].append(f['wi']); acc['ffn_bi'].append(f['bi'][None, :])
        acc['ffn_wo'].append(f['wo']); acc['ffn_bo'].append(f['bo'][None, :])
        acc['out_ln'].append(jnp.stack([f['ln_g'], f['ln_b']]))
    return {k: jnp.stack(v) for k, v in acc.items()}


# --------------------------- pure-JAX reference ---------------------------
def _ref_attention_block(x, kv, mask_add, p):
    q = x @ p['wq'] + p['bq']
    k = kv @ p['wk'] + p['bk']
    v = kv @ p['wv'] + p['bv']
    B, Sq, _ = q.shape
    Sk = k.shape[1]
    qh = q.reshape(B, Sq, NUM_HEADS, HEAD_DIM).transpose(0, 2, 1, 3)
    kh = k.reshape(B, Sk, NUM_HEADS, HEAD_DIM).transpose(0, 2, 1, 3)
    vh = v.reshape(B, Sk, NUM_HEADS, HEAD_DIM).transpose(0, 2, 1, 3)
    scores = jnp.einsum('bnqd,bnkd->bnqk', qh, kh) / math.sqrt(HEAD_DIM)
    scores = scores + mask_add[:, None, :, :]
    probs = jax.nn.softmax(scores, axis=-1)
    ctx = jnp.einsum('bnqk,bnkd->bnqd', probs, vh).transpose(0, 2, 1, 3).reshape(B, Sq, HIDDEN)
    out = ctx @ p['wo'] + p['bo']
    return _layer_norm(out + x, p['ln_g'], p['ln_b'])


def _ref_decoder(h, smask, enc, cmask, params):
    for p in params:
        h1 = _ref_attention_block(h, h, smask, p['sa'])
        h2 = _ref_attention_block(h1, enc, cmask, p['ca'])
        f = p['ffn']
        inter = _gelu(h2 @ f['wi'] + f['bi'])
        ffn = inter @ f['wo'] + f['bo']
        h = _layer_norm(ffn + h2, f['ln_g'], f['ln_b'])
    return h


# --------------------------------- main ---------------------------------
if __name__ == "__main__":
    key = jax.random.PRNGKey(0)
    B, S_DEC, S_ENC = 2, 8, 8
    k_h, k_e, k_p = jax.random.split(key, 3)

    hidden = jax.random.normal(k_h, (B, S_DEC, HIDDEN), jnp.float32)
    enc_hidden = jax.random.normal(k_e, (B, S_ENC, HIDDEN), jnp.float32)

    # padding masks (1 = attend); batch 1 has last two encoder tokens padded
    attn_mask = jnp.ones((B, S_DEC), jnp.float32)
    enc_mask = jnp.ones((B, S_ENC), jnp.float32).at[1, -2:].set(0.0)
    smask_add = (1.0 - attn_mask)[:, None, :] * -1e9   # [B, 1, S_dec]
    cmask_add = (1.0 - enc_mask)[:, None, :] * -1e9    # [B, 1, S_enc]

    params = init_params(k_p, NUM_LAYERS)
    packed = pack_params(params)

    (out,) = transformer_decoder(hidden, smask_add, enc_hidden, cmask_add, packed)
    out = jax.block_until_ready(out)

    ref = jax.block_until_ready(_ref_decoder(hidden, smask_add, enc_hidden, cmask_add, params))
    assert out.shape == (B, S_DEC, HIDDEN)
    assert bool(jnp.all(jnp.isfinite(out)))
    assert bool(jnp.allclose(out, ref, rtol=2e-2, atol=2e-2))

    print("KERNEL_OK")
</pallas_src>

<mosaic_0001>
module attributes {stable_mosaic.version = 11 : i64} {
  func.func @decoder_stack_kernel(%arg0: i32, %arg1: memref<1x8x32xf32, #tpu.memory_space<vmem>>, %arg2: memref<1x8x32xf32, #tpu.memory_space<vmem>>, %arg3: memref<1x1x8xf32, #tpu.memory_space<vmem>>, %arg4: memref<1x1x8xf32, #tpu.memory_space<vmem>>, %arg5: memref<2x32x32xf32, #tpu.memory_space<vmem>>, %arg6: memref<2x1x32xf32, #tpu.memory_space<vmem>>, %arg7: memref<2x32x64xf32, #tpu.memory_space<vmem>>, %arg8: memref<2x1x64xf32, #tpu.memory_space<vmem>>, %arg9: memref<2x32x32xf32, #tpu.memory_space<vmem>>, %arg10: memref<2x1x32xf32, #tpu.memory_space<vmem>>, %arg11: memref<2x2x32xf32, #tpu.memory_space<vmem>>, %arg12: memref<2x32x32xf32, #tpu.memory_space<vmem>>, %arg13: memref<2x1x32xf32, #tpu.memory_space<vmem>>, %arg14: memref<2x32x64xf32, #tpu.memory_space<vmem>>, %arg15: memref<2x1x64xf32, #tpu.memory_space<vmem>>, %arg16: memref<2x32x32xf32, #tpu.memory_space<vmem>>, %arg17: memref<2x1x32xf32, #tpu.memory_space<vmem>>, %arg18: memref<2x2x32xf32, #tpu.memory_space<vmem>>, %arg19: memref<2x32x64xf32, #tpu.memory_space<vmem>>, %arg20: memref<2x1x64xf32, #tpu.memory_space<vmem>>, %arg21: memref<2x64x32xf32, #tpu.memory_space<vmem>>, %arg22: memref<2x1x32xf32, #tpu.memory_space<vmem>>, %arg23: memref<2x2x32xf32, #tpu.memory_space<vmem>>, %arg24: memref<1x8x32xf32, #tpu.memory_space<vmem>>) attributes {dimension_semantics = [#tpu.dimension_semantics<parallel>], iteration_bounds = array<i64: 2>, scalar_prefetch = 0 : i64, scratch_operands = 0 : i64, tpu.core_type = #tpu.core_type<tc>, window_params = [{transform_indices = @transform_0, window_bounds = array<i64: 1, 8, 32>}, {transform_indices = @transform_1, window_bounds = array<i64: 1, 8, 32>}, {transform_indices = @transform_2, window_bounds = array<i64: 1, 1, 8>}, {transform_indices = @transform_3, window_bounds = array<i64: 1, 1, 8>}, {pipeline_mode = #tpu.pipeline_mode<synchronous>, transform_indices = @transform_4, window_bounds = array<i64: 2, 32, 32>}, {pipeline_mode = #tpu.pipeline_mode<synchronous>, transform_indices = @transform_5, window_bounds = array<i64: 2, 1, 32>}, {pipeline_mode = #tpu.pipeline_mode<synchronous>, transform_indices = @transform_6, window_bounds = array<i64: 2, 32, 64>}, {pipeline_mode = #tpu.pipeline_mode<synchronous>, transform_indices = @transform_7, window_bounds = array<i64: 2, 1, 64>}, {pipeline_mode = #tpu.pipeline_mode<synchronous>, transform_indices = @transform_8, window_bounds = array<i64: 2, 32, 32>}, {pipeline_mode = #tpu.pipeline_mode<synchronous>, transform_indices = @transform_9, window_bounds = array<i64: 2, 1, 32>}, {pipeline_mode = #tpu.pipeline_mode<synchronous>, transform_indices = @transform_10, window_bounds = array<i64: 2, 2, 32>}, {pipeline_mode = #tpu.pipeline_mode<synchronous>, transform_indices = @transform_11, window_bounds = array<i64: 2, 32, 32>}, {pipeline_mode = #tpu.pipeline_mode<synchronous>, transform_indices = @transform_12, window_bounds = array<i64: 2, 1, 32>}, {pipeline_mode = #tpu.pipeline_mode<synchronous>, transform_indices = @transform_13, window_bounds = array<i64: 2, 32, 64>}, {pipeline_mode = #tpu.pipeline_mode<synchronous>, transform_indices = @transform_14, window_bounds = array<i64: 2, 1, 64>}, {pipeline_mode = #tpu.pipeline_mode<synchronous>, transform_indices = @transform_15, window_bounds = array<i64: 2, 32, 32>}, {pipeline_mode = #tpu.pipeline_mode<synchronous>, transform_indices = @transform_16, window_bounds = array<i64: 2, 1, 32>}, {pipeline_mode = #tpu.pipeline_mode<synchronous>, transform_indices = @transform_17, window_bounds = array<i64: 2, 2, 32>}, {pipeline_mode = #tpu.pipeline_mode<synchronous>, transform_indices = @transform_18, window_bounds = array<i64: 2, 32, 64>}, {pipeline_mode = #tpu.pipeline_mode<synchronous>, transform_indices = @transform_19, window_bounds = array<i64: 2, 1, 64>}, {pipeline_mode = #tpu.pipeline_mode<synchronous>, transform_indices = @transform_20, window_bounds = array<i64: 2, 64, 32>}, {pipeline_mode = #tpu.pipeline_mode<synchronous>, transform_indices = @transform_21, window_bounds = array<i64: 2, 1, 32>}, {pipeline_mode = #tpu.pipeline_mode<synchronous>, transform_indices = @transform_22, window_bounds = array<i64: 2, 2, 32>}, {transform_indices = @transform_23, window_bounds = array<i64: 1, 8, 32>}]} {
    %c0 = arith.constant 0 : index
    %c0_0 = arith.constant 0 : index
    %c0_1 = arith.constant 0 : index
    %0 = vector.load %arg1[%c0, %c0_0, %c0_1] : memref<1x8x32xf32, #tpu.memory_space<vmem>>, vector<1x8x32xf32>
    %1 = vector.shape_cast %0 : vector<1x8x32xf32> to vector<8x32xf32>
    %c0_2 = arith.constant 0 : index
    %c0_3 = arith.constant 0 : index
    %c0_4 = arith.constant 0 : index
    %2 = vector.load %arg2[%c0_2, %c0_3, %c0_4] : memref<1x8x32xf32, #tpu.memory_space<vmem>>, vector<1x8x32xf32>
    %3 = vector.shape_cast %2 : vector<1x8x32xf32> to vector<8x32xf32>
    %c0_5 = arith.constant 0 : index
    %c0_6 = arith.constant 0 : index
    %c0_7 = arith.constant 0 : index
    %4 = vector.load %arg3[%c0_5, %c0_6, %c0_7] : memref<1x1x8xf32, #tpu.memory_space<vmem>>, vector<1x1x8xf32>
    %5 = vector.shape_cast %4 : vector<1x1x8xf32> to vector<1x8xf32>
    %c0_8 = arith.constant 0 : index
    %c0_9 = arith.constant 0 : index
    %c0_10 = arith.constant 0 : index
    %6 = vector.load %arg4[%c0_8, %c0_9, %c0_10] : memref<1x1x8xf32, #tpu.memory_space<vmem>>, vector<1x1x8xf32>
    %7 = vector.shape_cast %6 : vector<1x1x8xf32> to vector<1x8xf32>
    %c0_11 = arith.constant 0 : index
    %c0_12 = arith.constant 0 : index
    %c0_13 = arith.constant 0 : index
    %8 = vector.load %arg5[%c0_11, %c0_12, %c0_13] : memref<2x32x32xf32, #tpu.memory_space<vmem>>, vector<1x32x32xf32>
    %9 = vector.shape_cast %8 : vector<1x32x32xf32> to vector<32x32xf32>
    %c0_14 = arith.constant 0 : index
    %c0_15 = arith.constant 0 : index
    %c0_16 = arith.constant 0 : index
    %10 = vector.load %arg6[%c0_14, %c0_15, %c0_16] : memref<2x1x32xf32, #tpu.memory_space<vmem>>, vector<1x1x32xf32>
    %11 = vector.shape_cast %10 : vector<1x1x32xf32> to vector<1x32xf32>
    %c0_17 = arith.constant 0 : index
    %c0_18 = arith.constant 0 : index
    %c0_19 = arith.constant 0 : index
    %12 = vector.load %arg7[%c0_17, %c0_18, %c0_19] : memref<2x32x64xf32, #tpu.memory_space<vmem>>, vector<1x32x64xf32>
    %13 = vector.shape_cast %12 : vector<1x32x64xf32> to vector<32x64xf32>
    %c0_20 = arith.constant 0 : index
    %c0_21 = arith.constant 0 : index
    %c0_22 = arith.constant 0 : index
    %14 = vector.load %arg8[%c0_20, %c0_21, %c0_22] : memref<2x1x64xf32, #tpu.memory_space<vmem>>, vector<1x1x64xf32>
    %15 = vector.shape_cast %14 : vector<1x1x64xf32> to vector<1x64xf32>
    %c0_23 = arith.constant 0 : index
    %c0_24 = arith.constant 0 : index
    %c0_25 = arith.constant 0 : index
    %16 = vector.load %arg9[%c0_23, %c0_24, %c0_25] : memref<2x32x32xf32, #tpu.memory_space<vmem>>, vector<1x32x32xf32>
    %17 = vector.shape_cast %16 : vector<1x32x32xf32> to vector<32x32xf32>
    %c0_26 = arith.constant 0 : index
    %c0_27 = arith.constant 0 : index
    %c0_28 = arith.constant 0 : index
    %18 = vector.load %arg10[%c0_26, %c0_27, %c0_28] : memref<2x1x32xf32, #tpu.memory_space<vmem>>, vector<1x1x32xf32>
    %19 = vector.shape_cast %18 : vector<1x1x32xf32> to vector<1x32xf32>
    %c0_29 = arith.constant 0 : index
    %c0_30 = arith.constant 0 : index
    %c0_31 = arith.constant 0 : index
    %20 = vector.load %arg11[%c0_29, %c0_30, %c0_31] : memref<2x2x32xf32, #tpu.memory_space<vmem>>, vector<1x2x32xf32>
    %21 = vector.shape_cast %20 : vector<1x2x32xf32> to vector<2x32xf32>
    %cst = arith.constant dense<0.000000e+00> : vector<8x32xf32>
    %22 = tpu.matmul %1, %9, %cst {dimension_numbers = #tpu.dot_dimension_numbers<[1], [0], [0], [1], [0, 0, 1, 1], [], []>} : vector<8x32xf32>, vector<32x32xf32>, vector<8x32xf32> -> vector<8x32xf32>
    %23 = vector.broadcast %11 : vector<1x32xf32> to vector<8x32xf32>
    %24 = arith.addf %22, %23 : vector<8x32xf32>
    %cst_32 = arith.constant dense<0.000000e+00> : vector<8x64xf32>
    %25 = tpu.matmul %1, %13, %cst_32 {dimension_numbers = #tpu.dot_dimension_numbers<[1], [0], [0], [1], [0, 0, 1, 1], [], []>} : vector<8x32xf32>, vector<32x64xf32>, vector<8x64xf32> -> vector<8x64xf32>
    %26 = vector.broadcast %15 : vector<1x64xf32> to vector<8x64xf32>
    %27 = arith.addf %25, %26 : vector<8x64xf32>
    %28 = vector.extract_strided_slice %24 {offsets = [0, 0], sizes = [8, 8], strides = [1, 1]} : vector<8x32xf32> to vector<8x8xf32>
    %29 = vector.extract_strided_slice %24 {offsets = [0, 8], sizes = [8, 8], strides = [1, 1]} : vector<8x32xf32> to vector<8x8xf32>
    %30 = vector.extract_strided_slice %24 {offsets = [0, 16], sizes = [8, 8], strides = [1, 1]} : vector<8x32xf32> to vector<8x8xf32>
    %31 = vector.extract_strided_slice %24 {offsets = [0, 24], sizes = [8, 8], strides = [1, 1]} : vector<8x32xf32> to vector<8x8xf32>
    %32 = vector.shape_cast %28 : vector<8x8xf32> to vector<1x8x8xf32>
    %33 = vector.shape_cast %29 : vector<8x8xf32> to vector<1x8x8xf32>
    %34 = vector.shape_cast %30 : vector<8x8xf32> to vector<1x8x8xf32>
    %35 = vector.shape_cast %31 : vector<8x8xf32> to vector<1x8x8xf32>
    %36 = tpu.concatenate %32, %33, %34, %35 in 0 : vector<1x8x8xf32>, vector<1x8x8xf32>, vector<1x8x8xf32>, vector<1x8x8xf32> -> vector<4x8x8xf32>
    %37 = vector.extract_strided_slice %27 {offsets = [0, 0], sizes = [8, 8], strides = [1, 1]} : vector<8x64xf32> to vector<8x8xf32>
    %38 = vector.extract_strided_slice %27 {offsets = [0, 8], sizes = [8, 8], strides = [1, 1]} : vector<8x64xf32> to vector<8x8xf32>
    %39 = vector.extract_strided_slice %27 {offsets = [0, 16], sizes = [8, 8], strides = [1, 1]} : vector<8x64xf32> to vector<8x8xf32>
    %40 = vector.extract_strided_slice %27 {offsets = [0, 24], sizes = [8, 8], strides = [1, 1]} : vector<8x64xf32> to vector<8x8xf32>
    %41 = vector.shape_cast %37 : vector<8x8xf32> to vector<1x8x8xf32>
    %42 = vector.shape_cast %38 : vector<8x8xf32> to vector<1x8x8xf32>
    %43 = vector.shape_cast %39 : vector<8x8xf32> to vector<1x8x8xf32>
    %44 = vector.shape_cast %40 : vector<8x8xf32> to vector<1x8x8xf32>
    %45 = tpu.concatenate %41, %42, %43, %44 in 0 : vector<1x8x8xf32>, vector<1x8x8xf32>, vector<1x8x8xf32>, vector<1x8x8xf32> -> vector<4x8x8xf32>
    %46 = vector.extract_strided_slice %27 {offsets = [0, 32], sizes = [8, 8], strides = [1, 1]} : vector<8x64xf32> to vector<8x8xf32>
    %47 = vector.extract_strided_slice %27 {offsets = [0, 40], sizes = [8, 8], strides = [1, 1]} : vector<8x64xf32> to vector<8x8xf32>
    %48 = vector.extract_strided_slice %27 {offsets = [0, 48], sizes = [8, 8], strides = [1, 1]} : vector<8x64xf32> to vector<8x8xf32>
    %49 = vector.extract_strided_slice %27 {offsets = [0, 56], sizes = [8, 8], strides = [1, 1]} : vector<8x64xf32> to vector<8x8xf32>
    %50 = vector.shape_cast %46 : vector<8x8xf32> to vector<1x8x8xf32>
    %51 = vector.shape_cast %47 : vector<8x8xf32> to vector<1x8x8xf32>
    %52 = vector.shape_cast %48 : vector<8x8xf32> to vector<1x8x8xf32>
    %53 = vector.shape_cast %49 : vector<8x8xf32> to vector<1x8x8xf32>
    %54 = tpu.concatenate %50, %51, %52, %53 in 0 : vector<1x8x8xf32>, vector<1x8x8xf32>, vector<1x8x8xf32>, vector<1x8x8xf32> -> vector<4x8x8xf32>
    "tpu.trace_start"() <{level = 10 : i32, message = "nqd,nkd->nqk"}> : () -> ()
    %cst_33 = arith.constant dense<0.000000e+00> : vector<4x8x8xf32>
    %55 = tpu.matmul %36, %45, %cst_33 {dimension_numbers = #tpu.dot_dimension_numbers<[2], [2], [1], [1], [0, 0, 0, 1, 1, 1], [0], [0]>} : vector<4x8x8xf32>, vector<4x8x8xf32>, vector<4x8x8xf32> -> vector<4x8x8xf32>
    "tpu.trace_stop"() : () -> ()
    %56 = vector.shape_cast %5 : vector<1x8xf32> to vector<1x1x8xf32>
    %57 = vector.broadcast %56 : vector<1x1x8xf32> to vector<4x8x8xf32>
    %58 = arith.addf %55, %57 : vector<4x8x8xf32>
    %cst_34 = arith.constant dense<0xFF800000> : vector<4x8xf32>
    %59 = vector.multi_reduction <maximumf>, %58, %cst_34 [2] : vector<4x8x8xf32> to vector<4x8xf32>
    %60 = vector.shape_cast %59 : vector<4x8xf32> to vector<4x8x1xf32>
    %61 = vector.broadcast %60 : vector<4x8x1xf32> to vector<4x8x8xf32>
    %62 = arith.subf %58, %61 : vector<4x8x8xf32>
    %63 = math.exp %62 : vector<4x8x8xf32>
    %cst_35 = arith.constant dense<0.000000e+00> : vector<4x8xf32>
    %64 = vector.multi_reduction <add>, %63, %cst_35 [2] : vector<4x8x8xf32> to vector<4x8xf32>
    %65 = vector.shape_cast %64 : vector<4x8xf32> to vector<4x8x1xf32>
    %66 = tpu.reciprocal %65 {approx = true} : vector<4x8x1xf32> -> vector<4x8x1xf32>
    %67 = vector.broadcast %66 : vector<4x8x1xf32> to vector<4x8x8xf32>
    %68 = arith.mulf %63, %67 : vector<4x8x8xf32>
    "tpu.trace_start"() <{level = 10 : i32, message = "nqk,nkd->nqd"}> : () -> ()
    %cst_36 = arith.constant dense<0.000000e+00> : vector<4x8x8xf32>
    %69 = tpu.matmul %68, %54, %cst_36 {dimension_numbers = #tpu.dot_dimension_numbers<[2], [1], [1], [2], [0, 0, 0, 1, 1, 2], [0], [0]>} : vector<4x8x8xf32>, vector<4x8x8xf32>, vector<4x8x8xf32> -> vector<4x8x8xf32>
    "tpu.trace_stop"() : () -> ()
    %70 = vector.extract_strided_slice %69 {offsets = [0, 0, 0], sizes = [1, 8, 8], strides = [1, 1, 1]} : vector<4x8x8xf32> to vector<1x8x8xf32>
    %71 = vector.shape_cast %70 : vector<1x8x8xf32> to vector<8x8xf32>
    %72 = vector.extract_strided_slice %69 {offsets = [1, 0, 0], sizes = [1, 8, 8], strides = [1, 1, 1]} : vector<4x8x8xf32> to vector<1x8x8xf32>
    %73 = vector.shape_cast %72 : vector<1x8x8xf32> to vector<8x8xf32>
    %74 = vector.extract_strided_slice %69 {offsets = [2, 0, 0], sizes = [1, 8, 8], strides = [1, 1, 1]} : vector<4x8x8xf32> to vector<1x8x8xf32>
    %75 = vector.shape_cast %74 : vector<1x8x8xf32> to vector<8x8xf32>
    %76 = vector.extract_strided_slice %69 {offsets = [3, 0, 0], sizes = [1, 8, 8], strides = [1, 1, 1]} : vector<4x8x8xf32> to vector<1x8x8xf32>
    %77 = vector.shape_cast %76 : vector<1x8x8xf32> to vector<8x8xf32>
    %78 = tpu.concatenate %71, %73, %75, %77 in 1 : vector<8x8xf32>, vector<8x8xf32>, vector<8x8xf32>, vector<8x8xf32> -> vector<8x32xf32>
    %cst_37 = arith.constant dense<0.000000e+00> : vector<8x32xf32>
    %79 = tpu.matmul %78, %17, %cst_37 {dimension_numbers = #tpu.dot_dimension_numbers<[1], [0], [0], [1], [0, 0, 1, 1], [], []>} : vector<8x32xf32>, vector<32x32xf32>, vector<8x32xf32> -> vector<8x32xf32>
    %80 = vector.broadcast %19 : vector<1x32xf32> to vector<8x32xf32>
    %81 = arith.addf %79, %80 : vector<8x32xf32>
    %82 = arith.addf %81, %1 : vector<8x32xf32>
    %83 = vector.extract_strided_slice %21 {offsets = [0, 0], sizes = [1, 32], strides = [1, 1]} : vector<2x32xf32> to vector<1x32xf32>
    %84 = vector.shape_cast %83 : vector<1x32xf32> to vector<32xf32>
    %85 = vector.extract_strided_slice %21 {offsets = [1, 0], sizes = [1, 32], strides = [1, 1]} : vector<2x32xf32> to vector<1x32xf32>
    %86 = vector.shape_cast %85 : vector<1x32xf32> to vector<32xf32>
    %cst_38 = arith.constant dense<0.000000e+00> : vector<8xf32>
    %87 = vector.multi_reduction <add>, %82, %cst_38 [1] : vector<8x32xf32> to vector<8xf32>
    %88 = vector.shape_cast %87 : vector<8xf32> to vector<8x1xf32>
    %cst_39 = arith.constant 3.200000e+01 : f32
    %89 = vector.broadcast %cst_39 : f32 to vector<8x1xf32>
    %90 = arith.divf %88, %89 : vector<8x1xf32>
    %91 = vector.broadcast %90 : vector<8x1xf32> to vector<8x32xf32>
    %92 = arith.subf %82, %91 : vector<8x32xf32>
    %93 = arith.mulf %92, %92 : vector<8x32xf32>
    %cst_40 = arith.constant dense<0.000000e+00> : vector<8xf32>
    %94 = vector.multi_reduction <add>, %93, %cst_40 [1] : vector<8x32xf32> to vector<8xf32>
    %95 = vector.shape_cast %94 : vector<8xf32> to vector<8x1xf32>
    %cst_41 = arith.constant 3.200000e+01 : f32
    %96 = vector.broadcast %cst_41 : f32 to vector<8x1xf32>
    %97 = arith.divf %95, %96 : vector<8x1xf32>
    %98 = vector.broadcast %90 : vector<8x1xf32> to vector<8x32xf32>
    %99 = arith.subf %82, %98 : vector<8x32xf32>
    %cst_42 = arith.constant 9.99999996E-13 : f32
    %100 = vector.broadcast %cst_42 : f32 to vector<8x1xf32>
    %101 = arith.addf %97, %100 : vector<8x1xf32>
    %102 = math.rsqrt %101 : vector<8x1xf32>
    %103 = vector.broadcast %102 : vector<8x1xf32> to vector<8x32xf32>
    %104 = arith.mulf %99, %103 : vector<8x32xf32>
    %105 = vector.shape_cast %84 : vector<32xf32> to vector<1x32xf32>
    %106 = vector.broadcast %105 : vector<1x32xf32> to vector<8x32xf32>
    %107 = arith.mulf %104, %106 : vector<8x32xf32>
    %108 = vector.shape_cast %86 : vector<32xf32> to vector<1x32xf32>
    %109 = vector.broadcast %108 : vector<1x32xf32> to vector<8x32xf32>
    %110 = arith.addf %107, %109 : vector<8x32xf32>
    %c0_43 = arith.constant 0 : index
    %c0_44 = arith.constant 0 : index
    %c0_45 = arith.constant 0 : index
    %111 = vector.load %arg12[%c0_43, %c0_44, %c0_45] : memref<2x32x32xf32, #tpu.memory_space<vmem>>, vector<1x32x32xf32>
    %112 = vector.shape_cast %111 : vector<1x32x32xf32> to vector<32x32xf32>
    %c0_46 = arith.constant 0 : index
    %c0_47 = arith.constant 0 : index
    %c0_48 = arith.constant 0 : index
    %113 = vector.load %arg13[%c0_46, %c0_47, %c0_48] : memref<2x1x32xf32, #tpu.memory_space<vmem>>, vector<1x1x32xf32>
    %114 = vector.shape_cast %113 : vector<1x1x32xf32> to vector<1x32xf32>
    %c0_49 = arith.constant 0 : index
    %c0_50 = arith.constant 0 : index
    %c0_51 = arith.constant 0 : index
    %115 = vector.load %arg14[%c0_49, %c0_50, %c0_51] : memref<2x32x64xf32, #tpu.memory_space<vmem>>, vector<1x32x64xf32>
    %116 = vector.shape_cast %115 : vector<1x32x64xf32> to vector<32x64xf32>
    %c0_52 = arith.constant 0 : index
    %c0_53 = arith.constant 0 : index
    %c0_54 = arith.constant 0 : index
    %117 = vector.load %arg15[%c0_52, %c0_53, %c0_54] : memref<2x1x64xf32, #tpu.memory_space<vmem>>, vector<1x1x64xf32>
    %118 = vector.shape_cast %117 : vector<1x1x64xf32> to vector<1x64xf32>
    %c0_55 = arith.constant 0 : index
    %c0_56 = arith.constant 0 : index
    %c0_57 = arith.constant 0 : index
    %119 = vector.load %arg16[%c0_55, %c0_56, %c0_57] : memref<2x32x32xf32, #tpu.memory_space<vmem>>, vector<1x32x32xf32>
    %120 = vector.shape_cast %119 : vector<1x32x32xf32> to vector<32x32xf32>
    %c0_58 = arith.constant 0 : index
    %c0_59 = arith.constant 0 : index
    %c0_60 = arith.constant 0 : index
    %121 = vector.load %arg17[%c0_58, %c0_59, %c0_60] : memref<2x1x32xf32, #tpu.memory_space<vmem>>, vector<1x1x32xf32>
    %122 = vector.shape_cast %121 : vector<1x1x32xf32> to vector<1x32xf32>
    %c0_61 = arith.constant 0 : index
    %c0_62 = arith.constant 0 : index
    %c0_63 = arith.constant 0 : index
    %123 = vector.load %arg18[%c0_61, %c0_62, %c0_63] : memref<2x2x32xf32, #tpu.memory_space<vmem>>, vector<1x2x32xf32>
    %124 = vector.shape_cast %123 : vector<1x2x32xf32> to vector<2x32xf32>
    %cst_64 = arith.constant dense<0.000000e+00> : vector<8x32xf32>
    %125 = tpu.matmul %110, %112, %cst_64 {dimension_numbers = #tpu.dot_dimension_numbers<[1], [0], [0], [1], [0, 0, 1, 1], [], []>} : vector<8x32xf32>, vector<32x32xf32>, vector<8x32xf32> -> vector<8x32xf32>
    %126 = vector.broadcast %114 : vector<1x32xf32> to vector<8x32xf32>
    %127 = arith.addf %125, %126 : vector<8x32xf32>
    %cst_65 = arith.constant dense<0.000000e+00> : vector<8x64xf32>
    %128 = tpu.matmul %3, %116, %cst_65 {dimension_numbers = #tpu.dot_dimension_numbers<[1], [0], [0], [1], [0, 0, 1, 1], [], []>} : vector<8x32xf32>, vector<32x64xf32>, vector<8x64xf32> -> vector<8x64xf32>
    %129 = vector.broadcast %118 : vector<1x64xf32> to vector<8x64xf32>
    %130 = arith.addf %128, %129 : vector<8x64xf32>
    %131 = vector.extract_strided_slice %127 {offsets = [0, 0], sizes = [8, 8], strides = [1, 1]} : vector<8x32xf32> to vector<8x8xf32>
    %132 = vector.extract_strided_slice %127 {offsets = [0, 8], sizes = [8, 8], strides = [1, 1]} : vector<8x32xf32> to vector<8x8xf32>
    %133 = vector.extract_strided_slice %127 {offsets = [0, 16], sizes = [8, 8], strides = [1, 1]} : vector<8x32xf32> to vector<8x8xf32>
    %134 = vector.extract_strided_slice %127 {offsets = [0, 24], sizes = [8, 8], strides = [1, 1]} : vector<8x32xf32> to vector<8x8xf32>
    %135 = vector.shape_cast %131 : vector<8x8xf32> to vector<1x8x8xf32>
    %136 = vector.shape_cast %132 : vector<8x8xf32> to vector<1x8x8xf32>
    %137 = vector.shape_cast %133 : vector<8x8xf32> to vector<1x8x8xf32>
    %138 = vector.shape_cast %134 : vector<8x8xf32> to vector<1x8x8xf32>
    %139 = tpu.concatenate %135, %136, %137, %138 in 0 : vector<1x8x8xf32>, vector<1x8x8xf32>, vector<1x8x8xf32>, vector<1x8x8xf32> -> vector<4x8x8xf32>
    %140 = vector.extract_strided_slice %130 {offsets = [0, 0], sizes = [8, 8], strides = [1, 1]} : vector<8x64xf32> to vector<8x8xf32>
    %141 = vector.extract_strided_slice %130 {offsets = [0, 8], sizes = [8, 8], strides = [1, 1]} : vector<8x64xf32> to vector<8x8xf32>
    %142 = vector.extract_strided_slice %130 {offsets = [0, 16], sizes = [8, 8], strides = [1, 1]} : vector<8x64xf32> to vector<8x8xf32>
    %143 = vector.extract_strided_slice %130 {offsets = [0, 24], sizes = [8, 8], strides = [1, 1]} : vector<8x64xf32> to vector<8x8xf32>
    %144 = vector.shape_cast %140 : vector<8x8xf32> to vector<1x8x8xf32>
    %145 = vector.shape_cast %141 : vector<8x8xf32> to vector<1x8x8xf32>
    %146 = vector.shape_cast %142 : vector<8x8xf32> to vector<1x8x8xf32>
    %147 = vector.shape_cast %143 : vector<8x8xf32> to vector<1x8x8xf32>
    %148 = tpu.concatenate %144, %145, %146, %147 in 0 : vector<1x8x8xf32>, vector<1x8x8xf32>, vector<1x8x8xf32>, vector<1x8x8xf32> -> vector<4x8x8xf32>
    %149 = vector.extract_strided_slice %130 {offsets = [0, 32], sizes = [8, 8], strides = [1, 1]} : vector<8x64xf32> to vector<8x8xf32>
    %150 = vector.extract_strided_slice %130 {offsets = [0, 40], sizes = [8, 8], strides = [1, 1]} : vector<8x64xf32> to vector<8x8xf32>
    %151 = vector.extract_strided_slice %130 {offsets = [0, 48], sizes = [8, 8], strides = [1, 1]} : vector<8x64xf32> to vector<8x8xf32>
    %152 = vector.extract_strided_slice %130 {offsets = [0, 56], sizes = [8, 8], strides = [1, 1]} : vector<8x64xf32> to vector<8x8xf32>
    %153 = vector.shape_cast %149 : vector<8x8xf32> to vector<1x8x8xf32>
    %154 = vector.shape_cast %150 : vector<8x8xf32> to vector<1x8x8xf32>
    %155 = vector.shape_cast %151 : vector<8x8xf32> to vector<1x8x8xf32>
    %156 = vector.shape_cast %152 : vector<8x8xf32> to vector<1x8x8xf32>
    %157 = tpu.concatenate %153, %154, %155, %156 in 0 : vector<1x8x8xf32>, vector<1x8x8xf32>, vector<1x8x8xf32>, vector<1x8x8xf32> -> vector<4x8x8xf32>
    "tpu.trace_start"() <{level = 10 : i32, message = "nqd,nkd->nqk"}> : () -> ()
    %cst_66 = arith.constant dense<0.000000e+00> : vector<4x8x8xf32>
    %158 = tpu.matmul %139, %148, %cst_66 {dimension_numbers = #tpu.dot_dimension_numbers<[2], [2], [1], [1], [0, 0, 0, 1, 1, 1], [0], [0]>} : vector<4x8x8xf32>, vector<4x8x8xf32>, vector<4x8x8xf32> -> vector<4x8x8xf32>
    "tpu.trace_stop"() : () -> ()
    %159 = vector.shape_cast %7 : vector<1x8xf32> to vector<1x1x8xf32>
    %160 = vector.broadcast %159 : vector<1x1x8xf32> to vector<4x8x8xf32>
    %161 = arith.addf %158, %160 : vector<4x8x8xf32>
    %cst_67 = arith.constant dense<0xFF800000> : vector<4x8xf32>
    %162 = vector.multi_reduction <maximumf>, %161, %cst_67 [2] : vector<4x8x8xf32> to vector<4x8xf32>
    %163 = vector.shape_cast %162 : vector<4x8xf32> to vector<4x8x1xf32>
    %164 = vector.broadcast %163 : vector<4x8x1xf32> to vector<4x8x8xf32>
    %165 = arith.subf %161, %164 : vector<4x8x8xf32>
    %166 = math.exp %165 : vector<4x8x8xf32>
    %cst_68 = arith.constant dense<0.000000e+00> : vector<4x8xf32>
    %167 = vector.multi_reduction <add>, %166, %cst_68 [2] : vector<4x8x8xf32> to vector<4x8xf32>
    %168 = vector.shape_cast %167 : vector<4x8xf32> to vector<4x8x1xf32>
    %169 = tpu.reciprocal %168 {approx = true} : vector<4x8x1xf32> -> vector<4x8x1xf32>
    %170 = vector.broadcast %169 : vector<4x8x1xf32> to vector<4x8x8xf32>
    %171 = arith.mulf %166, %170 : vector<4x8x8xf32>
    "tpu.trace_start"() <{level = 10 : i32, message = "nqk,nkd->nqd"}> : () -> ()
    %cst_69 = arith.constant dense<0.000000e+00> : vector<4x8x8xf32>
    %172 = tpu.matmul %171, %157, %cst_69 {dimension_numbers = #tpu.dot_dimension_numbers<[2], [1], [1], [2], [0, 0, 0, 1, 1, 2], [0], [0]>} : vector<4x8x8xf32>, vector<4x8x8xf32>, vector<4x8x8xf32> -> vector<4x8x8xf32>
    "tpu.trace_stop"() : () -> ()
    %173 = vector.extract_strided_slice %172 {offsets = [0, 0, 0], sizes = [1, 8, 8], strides = [1, 1, 1]} : vector<4x8x8xf32> to vector<1x8x8xf32>
    %174 = vector.shape_cast %173 : vector<1x8x8xf32> to vector<8x8xf32>
    %175 = vector.extract_strided_slice %172 {offsets = [1, 0, 0], sizes = [1, 8, 8], strides = [1, 1, 1]} : vector<4x8x8xf32> to vector<1x8x8xf32>
    %176 = vector.shape_cast %175 : vector<1x8x8xf32> to vector<8x8xf32>
    %177 = vector.extract_strided_slice %172 {offsets = [2, 0, 0], sizes = [1, 8, 8], strides = [1, 1, 1]} : vector<4x8x8xf32> to vector<1x8x8xf32>
    %178 = vector.shape_cast %177 : vector<1x8x8xf32> to vector<8x8xf32>
    %179 = vector.extract_strided_slice %172 {offsets = [3, 0, 0], sizes = [1, 8, 8], strides = [1, 1, 1]} : vector<4x8x8xf32> to vector<1x8x8xf32>
    %180 = vector.shape_cast %179 : vector<1x8x8xf32> to vector<8x8xf32>
    %181 = tpu.concatenate %174, %176, %178, %180 in 1 : vector<8x8xf32>, vector<8x8xf32>, vector<8x8xf32>, vector<8x8xf32> -> vector<8x32xf32>
    %cst_70 = arith.constant dense<0.000000e+00> : vector<8x32xf32>
    %182 = tpu.matmul %181, %120, %cst_70 {dimension_numbers = #tpu.dot_dimension_numbers<[1], [0], [0], [1], [0, 0, 1, 1], [], []>} : vector<8x32xf32>, vector<32x32xf32>, vector<8x32xf32> -> vector<8x32xf32>
    %183 = vector.broadcast %122 : vector<1x32xf32> to vector<8x32xf32>
    %184 = arith.addf %182, %183 : vector<8x32xf32>
    %185 = arith.addf %184, %110 : vector<8x32xf32>
    %186 = vector.extract_strided_slice %124 {offsets = [0, 0], sizes = [1, 32], strides = [1, 1]} : vector<2x32xf32> to vector<1x32xf32>
    %187 = vector.shape_cast %186 : vector<1x32xf32> to vector<32xf32>
    %188 = vector.extract_strided_slice %124 {offsets = [1, 0], sizes = [1, 32], strides = [1, 1]} : vector<2x32xf32> to vector<1x32xf32>
    %189 = vector.shape_cast %188 : vector<1x32xf32> to vector<32xf32>
    %cst_71 = arith.constant dense<0.000000e+00> : vector<8xf32>
    %190 = vector.multi_reduction <add>, %185, %cst_71 [1] : vector<8x32xf32> to vector<8xf32>
    %191 = vector.shape_cast %190 : vector<8xf32> to vector<8x1xf32>
    %cst_72 = arith.constant 3.200000e+01 : f32
    %192 = vector.broadcast %cst_72 : f32 to vector<8x1xf32>
    %193 = arith.divf %191, %192 : vector<8x1xf32>
    %194 = vector.broadcast %193 : vector<8x1xf32> to vector<8x32xf32>
    %195 = arith.subf %185, %194 : vector<8x32xf32>
    %196 = arith.mulf %195, %195 : vector<8x32xf32>
    %cst_73 = arith.constant dense<0.000000e+00> : vector<8xf32>
    %197 = vector.multi_reduction <add>, %196, %cst_73 [1] : vector<8x32xf32> to vector<8xf32>
    %198 = vector.shape_cast %197 : vector<8xf32> to vector<8x1xf32>
    %cst_74 = arith.constant 3.200000e+01 : f32
    %199 = vector.broadcast %cst_74 : f32 to vector<8x1xf32>
    %200 = arith.divf %198, %199 : vector<8x1xf32>
    %201 = vector.broadcast %193 : vector<8x1xf32> to vector<8x32xf32>
    %202 = arith.subf %185, %201 : vector<8x32xf32>
    %cst_75 = arith.constant 9.99999996E-13 : f32
    %203 = vector.broadcast %cst_75 : f32 to vector<8x1xf32>
    %204 = arith.addf %200, %203 : vector<8x1xf32>
    %205 = math.rsqrt %204 : vector<8x1xf32>
    %206 = vector.broadcast %205 : vector<8x1xf32> to vector<8x32xf32>
    %207 = arith.mulf %202, %206 : vector<8x32xf32>
    %208 = vector.shape_cast %187 : vector<32xf32> to vector<1x32xf32>
    %209 = vector.broadcast %208 : vector<1x32xf32> to vector<8x32xf32>
    %210 = arith.mulf %207, %209 : vector<8x32xf32>
    %211 = vector.shape_cast %189 : vector<32xf32> to vector<1x32xf32>
    %212 = vector.broadcast %211 : vector<1x32xf32> to vector<8x32xf32>
    %213 = arith.addf %210, %212 : vector<8x32xf32>
    %c0_76 = arith.constant 0 : index
    %c0_77 = arith.constant 0 : index
    %c0_78 = arith.constant 0 : index
    %214 = vector.load %arg19[%c0_76, %c0_77, %c0_78] : memref<2x32x64xf32, #tpu.memory_space<vmem>>, vector<1x32x64xf32>
    %215 = vector.shape_cast %214 : vector<1x32x64xf32> to vector<32x64xf32>
    %cst_79 = arith.constant dense<0.000000e+00> : vector<8x64xf32>
    %216 = tpu.matmul %213, %215, %cst_79 {dimension_numbers = #tpu.dot_dimension_numbers<[1], [0], [0], [1], [0, 0, 1, 1], [], []>} : vector<8x32xf32>, vector<32x64xf32>, vector<8x64xf32> -> vector<8x64xf32>
    %c0_80 = arith.constant 0 : index
    %c0_81 = arith.constant 0 : index
    %c0_82 = arith.constant 0 : index
    %217 = vector.load %arg20[%c0_80, %c0_81, %c0_82] : memref<2x1x64xf32, #tpu.memory_space<vmem>>, vector<1x1x64xf32>
    %218 = vector.shape_cast %217 : vector<1x1x64xf32> to vector<1x64xf32>
    %219 = vector.broadcast %218 : vector<1x64xf32> to vector<8x64xf32>
    %220 = arith.addf %216, %219 : vector<8x64xf32>
    %cst_83 = arith.constant 5.000000e-01 : f32
    %221 = vector.broadcast %cst_83 : f32 to vector<8x64xf32>
    %222 = arith.mulf %221, %220 : vector<8x64xf32>
    %cst_84 = arith.constant 4.471500e-02 : f32
    %223 = vector.broadcast %cst_84 : f32 to vector<8x64xf32>
    %224 = arith.mulf %223, %220 : vector<8x64xf32>
    %225 = arith.mulf %224, %220 : vector<8x64xf32>
    %226 = arith.mulf %225, %220 : vector<8x64xf32>
    %227 = arith.addf %220, %226 : vector<8x64xf32>
    %cst_85 = arith.constant 0.797884583 : f32
    %228 = vector.broadcast %cst_85 : f32 to vector<8x64xf32>
    %229 = arith.mulf %228, %227 : vector<8x64xf32>
    %230 = math.tanh %229 : vector<8x64xf32>
    %cst_86 = arith.constant 1.000000e+00 : f32
    %231 = vector.broadcast %cst_86 : f32 to vector<8x64xf32>
    %232 = arith.addf %231, %230 : vector<8x64xf32>
    %233 = arith.mulf %222, %232 : vector<8x64xf32>
    %c0_87 = arith.constant 0 : index
    %c0_88 = arith.constant 0 : index
    %c0_89 = arith.constant 0 : index
    %234 = vector.load %arg21[%c0_87, %c0_88, %c0_89] : memref<2x64x32xf32, #tpu.memory_space<vmem>>, vector<1x64x32xf32>
    %235 = vector.shape_cast %234 : vector<1x64x32xf32> to vector<64x32xf32>
    %cst_90 = arith.constant dense<0.000000e+00> : vector<8x32xf32>
    %236 = tpu.matmul %233, %235, %cst_90 {dimension_numbers = #tpu.dot_dimension_numbers<[1], [0], [0], [1], [0, 0, 1, 1], [], []>} : vector<8x64xf32>, vector<64x32xf32>, vector<8x32xf32> -> vector<8x32xf32>
    %c0_91 = arith.constant 0 : index
    %c0_92 = arith.constant 0 : index
    %c0_93 = arith.constant 0 : index
    %237 = vector.load %arg22[%c0_91, %c0_92, %c0_93] : memref<2x1x32xf32, #tpu.memory_space<vmem>>, vector<1x1x32xf32>
    %238 = vector.shape_cast %237 : vector<1x1x32xf32> to vector<1x32xf32>
    %239 = vector.broadcast %238 : vector<1x32xf32> to vector<8x32xf32>
    %240 = arith.addf %236, %239 : vector<8x32xf32>
    %c0_94 = arith.constant 0 : index
    %c0_95 = arith.constant 0 : index
    %c0_96 = arith.constant 0 : index
    %241 = vector.load %arg23[%c0_94, %c0_95, %c0_96] : memref<2x2x32xf32, #tpu.memory_space<vmem>>, vector<1x2x32xf32>
    %242 = vector.shape_cast %241 : vector<1x2x32xf32> to vector<2x32xf32>
    %243 = arith.addf %240, %213 : vector<8x32xf32>
    %244 = vector.extract_strided_slice %242 {offsets = [0, 0], sizes = [1, 32], strides = [1, 1]} : vector<2x32xf32> to vector<1x32xf32>
    %245 = vector.shape_cast %244 : vector<1x32xf32> to vector<32xf32>
    %246 = vector.extract_strided_slice %242 {offsets = [1, 0], sizes = [1, 32], strides = [1, 1]} : vector<2x32xf32> to vector<1x32xf32>
    %247 = vector.shape_cast %246 : vector<1x32xf32> to vector<32xf32>
    %cst_97 = arith.constant dense<0.000000e+00> : vector<8xf32>
    %248 = vector.multi_reduction <add>, %243, %cst_97 [1] : vector<8x32xf32> to vector<8xf32>
    %249 = vector.shape_cast %248 : vector<8xf32> to vector<8x1xf32>
    %cst_98 = arith.constant 3.200000e+01 : f32
    %250 = vector.broadcast %cst_98 : f32 to vector<8x1xf32>
    %251 = arith.divf %249, %250 : vector<8x1xf32>
    %252 = vector.broadcast %251 : vector<8x1xf32> to vector<8x32xf32>
    %253 = arith.subf %243, %252 : vector<8x32xf32>
    %254 = arith.mulf %253, %253 : vector<8x32xf32>
    %cst_99 = arith.constant dense<0.000000e+00> : vector<8xf32>
    %255 = vector.multi_reduction <add>, %254, %cst_99 [1] : vector<8x32xf32> to vector<8xf32>
    %256 = vector.shape_cast %255 : vector<8xf32> to vector<8x1xf32>
    %cst_100 = arith.constant 3.200000e+01 : f32
    %257 = vector.broadcast %cst_100 : f32 to vector<8x1xf32>
    %258 = arith.divf %256, %257 : vector<8x1xf32>
    %259 = vector.broadcast %251 : vector<8x1xf32> to vector<8x32xf32>
    %260 = arith.subf %243, %259 : vector<8x32xf32>
    %cst_101 = arith.constant 9.99999996E-13 : f32
    %261 = vector.broadcast %cst_101 : f32 to vector<8x1xf32>
    %262 = arith.addf %258, %261 : vector<8x1xf32>
    %263 = math.rsqrt %262 : vector<8x1xf32>
    %264 = vector.broadcast %263 : vector<8x1xf32> to vector<8x32xf32>
    %265 = arith.mulf %260, %264 : vector<8x32xf32>
    %266 = vector.shape_cast %245 : vector<32xf32> to vector<1x32xf32>
    %267 = vector.broadcast %266 : vector<1x32xf32> to vector<8x32xf32>
    %268 = arith.mulf %265, %267 : vector<8x32xf32>
    %269 = vector.shape_cast %247 : vector<32xf32> to vector<1x32xf32>
    %270 = vector.broadcast %269 : vector<1x32xf32> to vector<8x32xf32>
    %271 = arith.addf %268, %270 : vector<8x32xf32>
    %c1 = arith.constant 1 : index
    %c0_102 = arith.constant 0 : index
    %c0_103 = arith.constant 0 : index
    %272 = vector.load %arg5[%c1, %c0_102, %c0_103] : memref<2x32x32xf32, #tpu.memory_space<vmem>>, vector<1x32x32xf32>
    %273 = vector.shape_cast %272 : vector<1x32x32xf32> to vector<32x32xf32>
    %c1_104 = arith.constant 1 : index
    %c0_105 = arith.constant 0 : index
    %c0_106 = arith.constant 0 : index
    %274 = vector.load %arg6[%c1_104, %c0_105, %c0_106] : memref<2x1x32xf32, #tpu.memory_space<vmem>>, vector<1x1x32xf32>
    %275 = vector.shape_cast %274 : vector<1x1x32xf32> to vector<1x32xf32>
    %c1_107 = arith.constant 1 : index
    %c0_108 = arith.constant 0 : index
    %c0_109 = arith.constant 0 : index
    %276 = vector.load %arg7[%c1_107, %c0_108, %c0_109] : memref<2x32x64xf32, #tpu.memory_space<vmem>>, vector<1x32x64xf32>
    %277 = vector.shape_cast %276 : vector<1x32x64xf32> to vector<32x64xf32>
    %c1_110 = arith.constant 1 : index
    %c0_111 = arith.constant 0 : index
    %c0_112 = arith.constant 0 : index
    %278 = vector.load %arg8[%c1_110, %c0_111, %c0_112] : memref<2x1x64xf32, #tpu.memory_space<vmem>>, vector<1x1x64xf32>
    %279 = vector.shape_cast %278 : vector<1x1x64xf32> to vector<1x64xf32>
    %c1_113 = arith.constant 1 : index
    %c0_114 = arith.constant 0 : index
    %c0_115 = arith.constant 0 : index
    %280 = vector.load %arg9[%c1_113, %c0_114, %c0_115] : memref<2x32x32xf32, #tpu.memory_space<vmem>>, vector<1x32x32xf32>
    %281 = vector.shape_cast %280 : vector<1x32x32xf32> to vector<32x32xf32>
    %c1_116 = arith.constant 1 : index
    %c0_117 = arith.constant 0 : index
    %c0_118 = arith.constant 0 : index
    %282 = vector.load %arg10[%c1_116, %c0_117, %c0_118] : memref<2x1x32xf32, #tpu.memory_space<vmem>>, vector<1x1x32xf32>
    %283 = vector.shape_cast %282 : vector<1x1x32xf32> to vector<1x32xf32>
    %c1_119 = arith.constant 1 : index
    %c0_120 = arith.constant 0 : index
    %c0_121 = arith.constant 0 : index
    %284 = vector.load %arg11[%c1_119, %c0_120, %c0_121] : memref<2x2x32xf32, #tpu.memory_space<vmem>>, vector<1x2x32xf32>
    %285 = vector.shape_cast %284 : vector<1x2x32xf32> to vector<2x32xf32>
    %cst_122 = arith.constant dense<0.000000e+00> : vector<8x32xf32>
    %286 = tpu.matmul %271, %273, %cst_122 {dimension_numbers = #tpu.dot_dimension_numbers<[1], [0], [0], [1], [0, 0, 1, 1], [], []>} : vector<8x32xf32>, vector<32x32xf32>, vector<8x32xf32> -> vector<8x32xf32>
    %287 = vector.broadcast %275 : vector<1x32xf32> to vector<8x32xf32>
    %288 = arith.addf %286, %287 : vector<8x32xf32>
    %cst_123 = arith.constant dense<0.000000e+00> : vector<8x64xf32>
    %289 = tpu.matmul %271, %277, %cst_123 {dimension_numbers = #tpu.dot_dimension_numbers<[1], [0], [0], [1], [0, 0, 1, 1], [], []>} : vector<8x32xf32>, vector<32x64xf32>, vector<8x64xf32> -> vector<8x64xf32>
    %290 = vector.broadcast %279 : vector<1x64xf32> to vector<8x64xf32>
    %291 = arith.addf %289, %290 : vector<8x64xf32>
    %292 = vector.extract_strided_slice %288 {offsets = [0, 0], sizes = [8, 8], strides = [1, 1]} : vector<8x32xf32> to vector<8x8xf32>
    %293 = vector.extract_strided_slice %288 {offsets = [0, 8], sizes = [8, 8], strides = [1, 1]} : vector<8x32xf32> to vector<8x8xf32>
    %294 = vector.extract_strided_slice %288 {offsets = [0, 16], sizes = [8, 8], strides = [1, 1]} : vector<8x32xf32> to vector<8x8xf32>
    %295 = vector.extract_strided_slice %288 {offsets = [0, 24], sizes = [8, 8], strides = [1, 1]} : vector<8x32xf32> to vector<8x8xf32>
    %296 = vector.shape_cast %292 : vector<8x8xf32> to vector<1x8x8xf32>
    %297 = vector.shape_cast %293 : vector<8x8xf32> to vector<1x8x8xf32>
    %298 = vector.shape_cast %294 : vector<8x8xf32> to vector<1x8x8xf32>
    %299 = vector.shape_cast %295 : vector<8x8xf32> to vector<1x8x8xf32>
    %300 = tpu.concatenate %296, %297, %298, %299 in 0 : vector<1x8x8xf32>, vector<1x8x8xf32>, vector<1x8x8xf32>, vector<1x8x8xf32> -> vector<4x8x8xf32>
    %301 = vector.extract_strided_slice %291 {offsets = [0, 0], sizes = [8, 8], strides = [1, 1]} : vector<8x64xf32> to vector<8x8xf32>
    %302 = vector.extract_strided_slice %291 {offsets = [0, 8], sizes = [8, 8], strides = [1, 1]} : vector<8x64xf32> to vector<8x8xf32>
    %303 = vector.extract_strided_slice %291 {offsets = [0, 16], sizes = [8, 8], strides = [1, 1]} : vector<8x64xf32> to vector<8x8xf32>
    %304 = vector.extract_strided_slice %291 {offsets = [0, 24], sizes = [8, 8], strides = [1, 1]} : vector<8x64xf32> to vector<8x8xf32>
    %305 = vector.shape_cast %301 : vector<8x8xf32> to vector<1x8x8xf32>
    %306 = vector.shape_cast %302 : vector<8x8xf32> to vector<1x8x8xf32>
    %307 = vector.shape_cast %303 : vector<8x8xf32> to vector<1x8x8xf32>
    %308 = vector.shape_cast %304 : vector<8x8xf32> to vector<1x8x8xf32>
    %309 = tpu.concatenate %305, %306, %307, %308 in 0 : vector<1x8x8xf32>, vector<1x8x8xf32>, vector<1x8x8xf32>, vector<1x8x8xf32> -> vector<4x8x8xf32>
    %310 = vector.extract_strided_slice %291 {offsets = [0, 32], sizes = [8, 8], strides = [1, 1]} : vector<8x64xf32> to vector<8x8xf32>
    %311 = vector.extract_strided_slice %291 {offsets = [0, 40], sizes = [8, 8], strides = [1, 1]} : vector<8x64xf32> to vector<8x8xf32>
    %312 = vector.extract_strided_slice %291 {offsets = [0, 48], sizes = [8, 8], strides = [1, 1]} : vector<8x64xf32> to vector<8x8xf32>
    %313 = vector.extract_strided_slice %291 {offsets = [0, 56], sizes = [8, 8], strides = [1, 1]} : vector<8x64xf32> to vector<8x8xf32>
    %314 = vector.shape_cast %310 : vector<8x8xf32> to vector<1x8x8xf32>
    %315 = vector.shape_cast %311 : vector<8x8xf32> to vector<1x8x8xf32>
    %316 = vector.shape_cast %312 : vector<8x8xf32> to vector<1x8x8xf32>
    %317 = vector.shape_cast %313 : vector<8x8xf32> to vector<1x8x8xf32>
    %318 = tpu.concatenate %314, %315, %316, %317 in 0 : vector<1x8x8xf32>, vector<1x8x8xf32>, vector<1x8x8xf32>, vector<1x8x8xf32> -> vector<4x8x8xf32>
    "tpu.trace_start"() <{level = 10 : i32, message = "nqd,nkd->nqk"}> : () -> ()
    %cst_124 = arith.constant dense<0.000000e+00> : vector<4x8x8xf32>
    %319 = tpu.matmul %300, %309, %cst_124 {dimension_numbers = #tpu.dot_dimension_numbers<[2], [2], [1], [1], [0, 0, 0, 1, 1, 1], [0], [0]>} : vector<4x8x8xf32>, vector<4x8x8xf32>, vector<4x8x8xf32> -> vector<4x8x8xf32>
    "tpu.trace_stop"() : () -> ()
    %320 = vector.shape_cast %5 : vector<1x8xf32> to vector<1x1x8xf32>
    %321 = vector.broadcast %320 : vector<1x1x8xf32> to vector<4x8x8xf32>
    %322 = arith.addf %319, %321 : vector<4x8x8xf32>
    %cst_125 = arith.constant dense<0xFF800000> : vector<4x8xf32>
    %323 = vector.multi_reduction <maximumf>, %322, %cst_125 [2] : vector<4x8x8xf32> to vector<4x8xf32>
    %324 = vector.shape_cast %323 : vector<4x8xf32> to vector<4x8x1xf32>
    %325 = vector.broadcast %324 : vector<4x8x1xf32> to vector<4x8x8xf32>
    %326 = arith.subf %322, %325 : vector<4x8x8xf32>
    %327 = math.exp %326 : vector<4x8x8xf32>
    %cst_126 = arith.constant dense<0.000000e+00> : vector<4x8xf32>
    %328 = vector.multi_reduction <add>, %327, %cst_126 [2] : vector<4x8x8xf32> to vector<4x8xf32>
    %329 = vector.shape_cast %328 : vector<4x8xf32> to vector<4x8x1xf32>
    %330 = tpu.reciprocal %329 {approx = true} : vector<4x8x1xf32> -> vector<4x8x1xf32>
    %331 = vector.broadcast %330 : vector<4x8x1xf32> to vector<4x8x8xf32>
    %332 = arith.mulf %327, %331 : vector<4x8x8xf32>
    "tpu.trace_start"() <{level = 10 : i32, message = "nqk,nkd->nqd"}> : () -> ()
    %cst_127 = arith.constant dense<0.000000e+00> : vector<4x8x8xf32>
    %333 = tpu.matmul %332, %318, %cst_127 {dimension_numbers = #tpu.dot_dimension_numbers<[2], [1], [1], [2], [0, 0, 0, 1, 1, 2], [0], [0]>} : vector<4x8x8xf32>, vector<4x8x8xf32>, vector<4x8x8xf32> -> vector<4x8x8xf32>
    "tpu.trace_stop"() : () -> ()
    %334 = vector.extract_strided_slice %333 {offsets = [0, 0, 0], sizes = [1, 8, 8], strides = [1, 1, 1]} : vector<4x8x8xf32> to vector<1x8x8xf32>
    %335 = vector.shape_cast %334 : vector<1x8x8xf32> to vector<8x8xf32>
    %336 = vector.extract_strided_slice %333 {offsets = [1, 0, 0], sizes = [1, 8, 8], strides = [1, 1, 1]} : vector<4x8x8xf32> to vector<1x8x8xf32>
    %337 = vector.shape_cast %336 : vector<1x8x8xf32> to vector<8x8xf32>
    %338 = vector.extract_strided_slice %333 {offsets = [2, 0, 0], sizes = [1, 8, 8], strides = [1, 1, 1]} : vector<4x8x8xf32> to vector<1x8x8xf32>
    %339 = vector.shape_cast %338 : vector<1x8x8xf32> to vector<8x8xf32>
    %340 = vector.extract_strided_slice %333 {offsets = [3, 0, 0], sizes = [1, 8, 8], strides = [1, 1, 1]} : vector<4x8x8xf32> to vector<1x8x8xf32>
    %341 = vector.shape_cast %340 : vector<1x8x8xf32> to vector<8x8xf32>
    %342 = tpu.concatenate %335, %337, %339, %341 in 1 : vector<8x8xf32>, vector<8x8xf32>, vector<8x8xf32>, vector<8x8xf32> -> vector<8x32xf32>
    %cst_128 = arith.constant dense<0.000000e+00> : vector<8x32xf32>
    %343 = tpu.matmul %342, %281, %cst_128 {dimension_numbers = #tpu.dot_dimension_numbers<[1], [0], [0], [1], [0, 0, 1, 1], [], []>} : vector<8x32xf32>, vector<32x32xf32>, vector<8x32xf32> -> vector<8x32xf32>
    %344 = vector.broadcast %283 : vector<1x32xf32> to vector<8x32xf32>
    %345 = arith.addf %343, %344 : vector<8x32xf32>
    %346 = arith.addf %345, %271 : vector<8x32xf32>
    %347 = vector.extract_strided_slice %285 {offsets = [0, 0], sizes = [1, 32], strides = [1, 1]} : vector<2x32xf32> to vector<1x32xf32>
    %348 = vector.shape_cast %347 : vector<1x32xf32> to vector<32xf32>
    %349 = vector.extract_strided_slice %285 {offsets = [1, 0], sizes = [1, 32], strides = [1, 1]} : vector<2x32xf32> to vector<1x32xf32>
    %350 = vector.shape_cast %349 : vector<1x32xf32> to vector<32xf32>
    %cst_129 = arith.constant dense<0.000000e+00> : vector<8xf32>
    %351 = vector.multi_reduction <add>, %346, %cst_129 [1] : vector<8x32xf32> to vector<8xf32>
    %352 = vector.shape_cast %351 : vector<8xf32> to vector<8x1xf32>
    %cst_130 = arith.constant 3.200000e+01 : f32
    %353 = vector.broadcast %cst_130 : f32 to vector<8x1xf32>
    %354 = arith.divf %352, %353 : vector<8x1xf32>
    %355 = vector.broadcast %354 : vector<8x1xf32> to vector<8x32xf32>
    %356 = arith.subf %346, %355 : vector<8x32xf32>
    %357 = arith.mulf %356, %356 : vector<8x32xf32>
    %cst_131 = arith.constant dense<0.000000e+00> : vector<8xf32>
    %358 = vector.multi_reduction <add>, %357, %cst_131 [1] : vector<8x32xf32> to vector<8xf32>
    %359 = vector.shape_cast %358 : vector<8xf32> to vector<8x1xf32>
    %cst_132 = arith.constant 3.200000e+01 : f32
    %360 = vector.broadcast %cst_132 : f32 to vector<8x1xf32>
    %361 = arith.divf %359, %360 : vector<8x1xf32>
    %362 = vector.broadcast %354 : vector<8x1xf32> to vector<8x32xf32>
    %363 = arith.subf %346, %362 : vector<8x32xf32>
    %cst_133 = arith.constant 9.99999996E-13 : f32
    %364 = vector.broadcast %cst_133 : f32 to vector<8x1xf32>
    %365 = arith.addf %361, %364 : vector<8x1xf32>
    %366 = math.rsqrt %365 : vector<8x1xf32>
    %367 = vector.broadcast %366 : vector<8x1xf32> to vector<8x32xf32>
    %368 = arith.mulf %363, %367 : vector<8x32xf32>
    %369 = vector.shape_cast %348 : vector<32xf32> to vector<1x32xf32>
    %370 = vector.broadcast %369 : vector<1x32xf32> to vector<8x32xf32>
    %371 = arith.mulf %368, %370 : vector<8x32xf32>
    %372 = vector.shape_cast %350 : vector<32xf32> to vector<1x32xf32>
    %373 = vector.broadcast %372 : vector<1x32xf32> to vector<8x32xf32>
    %374 = arith.addf %371, %373 : vector<8x32xf32>
    %c1_134 = arith.constant 1 : index
    %c0_135 = arith.constant 0 : index
    %c0_136 = arith.constant 0 : index
    %375 = vector.load %arg12[%c1_134, %c0_135, %c0_136] : memref<2x32x32xf32, #tpu.memory_space<vmem>>, vector<1x32x32xf32>
    %376 = vector.shape_cast %375 : vector<1x32x32xf32> to vector<32x32xf32>
    %c1_137 = arith.constant 1 : index
    %c0_138 = arith.constant 0 : index
    %c0_139 = arith.constant 0 : index
    %377 = vector.load %arg13[%c1_137, %c0_138, %c0_139] : memref<2x1x32xf32, #tpu.memory_space<vmem>>, vector<1x1x32xf32>
    %378 = vector.shape_cast %377 : vector<1x1x32xf32> to vector<1x32xf32>
    %c1_140 = arith.constant 1 : index
    %c0_141 = arith.constant 0 : index
    %c0_142 = arith.constant 0 : index
    %379 = vector.load %arg14[%c1_140, %c0_141, %c0_142] : memref<2x32x64xf32, #tpu.memory_space<vmem>>, vector<1x32x64xf32>
    %380 = vector.shape_cast %379 : vector<1x32x64xf32> to vector<32x64xf32>
    %c1_143 = arith.constant 1 : index
    %c0_144 = arith.constant 0 : index
    %c0_145 = arith.constant 0 : index
    %381 = vector.load %arg15[%c1_143, %c0_144, %c0_145] : memref<2x1x64xf32, #tpu.memory_space<vmem>>, vector<1x1x64xf32>
    %382 = vector.shape_cast %381 : vector<1x1x64xf32> to vector<1x64xf32>
    %c1_146 = arith.constant 1 : index
    %c0_147 = arith.constant 0 : index
    %c0_148 = arith.constant 0 : index
    %383 = vector.load %arg16[%c1_146, %c0_147, %c0_148] : memref<2x32x32xf32, #tpu.memory_space<vmem>>, vector<1x32x32xf32>
    %384 = vector.shape_cast %383 : vector<1x32x32xf32> to vector<32x32xf32>
    %c1_149 = arith.constant 1 : index
    %c0_150 = arith.constant 0 : index
    %c0_151 = arith.constant 0 : index
    %385 = vector.load %arg17[%c1_149, %c0_150, %c0_151] : memref<2x1x32xf32, #tpu.memory_space<vmem>>, vector<1x1x32xf32>
    %386 = vector.shape_cast %385 : vector<1x1x32xf32> to vector<1x32xf32>
    %c1_152 = arith.constant 1 : index
    %c0_153 = arith.constant 0 : index
    %c0_154 = arith.constant 0 : index
    %387 = vector.load %arg18[%c1_152, %c0_153, %c0_154] : memref<2x2x32xf32, #tpu.memory_space<vmem>>, vector<1x2x32xf32>
    %388 = vector.shape_cast %387 : vector<1x2x32xf32> to vector<2x32xf32>
    %cst_155 = arith.constant dense<0.000000e+00> : vector<8x32xf32>
    %389 = tpu.matmul %374, %376, %cst_155 {dimension_numbers = #tpu.dot_dimension_numbers<[1], [0], [0], [1], [0, 0, 1, 1], [], []>} : vector<8x32xf32>, vector<32x32xf32>, vector<8x32xf32> -> vector<8x32xf32>
    %390 = vector.broadcast %378 : vector<1x32xf32> to vector<8x32xf32>
    %391 = arith.addf %389, %390 : vector<8x32xf32>
    %cst_156 = arith.constant dense<0.000000e+00> : vector<8x64xf32>
    %392 = tpu.matmul %3, %380, %cst_156 {dimension_numbers = #tpu.dot_dimension_numbers<[1], [0], [0], [1], [0, 0, 1, 1], [], []>} : vector<8x32xf32>, vector<32x64xf32>, vector<8x64xf32> -> vector<8x64xf32>
    %393 = vector.broadcast %382 : vector<1x64xf32> to vector<8x64xf32>
    %394 = arith.addf %392, %393 : vector<8x64xf32>
    %395 = vector.extract_strided_slice %391 {offsets = [0, 0], sizes = [8, 8], strides = [1, 1]} : vector<8x32xf32> to vector<8x8xf32>
    %396 = vector.extract_strided_slice %391 {offsets = [0, 8], sizes = [8, 8], strides = [1, 1]} : vector<8x32xf32> to vector<8x8xf32>
    %397 = vector.extract_strided_slice %391 {offsets = [0, 16], sizes = [8, 8], strides = [1, 1]} : vector<8x32xf32> to vector<8x8xf32>
    %398 = vector.extract_strided_slice %391 {offsets = [0, 24], sizes = [8, 8], strides = [1, 1]} : vector<8x32xf32> to vector<8x8xf32>
    %399 = vector.shape_cast %395 : vector<8x8xf32> to vector<1x8x8xf32>
    %400 = vector.shape_cast %396 : vector<8x8xf32> to vector<1x8x8xf32>
    %401 = vector.shape_cast %397 : vector<8x8xf32> to vector<1x8x8xf32>
    %402 = vector.shape_cast %398 : vector<8x8xf32> to vector<1x8x8xf32>
    %403 = tpu.concatenate %399, %400, %401, %402 in 0 : vector<1x8x8xf32>, vector<1x8x8xf32>, vector<1x8x8xf32>, vector<1x8x8xf32> -> vector<4x8x8xf32>
    %404 = vector.extract_strided_slice %394 {offsets = [0, 0], sizes = [8, 8], strides = [1, 1]} : vector<8x64xf32> to vector<8x8xf32>
    %405 = vector.extract_strided_slice %394 {offsets = [0, 8], sizes = [8, 8], strides = [1, 1]} : vector<8x64xf32> to vector<8x8xf32>
    %406 = vector.extract_strided_slice %394 {offsets = [0, 16], sizes = [8, 8], strides = [1, 1]} : vector<8x64xf32> to vector<8x8xf32>
    %407 = vector.extract_strided_slice %394 {offsets = [0, 24], sizes = [8, 8], strides = [1, 1]} : vector<8x64xf32> to vector<8x8xf32>
    %408 = vector.shape_cast %404 : vector<8x8xf32> to vector<1x8x8xf32>
    %409 = vector.shape_cast %405 : vector<8x8xf32> to vector<1x8x8xf32>
    %410 = vector.shape_cast %406 : vector<8x8xf32> to vector<1x8x8xf32>
    %411 = vector.shape_cast %407 : vector<8x8xf32> to vector<1x8x8xf32>
    %412 = tpu.concatenate %408, %409, %410, %411 in 0 : vector<1x8x8xf32>, vector<1x8x8xf32>, vector<1x8x8xf32>, vector<1x8x8xf32> -> vector<4x8x8xf32>
    %413 = vector.extract_strided_slice %394 {offsets = [0, 32], sizes = [8, 8], strides = [1, 1]} : vector<8x64xf32> to vector<8x8xf32>
    %414 = vector.extract_strided_slice %394 {offsets = [0, 40], sizes = [8, 8], strides = [1, 1]} : vector<8x64xf32> to vector<8x8xf32>
    %415 = vector.extract_strided_slice %394 {offsets = [0, 48], sizes = [8, 8], strides = [1, 1]} : vector<8x64xf32> to vector<8x8xf32>
    %416 = vector.extract_strided_slice %394 {offsets = [0, 56], sizes = [8, 8], strides = [1, 1]} : vector<8x64xf32> to vector<8x8xf32>
    %417 = vector.shape_cast %413 : vector<8x8xf32> to vector<1x8x8xf32>
    %418 = vector.shape_cast %414 : vector<8x8xf32> to vector<1x8x8xf32>
    %419 = vector.shape_cast %415 : vector<8x8xf32> to vector<1x8x8xf32>
    %420 = vector.shape_cast %416 : vector<8x8xf32> to vector<1x8x8xf32>
    %421 = tpu.concatenate %417, %418, %419, %420 in 0 : vector<1x8x8xf32>, vector<1x8x8xf32>, vector<1x8x8xf32>, vector<1x8x8xf32> -> vector<4x8x8xf32>
    "tpu.trace_start"() <{level = 10 : i32, message = "nqd,nkd->nqk"}> : () -> ()
    %cst_157 = arith.constant dense<0.000000e+00> : vector<4x8x8xf32>
    %422 = tpu.matmul %403, %412, %cst_157 {dimension_numbers = #tpu.dot_dimension_numbers<[2], [2], [1], [1], [0, 0, 0, 1, 1, 1], [0], [0]>} : vector<4x8x8xf32>, vector<4x8x8xf32>, vector<4x8x8xf32> -> vector<4x8x8xf32>
    "tpu.trace_stop"() : () -> ()
    %423 = vector.shape_cast %7 : vector<1x8xf32> to vector<1x1x8xf32>
    %424 = vector.broadcast %423 : vector<1x1x8xf32> to vector<4x8x8xf32>
    %425 = arith.addf %422, %424 : vector<4x8x8xf32>
    %cst_158 = arith.constant dense<0xFF800000> : vector<4x8xf32>
    %426 = vector.multi_reduction <maximumf>, %425, %cst_158 [2] : vector<4x8x8xf32> to vector<4x8xf32>
    %427 = vector.shape_cast %426 : vector<4x8xf32> to vector<4x8x1xf32>
    %428 = vector.broadcast %427 : vector<4x8x1xf32> to vector<4x8x8xf32>
    %429 = arith.subf %425, %428 : vector<4x8x8xf32>
    %430 = math.exp %429 : vector<4x8x8xf32>
    %cst_159 = arith.constant dense<0.000000e+00> : vector<4x8xf32>
    %431 = vector.multi_reduction <add>, %430, %cst_159 [2] : vector<4x8x8xf32> to vector<4x8xf32>
    %432 = vector.shape_cast %431 : vector<4x8xf32> to vector<4x8x1xf32>
    %433 = tpu.reciprocal %432 {approx = true} : vector<4x8x1xf32> -> vector<4x8x1xf32>
    %434 = vector.broadcast %433 : vector<4x8x1xf32> to vector<4x8x8xf32>
    %435 = arith.mulf %430, %434 : vector<4x8x8xf32>
    "tpu.trace_start"() <{level = 10 : i32, message = "nqk,nkd->nqd"}> : () -> ()
    %cst_160 = arith.constant dense<0.000000e+00> : vector<4x8x8xf32>
    %436 = tpu.matmul %435, %421, %cst_160 {dimension_numbers = #tpu.dot_dimension_numbers<[2], [1], [1], [2], [0, 0, 0, 1, 1, 2], [0], [0]>} : vector<4x8x8xf32>, vector<4x8x8xf32>, vector<4x8x8xf32> -> vector<4x8x8xf32>
    "tpu.trace_stop"() : () -> ()
    %437 = vector.extract_strided_slice %436 {offsets = [0, 0, 0], sizes = [1, 8, 8], strides = [1, 1, 1]} : vector<4x8x8xf32> to vector<1x8x8xf32>
    %438 = vector.shape_cast %437 : vector<1x8x8xf32> to vector<8x8xf32>
    %439 = vector.extract_strided_slice %436 {offsets = [1, 0, 0], sizes = [1, 8, 8], strides = [1, 1, 1]} : vector<4x8x8xf32> to vector<1x8x8xf32>
    %440 = vector.shape_cast %439 : vector<1x8x8xf32> to vector<8x8xf32>
    %441 = vector.extract_strided_slice %436 {offsets = [2, 0, 0], sizes = [1, 8, 8], strides = [1, 1, 1]} : vector<4x8x8xf32> to vector<1x8x8xf32>
    %442 = vector.shape_cast %441 : vector<1x8x8xf32> to vector<8x8xf32>
    %443 = vector.extract_strided_slice %436 {offsets = [3, 0, 0], sizes = [1, 8, 8], strides = [1, 1, 1]} : vector<4x8x8xf32> to vector<1x8x8xf32>
    %444 = vector.shape_cast %443 : vector<1x8x8xf32> to vector<8x8xf32>
    %445 = tpu.concatenate %438, %440, %442, %444 in 1 : vector<8x8xf32>, vector<8x8xf32>, vector<8x8xf32>, vector<8x8xf32> -> vector<8x32xf32>
    %cst_161 = arith.constant dense<0.000000e+00> : vector<8x32xf32>
    %446 = tpu.matmul %445, %384, %cst_161 {dimension_numbers = #tpu.dot_dimension_numbers<[1], [0], [0], [1], [0, 0, 1, 1], [], []>} : vector<8x32xf32>, vector<32x32xf32>, vector<8x32xf32> -> vector<8x32xf32>
    %447 = vector.broadcast %386 : vector<1x32xf32> to vector<8x32xf32>
    %448 = arith.addf %446, %447 : vector<8x32xf32>
    %449 = arith.addf %448, %374 : vector<8x32xf32>
    %450 = vector.extract_strided_slice %388 {offsets = [0, 0], sizes = [1, 32], strides = [1, 1]} : vector<2x32xf32> to vector<1x32xf32>
    %451 = vector.shape_cast %450 : vector<1x32xf32> to vector<32xf32>
    %452 = vector.extract_strided_slice %388 {offsets = [1, 0], sizes = [1, 32], strides = [1, 1]} : vector<2x32xf32> to vector<1x32xf32>
    %453 = vector.shape_cast %452 : vector<1x32xf32> to vector<32xf32>
    %cst_162 = arith.constant dense<0.000000e+00> : vector<8xf32>
    %454 = vector.multi_reduction <add>, %449, %cst_162 [1] : vector<8x32xf32> to vector<8xf32>
    %455 = vector.shape_cast %454 : vector<8xf32> to vector<8x1xf32>
    %cst_163 = arith.constant 3.200000e+01 : f32
    %456 = vector.broadcast %cst_163 : f32 to vector<8x1xf32>
    %457 = arith.divf %455, %456 : vector<8x1xf32>
    %458 = vector.broadcast %457 : vector<8x1xf32> to vector<8x32xf32>
    %459 = arith.subf %449, %458 : vector<8x32xf32>
    %460 = arith.mulf %459, %459 : vector<8x32xf32>
    %cst_164 = arith.constant dense<0.000000e+00> : vector<8xf32>
    %461 = vector.multi_reduction <add>, %460, %cst_164 [1] : vector<8x32xf32> to vector<8xf32>
    %462 = vector.shape_cast %461 : vector<8xf32> to vector<8x1xf32>
    %cst_165 = arith.constant 3.200000e+01 : f32
    %463 = vector.broadcast %cst_165 : f32 to vector<8x1xf32>
    %464 = arith.divf %462, %463 : vector<8x1xf32>
    %465 = vector.broadcast %457 : vector<8x1xf32> to vector<8x32xf32>
    %466 = arith.subf %449, %465 : vector<8x32xf32>
    %cst_166 = arith.constant 9.99999996E-13 : f32
    %467 = vector.broadcast %cst_166 : f32 to vector<8x1xf32>
    %468 = arith.addf %464, %467 : vector<8x1xf32>
    %469 = math.rsqrt %468 : vector<8x1xf32>
    %470 = vector.broadcast %469 : vector<8x1xf32> to vector<8x32xf32>
    %471 = arith.mulf %466, %470 : vector<8x32xf32>
    %472 = vector.shape_cast %451 : vector<32xf32> to vector<1x32xf32>
    %473 = vector.broadcast %472 : vector<1x32xf32> to vector<8x32xf32>
    %474 = arith.mulf %471, %473 : vector<8x32xf32>
    %475 = vector.shape_cast %453 : vector<32xf32> to vector<1x32xf32>
    %476 = vector.broadcast %475 : vector<1x32xf32> to vector<8x32xf32>
    %477 = arith.addf %474, %476 : vector<8x32xf32>
    %c1_167 = arith.constant 1 : index
    %c0_168 = arith.constant 0 : index
    %c0_169 = arith.constant 0 : index
    %478 = vector.load %arg19[%c1_167, %c0_168, %c0_169] : memref<2x32x64xf32, #tpu.memory_space<vmem>>, vector<1x32x64xf32>
    %479 = vector.shape_cast %478 : vector<1x32x64xf32> to vector<32x64xf32>
    %cst_170 = arith.constant dense<0.000000e+00> : vector<8x64xf32>
    %480 = tpu.matmul %477, %479, %cst_170 {dimension_numbers = #tpu.dot_dimension_numbers<[1], [0], [0], [1], [0, 0, 1, 1], [], []>} : vector<8x32xf32>, vector<32x64xf32>, vector<8x64xf32> -> vector<8x64xf32>
    %c1_171 = arith.constant 1 : index
    %c0_172 = arith.constant 0 : index
    %c0_173 = arith.constant 0 : index
    %481 = vector.load %arg20[%c1_171, %c0_172, %c0_173] : memref<2x1x64xf32, #tpu.memory_space<vmem>>, vector<1x1x64xf32>
    %482 = vector.shape_cast %481 : vector<1x1x64xf32> to vector<1x64xf32>
    %483 = vector.broadcast %482 : vector<1x64xf32> to vector<8x64xf32>
    %484 = arith.addf %480, %483 : vector<8x64xf32>
    %cst_174 = arith.constant 5.000000e-01 : f32
    %485 = vector.broadcast %cst_174 : f32 to vector<8x64xf32>
    %486 = arith.mulf %485, %484 : vector<8x64xf32>
    %cst_175 = arith.constant 4.471500e-02 : f32
    %487 = vector.broadcast %cst_175 : f32 to vector<8x64xf32>
    %488 = arith.mulf %487, %484 : vector<8x64xf32>
    %489 = arith.mulf %488, %484 : vector<8x64xf32>
    %490 = arith.mulf %489, %484 : vector<8x64xf32>
    %491 = arith.addf %484, %490 : vector<8x64xf32>
    %cst_176 = arith.constant 0.797884583 : f32
    %492 = vector.broadcast %cst_176 : f32 to vector<8x64xf32>
    %493 = arith.mulf %492, %491 : vector<8x64xf32>
    %494 = math.tanh %493 : vector<8x64xf32>
    %cst_177 = arith.constant 1.000000e+00 : f32
    %495 = vector.broadcast %cst_177 : f32 to vector<8x64xf32>
    %496 = arith.addf %495, %494 : vector<8x64xf32>
    %497 = arith.mulf %486, %496 : vector<8x64xf32>
    %c1_178 = arith.constant 1 : index
    %c0_179 = arith.constant 0 : index
    %c0_180 = arith.constant 0 : index
    %498 = vector.load %arg21[%c1_178, %c0_179, %c0_180] : memref<2x64x32xf32, #tpu.memory_space<vmem>>, vector<1x64x32xf32>
    %499 = vector.shape_cast %498 : vector<1x64x32xf32> to vector<64x32xf32>
    %cst_181 = arith.constant dense<0.000000e+00> : vector<8x32xf32>
    %500 = tpu.matmul %497, %499, %cst_181 {dimension_numbers = #tpu.dot_dimension_numbers<[1], [0], [0], [1], [0, 0, 1, 1], [], []>} : vector<8x64xf32>, vector<64x32xf32>, vector<8x32xf32> -> vector<8x32xf32>
    %c1_182 = arith.constant 1 : index
    %c0_183 = arith.constant 0 : index
    %c0_184 = arith.constant 0 : index
    %501 = vector.load %arg22[%c1_182, %c0_183, %c0_184] : memref<2x1x32xf32, #tpu.memory_space<vmem>>, vector<1x1x32xf32>
    %502 = vector.shape_cast %501 : vector<1x1x32xf32> to vector<1x32xf32>
    %503 = vector.broadcast %502 : vector<1x32xf32> to vector<8x32xf32>
    %504 = arith.addf %500, %503 : vector<8x32xf32>
    %c1_185 = arith.constant 1 : index
    %c0_186 = arith.constant 0 : index
    %c0_187 = arith.constant 0 : index
    %505 = vector.load %arg23[%c1_185, %c0_186, %c0_187] : memref<2x2x32xf32, #tpu.memory_space<vmem>>, vector<1x2x32xf32>
    %506 = vector.shape_cast %505 : vector<1x2x32xf32> to vector<2x32xf32>
    %507 = arith.addf %504, %477 : vector<8x32xf32>
    %508 = vector.extract_strided_slice %506 {offsets = [0, 0], sizes = [1, 32], strides = [1, 1]} : vector<2x32xf32> to vector<1x32xf32>
    %509 = vector.shape_cast %508 : vector<1x32xf32> to vector<32xf32>
    %510 = vector.extract_strided_slice %506 {offsets = [1, 0], sizes = [1, 32], strides = [1, 1]} : vector<2x32xf32> to vector<1x32xf32>
    %511 = vector.shape_cast %510 : vector<1x32xf32> to vector<32xf32>
    %cst_188 = arith.constant dense<0.000000e+00> : vector<8xf32>
    %512 = vector.multi_reduction <add>, %507, %cst_188 [1] : vector<8x32xf32> to vector<8xf32>
    %513 = vector.shape_cast %512 : vector<8xf32> to vector<8x1xf32>
    %cst_189 = arith.constant 3.200000e+01 : f32
    %514 = vector.broadcast %cst_189 : f32 to vector<8x1xf32>
    %515 = arith.divf %513, %514 : vector<8x1xf32>
    %516 = vector.broadcast %515 : vector<8x1xf32> to vector<8x32xf32>
    %517 = arith.subf %507, %516 : vector<8x32xf32>
    %518 = arith.mulf %517, %517 : vector<8x32xf32>
    %cst_190 = arith.constant dense<0.000000e+00> : vector<8xf32>
    %519 = vector.multi_reduction <add>, %518, %cst_190 [1] : vector<8x32xf32> to vector<8xf32>
    %520 = vector.shape_cast %519 : vector<8xf32> to vector<8x1xf32>
    %cst_191 = arith.constant 3.200000e+01 : f32
    %521 = vector.broadcast %cst_191 : f32 to vector<8x1xf32>
    %522 = arith.divf %520, %521 : vector<8x1xf32>
    %523 = vector.broadcast %515 : vector<8x1xf32> to vector<8x32xf32>
    %524 = arith.subf %507, %523 : vector<8x32xf32>
    %cst_192 = arith.constant 9.99999996E-13 : f32
    %525 = vector.broadcast %cst_192 : f32 to vector<8x1xf32>
    %526 = arith.addf %522, %525 : vector<8x1xf32>
    %527 = math.rsqrt %526 : vector<8x1xf32>
    %528 = vector.broadcast %527 : vector<8x1xf32> to vector<8x32xf32>
    %529 = arith.mulf %524, %528 : vector<8x32xf32>
    %530 = vector.shape_cast %509 : vector<32xf32> to vector<1x32xf32>
    %531 = vector.broadcast %530 : vector<1x32xf32> to vector<8x32xf32>
    %532 = arith.mulf %529, %531 : vector<8x32xf32>
    %533 = vector.shape_cast %511 : vector<32xf32> to vector<1x32xf32>
    %534 = vector.broadcast %533 : vector<1x32xf32> to vector<8x32xf32>
    %535 = arith.addf %532, %534 : vector<8x32xf32>
    %c0_193 = arith.constant 0 : index
    %c0_194 = arith.constant 0 : index
    %c0_195 = arith.constant 0 : index
    %536 = vector.load %arg24[%c0_193, %c0_194, %c0_195] : memref<1x8x32xf32, #tpu.memory_space<vmem>>, vector<1x8x32xf32>
    %537 = vector.shape_cast %536 : vector<1x8x32xf32> to vector<8x32xf32>
    %538 = vector.shape_cast %535 : vector<8x32xf32> to vector<1x8x32xf32>
    tpu.vector_store %arg24[%c0_193, %c0_194, %c0_195], %538 {strides = array<i32>} : memref<1x8x32xf32, #tpu.memory_space<vmem>>, vector<1x8x32xf32>,
    return
  }
  func.func @transform_0(%arg0: i32) -> (i32, i32, i32) {
    %c0_i32 = arith.constant 0 : i32
    %c0_i32_0 = arith.constant 0 : i32
    %c0_i32_1 = arith.constant 0 : i32
    return %arg0, %c0_i32, %c0_i32_0 : i32, i32, i32
  }
  func.func @transform_1(%arg0: i32) -> (i32, i32, i32) {
    %c0_i32 = arith.constant 0 : i32
    %c0_i32_0 = arith.constant 0 : i32
    %c0_i32_1 = arith.constant 0 : i32
    return %arg0, %c0_i32, %c0_i32_0 : i32, i32, i32
  }
  func.func @transform_2(%arg0: i32) -> (i32, i32, i32) {
    %c0_i32 = arith.constant 0 : i32
    %c0_i32_0 = arith.constant 0 : i32
    %c0_i32_1 = arith.constant 0 : i32
    return %arg0, %c0_i32, %c0_i32_0 : i32, i32, i32
  }
  func.func @transform_3(%arg0: i32) -> (i32, i32, i32) {
    %c0_i32 = arith.constant 0 : i32
    %c0_i32_0 = arith.constant 0 : i32
    %c0_i32_1 = arith.constant 0 : i32
    return %arg0, %c0_i32, %c0_i32_0 : i32, i32, i32
  }
  func.func @transform_4(%arg0: i32) -> (i32, i32, i32) {
    %c0_i32 = arith.constant 0 : i32
    %c0_i32_0 = arith.constant 0 : i32
    %c0_i32_1 = arith.constant 0 : i32
    %c0_i32_2 = arith.constant 0 : i32
    return %c0_i32, %c0_i32_0, %c0_i32_1 : i32, i32, i32
  }
  func.func @transform_5(%arg0: i32) -> (i32, i32, i32) {
    %c0_i32 = arith.constant 0 : i32
    %c0_i32_0 = arith.constant 0 : i32
    %c0_i32_1 = arith.constant 0 : i32
    %c0_i32_2 = arith.constant 0 : i32
    return %c0_i32, %c0_i32_0, %c0_i32_1 : i32, i32, i32
  }
  func.func @transform_6(%arg0: i32) -> (i32, i32, i32) {
    %c0_i32 = arith.constant 0 : i32
    %c0_i32_0 = arith.constant 0 : i32
    %c0_i32_1 = arith.constant 0 : i32
    %c0_i32_2 = arith.constant 0 : i32
    return %c0_i32, %c0_i32_0, %c0_i32_1 : i32, i32, i32
  }
  func.func @transform_7(%arg0: i32) -> (i32, i32, i32) {
    %c0_i32 = arith.constant 0 : i32
    %c0_i32_0 = arith.constant 0 : i32
    %c0_i32_1 = arith.constant 0 : i32
    %c0_i32_2 = arith.constant 0 : i32
    return %c0_i32, %c0_i32_0, %c0_i32_1 : i32, i32, i32
  }
  func.func @transform_8(%arg0: i32) -> (i32, i32, i32) {
    %c0_i32 = arith.constant 0 : i32
    %c0_i32_0 = arith.constant 0 : i32
    %c0_i32_1 = arith.constant 0 : i32
    %c0_i32_2 = arith.constant 0 : i32
    return %c0_i32, %c0_i32_0, %c0_i32_1 : i32, i32, i32
  }
  func.func @transform_9(%arg0: i32) -> (i32, i32, i32) {
    %c0_i32 = arith.constant 0 : i32
    %c0_i32_0 = arith.constant 0 : i32
    %c0_i32_1 = arith.constant 0 : i32
    %c0_i32_2 = arith.constant 0 : i32
    return %c0_i32, %c0_i32_0, %c0_i32_1 : i32, i32, i32
  }
  func.func @transform_10(%arg0: i32) -> (i32, i32, i32) {
    %c0_i32 = arith.constant 0 : i32
    %c0_i32_0 = arith.constant 0 : i32
    %c0_i32_1 = arith.constant 0 : i32
    %c0_i32_2 = arith.constant 0 : i32
    return %c0_i32, %c0_i32_0, %c0_i32_1 : i32, i32, i32
  }
  func.func @transform_11(%arg0: i32) -> (i32, i32, i32) {
    %c0_i32 = arith.constant 0 : i32
    %c0_i32_0 = arith.constant 0 : i32
    %c0_i32_1 = arith.constant 0 : i32
    %c0_i32_2 = arith.constant 0 : i32
    return %c0_i32, %c0_i32_0, %c0_i32_1 : i32, i32, i32
  }
  func.func @transform_12(%arg0: i32) -> (i32, i32, i32) {
    %c0_i32 = arith.constant 0 : i32
    %c0_i32_0 = arith.constant 0 : i32
    %c0_i32_1 = arith.constant 0 : i32
    %c0_i32_2 = arith.constant 0 : i32
    return %c0_i32, %c0_i32_0, %c0_i32_1 : i32, i32, i32
  }
  func.func @transform_13(%arg0: i32) -> (i32, i32, i32) {
    %c0_i32 = arith.constant 0 : i32
    %c0_i32_0 = arith.constant 0 : i32
    %c0_i32_1 = arith.constant 0 : i32
    %c0_i32_2 = arith.constant 0 : i32
    return %c0_i32, %c0_i32_0, %c0_i32_1 : i32, i32, i32
  }
  func.func @transform_14(%arg0: i32) -> (i32, i32, i32) {
    %c0_i32 = arith.constant 0 : i32
    %c0_i32_0 = arith.constant 0 : i32
    %c0_i32_1 = arith.constant 0 : i32
    %c0_i32_2 = arith.constant 0 : i32
    return %c0_i32, %c0_i32_0, %c0_i32_1 : i32, i32, i32
  }
  func.func @transform_15(%arg0: i32) -> (i32, i32, i32) {
    %c0_i32 = arith.constant 0 : i32
    %c0_i32_0 = arith.constant 0 : i32
    %c0_i32_1 = arith.constant 0 : i32
    %c0_i32_2 = arith.constant 0 : i32
    return %c0_i32, %c0_i32_0, %c0_i32_1 : i32, i32, i32
  }
  func.func @transform_16(%arg0: i32) -> (i32, i32, i32) {
    %c0_i32 = arith.constant 0 : i32
    %c0_i32_0 = arith.constant 0 : i32
    %c0_i32_1 = arith.constant 0 : i32
    %c0_i32_2 = arith.constant 0 : i32
    return %c0_i32, %c0_i32_0, %c0_i32_1 : i32, i32, i32
  }
  func.func @transform_17(%arg0: i32) -> (i32, i32, i32) {
    %c0_i32 = arith.constant 0 : i32
    %c0_i32_0 = arith.constant 0 : i32
    %c0_i32_1 = arith.constant 0 : i32
    %c0_i32_2 = arith.constant 0 : i32
    return %c0_i32, %c0_i32_0, %c0_i32_1 : i32, i32, i32
  }
  func.func @transform_18(%arg0: i32) -> (i32, i32, i32) {
    %c0_i32 = arith.constant 0 : i32
    %c0_i32_0 = arith.constant 0 : i32
    %c0_i32_1 = arith.constant 0 : i32
    %c0_i32_2 = arith.constant 0 : i32
    return %c0_i32, %c0_i32_0, %c0_i32_1 : i32, i32, i32
  }
  func.func @transform_19(%arg0: i32) -> (i32, i32, i32) {
    %c0_i32 = arith.constant 0 : i32
    %c0_i32_0 = arith.constant 0 : i32
    %c0_i32_1 = arith.constant 0 : i32
    %c0_i32_2 = arith.constant 0 : i32
    return %c0_i32, %c0_i32_0, %c0_i32_1 : i32, i32, i32
  }
  func.func @transform_20(%arg0: i32) -> (i32, i32, i32) {
    %c0_i32 = arith.constant 0 : i32
    %c0_i32_0 = arith.constant 0 : i32
    %c0_i32_1 = arith.constant 0 : i32
    %c0_i32_2 = arith.constant 0 : i32
    return %c0_i32, %c0_i32_0, %c0_i32_1 : i32, i32, i32
  }
  func.func @transform_21(%arg0: i32) -> (i32, i32, i32) {
    %c0_i32 = arith.constant 0 : i32
    %c0_i32_0 = arith.constant 0 : i32
    %c0_i32_1 = arith.constant 0 : i32
    %c0_i32_2 = arith.constant 0 : i32
    return %c0_i32, %c0_i32_0, %c0_i32_1 : i32, i32, i32
  }
  func.func @transform_22(%arg0: i32) -> (i32, i32, i32) {
    %c0_i32 = arith.constant 0 : i32
    %c0_i32_0 = arith.constant 0 : i32
    %c0_i32_1 = arith.constant 0 : i32
    %c0_i32_2 = arith.constant 0 : i32
    return %c0_i32, %c0_i32_0, %c0_i32_1 : i32, i32, i32
  }
  func.func @transform_23(%arg0: i32) -> (i32, i32, i32) {
    %c0_i32 = arith.constant 0 : i32
    %c0_i32_0 = arith.constant 0 : i32
    %c0_i32_1 = arith.constant 0 : i32
    return %arg0, %c0_i32, %c0_i32_0 : i32, i32, i32
  }
}

</mosaic_0001>

<bundles_post_ra>
// kernel: tpu_custom_call.1
= control target key start
LH: loop header
LB: loop body
LE: loop exit
PB: predicated region body
PF: predicated region fallthrough
CT: control target
= control target key end

     0   :  { %s8310_s0 = inlined_call_operand.hbm [shape: f32[2,8,32], index: 0, kind: input, shape index: {}]   ;;  %s8311_s1 = inlined_call_operand.hbm [shape: f32[2,8,32], index: 1, kind: input, shape index: {}]   ;;  %s8312_s2 = inlined_call_operand.vmem [shape: f32[2,1,8], index: 2, kind: input, shape index: {}]   ;;  %s8313_s3 = inlined_call_operand.hbm [shape: f32[2,1,8], index: 3, kind: input, shape index: {}]   ;;  %s8314_s4 = inlined_call_operand.vmem [shape: f32[2,32,32], index: 4, kind: input, shape index: {}]   ;;  %s8315_s5 = inlined_call_operand.hbm [shape: f32[2,1,32], index: 5, kind: input, shape index: {}]   ;;  %s8316_s6 = inlined_call_operand.vmem [shape: f32[2,32,64], index: 6, kind: input, shape index: {}]   ;;  %s8317_s7 = inlined_call_operand.hbm [shape: f32[2,1,64], index: 7, kind: input, shape index: {}]   ;;  %s8318_s8 = inlined_call_operand.vmem [shape: f32[2,32,32], index: 8, kind: input, shape index: {}]   ;;  %s8319_s9 = inlined_call_operand.hbm [shape: f32[2,1,32], index: 9, kind: input, shape index: {}]   ;;  %s8320_s10 = inlined_call_operand.vmem [shape: f32[2,2,32], index: 10, kind: input, shape index: {}]   ;;  %s8321_s11 = inlined_call_operand.hbm [shape: f32[2,32,32], index: 11, kind: input, shape index: {}]   ;;  %s8322_s12 = inlined_call_operand.hbm [shape: f32[2,1,32], index: 12, kind: input, shape index: {}]   ;;  %s8323_s13 = inlined_call_operand.hbm [shape: f32[2,32,64], index: 13, kind: input, shape index: {}]   ;;  %s8324_s14 = inlined_call_operand.hbm [shape: f32[2,1,64], index: 14, kind: input, shape index: {}]   ;;  %s8325_s15 = inlined_call_operand.hbm [shape: f32[2,32,32], index: 15, kind: input, shape index: {}]   ;;  %s8326_s16 = inlined_call_operand.hbm [shape: f32[2,1,32], index: 16, kind: input, shape index: {}]   ;;  %s8327_s17 = inlined_call_operand.vmem [shape: f32[2,2,32], index: 17, kind: input, shape index: {}]   ;;  %s8328_s18 = inlined_call_operand.hbm [shape: f32[2,32,64], index: 18, kind: input, shape index: {}]   ;;  %s8329_s19 = inlined_call_operand.hbm [shape: f32[2,1,64], index: 19, kind: input, shape index: {}]   ;;  %s8330_s20 = inlined_call_operand.vmem [shape: f32[2,64,32], index: 20, kind: input, shape index: {}]   ;;  %s8331_s21 = inlined_call_operand.hbm [shape: f32[2,1,32], index: 21, kind: input, shape index: {}]   ;;  %s8332_s22 = inlined_call_operand.vmem [shape: f32[2,2,32], index: 22, kind: input, shape index: {}]   ;;  %s8333_s23 = inlined_call_operand.hbm [shape: f32[2,8,32], index: 23, kind: output, shape index: {}]  }
   0x1   :  { %8385 = sst [smem:[#allocation42_spill]] %s8310_s0 }
   0x2   :  { %8386 = sst [smem:[#allocation43_spill]] %s8311_s1 }
   0x3   :  { %8387 = sst [smem:[#allocation44_spill]] %s8312_s2 }
   0x4   :  { %8388 = sst [smem:[#allocation45_spill]] %s8313_s3 }
   0x5   :  { %8389 = sst [smem:[#allocation46_spill]] %s8314_s4 }
   0x6   :  { %8390 = sst [smem:[#allocation47_spill]] %s8315_s5 }
   0x7   :  { %8391 = sst [smem:[#allocation48_spill]] %s8316_s6 }
   0x8   :  { %8392 = sst [smem:[#allocation49_spill]] %s8317_s7 }
   0x9   :  { %8393 = sst [smem:[#allocation50_spill]] %s8318_s8 }
   0xa   :  { %8394 = sst [smem:[#allocation51_spill]] %s8319_s9 }
   0xb   :  { %8395 = sst [smem:[#allocation52_spill]] %s8320_s10 }
   0xc   :  { %8396 = sst [smem:[#allocation53_spill]] %s8322_s12 }
   0xd   :  { %8397 = sst [smem:[#allocation54_spill]] %s8324_s14 }
   0xe   :  { %8398 = sst [smem:[#allocation55_spill]] %s8326_s16 }
   0xf   :  { %8399 = sst [smem:[#allocation56_spill]] %s8327_s17 }
  0x10   :  { %8400 = sst [smem:[#allocation57_spill]] %s8329_s19 }
  0x11   :  { %8401 = sst [smem:[#allocation58_spill]] %s8330_s20 }
  0x12   :  { %8402 = sst [smem:[#allocation59_spill]] %s8331_s21 }
  0x13   :  { %8403 = sst [smem:[#allocation60_spill]] %s8332_s22 }
  0x14   :  { %8404 = sst [smem:[#allocation61_spill]] %s8333_s23 }
  0x15   :  { %28 = vsyncpa [#allocation3], 0 }
  0x16   :  { %30 = vsyncpa [#allocation3 + $0x1], 0 }
  0x17   :  { %31 = vsyncpa [#allocation6], 0 }
  0x18   :  { %33 = vsyncpa [#allocation6 + $0x1], 0 }
  0x19   :  { %34 = vsyncpa [#allocation9], 0 }
  0x1a   :  { %35 = vsyncpa [#allocation12], 0 }
  0x1b   :  { %36 = vsyncpa [#allocation15], 0 }
  0x1c   :  { %37 = vsyncpa [#allocation18], 0 }
  0x1d   :  { %38 = vsyncpa [#allocation21], 0 }
  0x1e   :  { %39 = vsyncpa [#allocation24], 0 }
  0x1f   :  { %40 = vsyncpa [#allocation4], 0 }
  0x20   :  { %42 = vsyncpa [#allocation4 + $0x1], 0  ;;  %s7174_s4 = smov 0   ;;  %s7176_s30 = smov 0  }
  0x21   :  { %s7178_s24 = smov 0   ;;  %s7180_s25 = smov 0  }
  0x22 LB: > { %8405 = sst [smem:[#allocation36_spill]] %s7010_s4  ;;  %s7024_s5 = smov [#allocation8]   ;;  %s7022_s25 = sphi %s7180_s25, %s8476_s25   ;;  %s7018_s24 = sphi %s7178_s24, %s8478_s24   ;;  %s7014_s30 = sphi %s7176_s30, %s8480_s30   ;;  %s7010_s4 = sphi %s7174_s4, %s8479_s4  }
  0x23   : > { %8406 = sst [smem:[#allocation37_spill]] %s7018_s24  ;;  %s597_s1 = sshll.u32 %s7024_s5, 4  ;;  %s7200_s1 = int_to_ptr.vmem [resolvable:$true] %s597_s1 }
  0x24   : > { %s7195_s26 = sadd.s32 4294967295, %s7022_s25   ;;  %p5475_p0 = scmp.ge.s32.totalorder %s7022_s25, 1 }
  0x25   : > { %p8350_p1 = scmp.eq.s32.totalorder %s7195_s26, 0  ;;  %p582_p2 = scmp.lt.s32.totalorder %s7022_s25, 3 }
  0x26   : > { %s7025_s6 = smov [#allocation11]   ;;  %s7026_s28 = smov [#allocation14]  }
  0x27   : > { %p7202_p3 = pnand %p5475_p0, %p582_p2  ;;  %s629_s27 = sshll.u32 %s7025_s6, 4  ;;  %s7215_s27 = int_to_ptr.vmem [resolvable:$true] %s629_s27 }
  0x28   : > { %s658_s29 = sshll.u32 %s7026_s28, 4  ;;  %s8410_s5 = sld [smem:[#allocation47_spill]]  ;;  %s7217_s29 = int_to_ptr.vmem [resolvable:$true] %s658_s29 }
  0x29   : > { %s8407_s2 = scalar_select %p7202_p3, 1, 0 }
  0x2a   : > { %p6287_p5 = pneg %p7202_p3 }
  0x2b   : > { %8408 = sst [smem:[#allocation38_spill]] %s8407_s2 }
  0x2c   : > { %p7211_p6 = pnand %p6287_p5, %p8350_p1 }
  0x2e   : > { %s8409_s7 = scalar_select %p7211_p6, 1, 0 }
  0x2f   : > { %s6502_s23 = scalar_lea.hbm %s8410_s5, 32  ;;  %p7227_p8 = pneg %p7211_p6 }
  0x30   : > { %p6503_p7 = scmp.ne.s32.totalorder %s8410_s5, %s6502_s23  ;;  %p6509_p11 = scmp.lt.u32.totalorder %s6502_s23, %s8410_s5 }
  0x31   : > { %s8411_s6 = scalar_select %p7227_p8, 1, 0 }
  0x32   : > { %p6505_p9 = pnand %p7227_p8, %p6503_p7 }
  0x34   : > { %p6506_p10 = pneg %p6505_p9 }
  0x36   : > { %p6511_p12 = pnand %p6509_p11, %p6506_p10 }
  0x38   : > { %6514 = shalt.err (!%p6511_p12)
}
  0x39   : > { %s6515_s20 = scalar_lea.vmem %s7200_s1, 32  ;;  %p6523_p5 = scmp.lt.s32.totalorder %s7200_s1, %s7200_s1 }
  0x3a   : > { %p6516_p13 = scmp.ne.s32.totalorder %s7200_s1, %s6515_s20  ;;  %p6524_p4 = scmp.lt.s32.totalorder %s6515_s20, %s6515_s20 }
  0x3c   : > { %p6518_p0 = pnand %p6516_p13, %p7227_p8  ;;  %p6525_p7 = por %p6524_p4, %p6523_p5 }
  0x3e   : > { %p6519_p2 = pneg %p6518_p0 }
  0x40   : > { %p6526_p9 = pnand %p6525_p7, %p6519_p2 }
  0x42   : > { %6529 = shalt.err (!%p6526_p9)
}
  0x43   : > { %s8352_s22 = smov 16   ;;  %s8354_s17 = smov 1  }
  0x44   : > { %6290 = dma.hbm_to_vmem [thread:$0]  (!%p7211_p6), %s8410_s5, 32, %s7200_s1, [#allocation9], %s8352_s22, %s8352_s22, %s8354_s17  }
  0x45   : > { %s8412_s9 = sld [smem:[#allocation51_spill]] }
  0x4b   : > { %s6530_s20 = scalar_lea.hbm %s8412_s9, 32 }
  0x4c   : > { %p6531_p4 = scmp.ne.s32.totalorder %s8412_s9, %s6530_s20  ;;  %p6537_p12 = scmp.lt.u32.totalorder %s6530_s20, %s8412_s9 }
  0x4e   : > { %p6533_p10 = pnand %p6531_p4, %p7227_p8 }
  0x50   : > { %p6534_p11 = pneg %p6533_p10 }
  0x52   : > { %p6539_p13 = pnand %p6537_p12, %p6534_p11 }
  0x54   : > { %6542 = shalt.err (!%p6539_p13)
}
  0x55   : > { %s6543_s1 = scalar_lea.vmem %s7215_s27, 32  ;;  %p6551_p7 = scmp.lt.s32.totalorder %s7215_s27, %s7215_s27 }
  0x56   : > { %p6544_p0 = scmp.ne.s32.totalorder %s7215_s27, %s6543_s1  ;;  %p6552_p9 = scmp.lt.s32.totalorder %s6543_s1, %s6543_s1 }
  0x58   : > { %p6546_p2 = pnand %p6544_p0, %p7227_p8  ;;  %p6553_p4 = por %p6552_p9, %p6551_p7 }
  0x5a   : > { %p6547_p5 = pneg %p6546_p2 }
  0x5c   : > { %p6554_p10 = pnand %p6553_p4, %p6547_p5 }
  0x5e   : > { %6557 = shalt.err (!%p6554_p10)
}
  0x5f   : > { %6296 = dma.hbm_to_vmem [thread:$0]  (!%p7211_p6), %s8412_s9, 32, %s7215_s27, [#allocation12], %s8352_s22, %s8352_s22, %s8354_s17  }
  0x60   : > { %s8413_s12 = sld [smem:[#allocation53_spill]] }
  0x66   : > { %s6558_s23 = scalar_lea.hbm %s8413_s12, 32 }
  0x67   : > { %p6559_p11 = scmp.ne.s32.totalorder %s8413_s12, %s6558_s23  ;;  %p6565_p0 = scmp.lt.u32.totalorder %s6558_s23, %s8413_s12 }
  0x69   : > { %p6561_p12 = pnand %p6559_p11, %p7227_p8 }
  0x6b   : > { %p6562_p13 = pneg %p6561_p12 }
  0x6d   : > { %p6567_p2 = pnand %p6565_p0, %p6562_p13 }
  0x6f   : > { %6570 = shalt.err (!%p6567_p2)
}
  0x70   : > { %s6571_s27 = scalar_lea.vmem %s7217_s29, 32  ;;  %p6579_p4 = scmp.lt.s32.totalorder %s7217_s29, %s7217_s29 }
  0x71   : > { %p6572_p5 = scmp.ne.s32.totalorder %s7217_s29, %s6571_s27  ;;  %p6580_p10 = scmp.lt.s32.totalorder %s6571_s27, %s6571_s27 }
  0x73   : > { %p6574_p7 = pnand %p6572_p5, %p7227_p8  ;;  %p6581_p11 = por %p6580_p10, %p6579_p4 }
  0x75   : > { %p6575_p9 = pneg %p6574_p7 }
  0x77   : > { %p6582_p12 = pnand %p6581_p11, %p6575_p9 }
  0x79   : > { %6585 = shalt.err (!%p6582_p12)
}
  0x7a   : > { %6302 = dma.hbm_to_vmem [thread:$0]  (!%p7211_p6), %s8413_s12, 32, %s7217_s29, [#allocation15], %s8352_s22, %s8352_s22, %s8354_s17  }
  0x7b   : > { %s7029_s10 = smov [#allocation17]   ;;  %s7030_s2 = smov [#allocation20]  }
  0x7c   : > { %s684_s21 = sshll.u32 %s7029_s10, 4  ;;  %s710_s23 = sshll.u32 %s7030_s2, 4  ;;  %s685_s21 = int_to_ptr.vmem [resolvable:$true] %s684_s21  ;;  %s711_s23 = int_to_ptr.vmem [resolvable:$true] %s710_s23 }
  0x7d   : > { %s8414_s14 = sld [smem:[#allocation54_spill]] }
  0x83   : > { %s6586_s28 = scalar_lea.hbm %s8414_s14, 32 }
  0x84   : > { %p6587_p13 = scmp.ne.s32.totalorder %s8414_s14, %s6586_s28  ;;  %p6593_p5 = scmp.lt.u32.totalorder %s6586_s28, %s8414_s14 }
  0x86   : > { %p6589_p0 = pnand %p6587_p13, %p7227_p8 }
  0x88   : > { %p6590_p2 = pneg %p6589_p0 }
  0x8a   : > { %p6595_p7 = pnand %p6593_p5, %p6590_p2 }
  0x8c   : > { %6598 = shalt.err (!%p6595_p7)
}
  0x8d   : > { %s6599_s29 = scalar_lea.vmem %s685_s21, 32  ;;  %p6607_p11 = scmp.lt.s32.totalorder %s685_s21, %s685_s21 }
  0x8e   : > { %p6600_p9 = scmp.ne.s32.totalorder %s685_s21, %s6599_s29  ;;  %p6608_p12 = scmp.lt.s32.totalorder %s6599_s29, %s6599_s29 }
  0x90   : > { %p6602_p4 = pnand %p6600_p9, %p7227_p8  ;;  %p6609_p1 = por %p6608_p12, %p6607_p11 }
  0x92   : > { %p6603_p10 = pneg %p6602_p4 }
  0x94   : > { %p6610_p3 = pnand %p6609_p1, %p6603_p10 }
  0x96   : > { %6613 = shalt.err (!%p6610_p3)
}
  0x97   : > { %6308 = dma.hbm_to_vmem [thread:$0]  (!%p7211_p6), %s8414_s14, 32, %s685_s21, [#allocation18], %s8352_s22, %s8352_s22, %s8354_s17  }
  0x98   : > { %s8415_s16 = sld [smem:[#allocation55_spill]] }
  0x9e   : > { %s6614_s3 = scalar_lea.hbm %s8415_s16, 32 }
  0x9f   : > { %p6615_p1 = scmp.ne.s32.totalorder %s8415_s16, %s6614_s3  ;;  %p6621_p0 = scmp.lt.u32.totalorder %s6614_s3, %s8415_s16 }
  0xa1   : > { %p6617_p3 = pnand %p6615_p1, %p7227_p8 }
  0xa3   : > { %p6618_p13 = pneg %p6617_p3 }
  0xa5   : > { %p6623_p2 = pnand %p6621_p0, %p6618_p13 }
  0xa7   : > { %6626 = shalt.err (!%p6623_p2)
}
  0xa8   : > { %s6627_s1 = scalar_lea.vmem %s711_s23, 32  ;;  %p6635_p4 = scmp.lt.s32.totalorder %s711_s23, %s711_s23 }
  0xa9   : > { %p6628_p5 = scmp.ne.s32.totalorder %s711_s23, %s6627_s1  ;;  %p6636_p10 = scmp.lt.s32.totalorder %s6627_s1, %s6627_s1 }
  0xab   : > { %p6630_p7 = pnand %p6628_p5, %p7227_p8  ;;  %p6637_p11 = por %p6636_p10, %p6635_p4 }
  0xad   : > { %p6631_p9 = pneg %p6630_p7 }
  0xaf   : > { %p6638_p12 = pnand %p6637_p11, %p6631_p9 }
  0xb1   : > { %6641 = shalt.err (!%p6638_p12)
}
  0xb2   : > { %6314 = dma.hbm_to_vmem [thread:$0]  (!%p7211_p6), %s8415_s16, 32, %s711_s23, [#allocation21], %s8352_s22, %s8352_s22, %s8354_s17  }
  0xb3   : > { %s7031_s5 = smov [#allocation23]   ;;  %s8416_s19 = sld [smem:[#allocation57_spill]] }
  0xb4   : > { %s739_s8 = sshll.u32 %s7031_s5, 4  ;;  %s740_s8 = int_to_ptr.vmem [resolvable:$true] %s739_s8 }
  0xb9   : > { %s6642_s3 = scalar_lea.hbm %s8416_s19, 32 }
  0xba   : > { %p6643_p1 = scmp.ne.s32.totalorder %s8416_s19, %s6642_s3  ;;  %p6649_p0 = scmp.lt.u32.totalorder %s6642_s3, %s8416_s19 }
  0xbc   : > { %p6645_p3 = pnand %p6643_p1, %p7227_p8 }
  0xbe   : > { %p6646_p13 = pneg %p6645_p3 }
  0xc0   : > { %p6651_p2 = pnand %p6649_p0, %p6646_p13 }
  0xc2   : > { %6654 = shalt.err (!%p6651_p2)
}
  0xc3   : > { %s6655_s23 = scalar_lea.vmem %s740_s8, 32  ;;  %p6663_p4 = scmp.lt.s32.totalorder %s740_s8, %s740_s8 }
  0xc4   : > { %p6656_p5 = scmp.ne.s32.totalorder %s740_s8, %s6655_s23  ;;  %p6664_p10 = scmp.lt.s32.totalorder %s6655_s23, %s6655_s23 }
  0xc6   : > { %p6658_p7 = pnand %p6656_p5, %p7227_p8  ;;  %p6665_p11 = por %p6664_p10, %p6663_p4 }
  0xc8   : > { %p6659_p9 = pneg %p6658_p7 }
  0xca   : > { %p6666_p12 = pnand %p6665_p11, %p6659_p9 }
  0xcc   : > { %6669 = shalt.err (!%p6666_p12)
}
  0xcd   : > { %6320 = dma.hbm_to_vmem [thread:$0]  (!%p7211_p6), %s8416_s19, 32, %s740_s8, [#allocation24], %s8352_s22, %s8352_s22, %s8354_s17  }
  0xce   : > { %s5474_s29 = sadd.s32 4294967294, %s7022_s25   ;;  %s7368_s5 = sadd.s32 1, %s7022_s25  }
  0xcf   : > { %8417 = sst [smem:[#allocation39_spill]] %s7368_s5  ;;  %s52_s10 = ssub.s32 %s7022_s25, %s7368_s5 }
  0xd0   : > { %s55_s2 = sadd.s32 1, %s7018_s24  ;;  %p53_p1 = scmp.eq.s32.totalorder %s52_s10, 0 }
  0xd1   : > { %p62_p3 = scmp.ne.s32.totalorder %s7018_s24, %s7014_s30  ;;  %p63_p13 = scmp.eq.s32.totalorder %s7022_s25, 0 }
  0xd2   : > { %p68_p0 = scmp.ne.s32.totalorder %s7014_s30, %s7010_s4  ;;  %p8419_p5 = scmp.eq.s32.totalorder %s7195_s26, 0 }
  0xd3   : > { %s7379_s3 = scalar_select %p53_p1, %s7018_s24, %s55_s2  }
  0xd4   : > { %p64_p2 = por %p63_p13, %p62_p3  ;;  %p7383_p7 = por %p8419_p5, %p68_p0 }
  0xd5   : > { %8418 = sst [smem:[#allocation40_spill]] %s7379_s3  ;;  %p569_p9 = scmp.eq.s32.totalorder %s7195_s26, 1 }
  0xd6   : > { %s8420_s0 = scalar_select %p7383_p7, 1, 0 }
  0xd7   : > { %p575_p4 = scmp.eq.s32.totalorder %s5474_s29, 1  ;;  %p6350_p10 = scmp.lt.s32.totalorder %s7022_s25, 2 }
  0xd8   : > { %s7390_s8 = sand.u32 1, %s7018_s24   ;;  %p7392_p11 = por %p569_p9, %p62_p3 }
  0xd9   : > { %p7396_p12 = por %p575_p4, %p68_p0  ;;  %s8356_s27 = sshll.u32 %s7390_s8, 3 }
  0xda   : > { %s8421_s28 = scalar_select %p7392_p11, 1, 0 }
  0xdb   : > { %s8422_s20 = scalar_select %p7396_p12, 1, 0 }
  0xdc   : > { %s8357_s23 = sshll.u32 %s7022_s25, 7  ;;  %p7402_p1 = pnand %p6350_p10, %p64_p2 }
  0xdd   : > { %8423 = sst [smem:[#allocation41_spill]] %s8422_s20  ;;  %s790_s21 = sand.u32 1, %s7022_s25  }
  0xde   : > { %s8424_s1 = scalar_select %p7402_p1, 1, 0 }
  0xdf   : > { %s8425_s2 = sld [smem:[#allocation43_spill]]  ;;  %s794_s17 = scalar_lea.vmem [#allocation5], %s8356_s27 }
  0xe0   : > { %s801_s9 = sshll.u32 %s794_s17, 4  ;;  %s7032_s12 = smov [#allocation10]   ;;  %s7416_s9 = int_to_ptr.vmem [resolvable:$true] %s801_s9 }
  0xe1   : > { %s7418_s14 = sshll.u32 %s7032_s12, 4  ;;  %s7420_s16 = scalar_lea.sflag [#allocation6], %s790_s21  ;;  %s614_s14 = int_to_ptr.vmem [resolvable:$true] %s7418_s14 }
  0xe2   : > { %p7426_p13 = pneg %p7402_p1 }
  0xe4   : > { %s8426_s29 = scalar_select %p7426_p13, 1, 0 }
  0xe5   : > { %s7412_s22 = scalar_lea.hbm %s8425_s2, %s8357_s23  ;;  %s6675_s27 = scalar_lea.hbm %s8425_s2, 256 }
  0xe6   : > { %s6670_s19 = scalar_lea.hbm %s7412_s22, 128  ;;  %p6676_p5 = scmp.lt.u32.totalorder %s7412_s22, %s8425_s2 }
  0xe7   : > { %p6671_p3 = scmp.ne.s32.totalorder %s7412_s22, %s6670_s19  ;;  %p6677_p9 = scmp.lt.u32.totalorder %s6675_s27, %s6670_s19 }
  0xe8   : > { %p6679_p10 = scmp.lt.u32.totalorder %s6670_s19, %s7412_s22 }
  0xe9   : > { %p6673_p0 = pnand %p7426_p13, %p6671_p3  ;;  %p6678_p4 = por %p6677_p9, %p6676_p5 }
  0xeb   : > { %p6674_p2 = pneg %p6673_p0  ;;  %p6680_p12 = por %p6679_p10, %p6678_p4 }
  0xed   : > { %p6681_p11 = pnand %p6680_p12, %p6674_p2 }
  0xef   : > { %6684 = shalt.err (!%p6681_p11)
}
  0xf0   : > { %s6685_s21 = scalar_lea.vmem %s7416_s9, 128  ;;  %s7033_s10 = smov [#allocation5]  }
  0xf1   : > { %p6686_p3 = scmp.ne.s32.totalorder %s7416_s9, %s6685_s21  ;;  %s6690_s17 = sshll.u32 %s7033_s10, 4  ;;  %s6691_s17 = int_to_ptr.vmem [resolvable:$false] %s6690_s17 }
  0xf2   : > { %s6692_s23 = scalar_lea.vmem %s6691_s17, 256  ;;  %p6693_p6 = scmp.lt.s32.totalorder %s7416_s9, %s6691_s17 }
  0xf3   : > { %p6688_p0 = pnand %p6686_p3, %p7426_p13  ;;  %p6694_p8 = scmp.lt.s32.totalorder %s6692_s23, %s6685_s21 }
  0xf5   : > { %p6689_p7 = pneg %p6688_p0  ;;  %p6695_p5 = por %p6694_p8, %p6693_p6 }
  0xf7   : > { %p6696_p9 = pnand %p6695_p5, %p6689_p7 }
  0xf9   : > { %6699 = shalt.err (!%p6696_p9)
}
  0xfa   : > { %6330 = dma.hbm_to_vmem [thread:$0]  (!%p7402_p1), %s7412_s22, 128, %s7416_s9, %s7420_s16  }
  0xfb   : > { %s8427_s12 = sld [smem:[#allocation49_spill]]  ;;  %p8428_p6 = scmp.ne.s32.totalorder %s8411_s6, 0 }
 0x101   : > { %s6700_s10 = scalar_lea.hbm %s8427_s12, 32 }
 0x102   : > { %p6701_p11 = scmp.ne.s32.totalorder %s8427_s12, %s6700_s10  ;;  %p6707_p12 = scmp.lt.u32.totalorder %s6700_s10, %s8427_s12 }
 0x104   : > { %p6703_p8 = pnand %p6701_p11, %p8428_p6 }
 0x106   : > { %p6704_p7 = pneg %p6703_p8 }
 0x108   : > { %p6709_p2 = pnand %p6707_p12, %p6704_p7 }
 0x10a   : > { %6712 = shalt.err (!%p6709_p2)
}
 0x10b   : > { %s6713_s23 = scalar_lea.vmem %s614_s14, 32  ;;  %p6721_p0 = scmp.lt.s32.totalorder %s614_s14, %s614_s14 }
 0x10c   : > { %p6714_p4 = scmp.ne.s32.totalorder %s614_s14, %s6713_s23  ;;  %p6722_p5 = scmp.lt.s32.totalorder %s6713_s23, %s6713_s23 }
 0x10e   : > { %p6716_p10 = pnand %p6714_p4, %p8428_p6  ;;  %p6723_p9 = por %p6722_p5, %p6721_p0 }
 0x110   : > { %p6717_p3 = pneg %p6716_p10 }
 0x112   : > { %p6724_p1 = pnand %p6723_p9, %p6717_p3 }
 0x114   : > { %6727 = shalt.err (!%p6724_p1)
}
 0x115   : > { %p8429_p11 = scmp.ne.s32.totalorder %s8409_s7, 0  ;;  %s8430_s9 = smov 1  }
 0x116   : > { %s8431_s22 = smov 16   ;;  %s7034_s19 = smov [#allocation13]  }
 0x117   : > { %6293 = dma.hbm_to_vmem [thread:$0]  (!%p8429_p11), %s8427_s12, 32, %s614_s14, [#allocation9], %s8431_s22, %s8431_s22, %s8430_s9  }
 0x118   : > { %s645_s27 = sshll.u32 %s7034_s19, 4  ;;  %s6728_s17 = scalar_lea.hbm %s8321_s11, 1024  ;;  %s646_s27 = int_to_ptr.vmem [resolvable:$true] %s645_s27 }
 0x119   : > { %p6729_p1 = scmp.ne.s32.totalorder %s8321_s11, %s6728_s17  ;;  %p6735_p12 = scmp.lt.u32.totalorder %s6728_s17, %s8321_s11 }
 0x11b   : > { %p6731_p8 = pnand %p6729_p1, %p8428_p6 }
 0x11d   : > { %p6732_p7 = pneg %p6731_p8 }
 0x11f   : > { %p6737_p2 = pnand %p6735_p12, %p6732_p7 }
 0x121   : > { %6740 = shalt.err (!%p6737_p2)
}
 0x122   : > { %s6741_s14 = scalar_lea.vmem %s646_s27, 1024  ;;  %p6749_p0 = scmp.lt.s32.totalorder %s646_s27, %s646_s27 }
 0x123   : > { %p6742_p4 = scmp.ne.s32.totalorder %s646_s27, %s6741_s14  ;;  %p6750_p5 = scmp.lt.s32.totalorder %s6741_s14, %s6741_s14 }
 0x125   : > { %p6744_p10 = pnand %p6742_p4, %p8428_p6  ;;  %p6751_p9 = por %p6750_p5, %p6749_p0 }
 0x127   : > { %p6745_p3 = pneg %p6744_p10 }
 0x129   : > { %p6752_p13 = pnand %p6751_p9, %p6745_p3 }
 0x12b   : > { %6755 = shalt.err (!%p6752_p13)
}
 0x12c   : > { %s7035_s24 = smov 128   ;;  %s7036_s3 = smov 8  }
 0x12d   : > { %6299 = dma.hbm_to_vmem [thread:$0]  (!%p8429_p11), %s8321_s11, 1024, %s646_s27, [#allocation12], %s7035_s24, %s7035_s24, %s7036_s3  }
 0x12e   : > { %s7037_s2 = smov [#allocation16]   ;;  %s7038_s10 = smov [#allocation19]  }
 0x12f   : > { %s671_s19 = sshll.u32 %s7037_s2, 4  ;;  %s697_s21 = sshll.u32 %s7038_s10, 4  ;;  %s672_s19 = int_to_ptr.vmem [resolvable:$true] %s671_s19  ;;  %s7493_s21 = int_to_ptr.vmem [resolvable:$true] %s697_s21 }
 0x130   : > { %s6756_s14 = scalar_lea.hbm %s8323_s13, 1024 }
 0x131   : > { %p6757_p13 = scmp.ne.s32.totalorder %s8323_s13, %s6756_s14  ;;  %p6763_p7 = scmp.lt.u32.totalorder %s6756_s14, %s8323_s13 }
 0x133   : > { %p6759_p1 = pnand %p6757_p13, %p8428_p6 }
 0x135   : > { %p6760_p8 = pneg %p6759_p1 }
 0x137   : > { %p6765_p12 = pnand %p6763_p7, %p6760_p8 }
 0x139   : > { %6768 = shalt.err (!%p6765_p12)
}
 0x13a   : > { %s6769_s20 = scalar_lea.vmem %s672_s19, 1024  ;;  %p6777_p3 = scmp.lt.s32.totalorder %s672_s19, %s672_s19 }
 0x13b   : > { %p6770_p2 = scmp.ne.s32.totalorder %s672_s19, %s6769_s20  ;;  %p6778_p0 = scmp.lt.s32.totalorder %s6769_s20, %s6769_s20 }
 0x13d   : > { %p6772_p4 = pnand %p6770_p2, %p8428_p6  ;;  %p6779_p5 = por %p6778_p0, %p6777_p3 }
 0x13f   : > { %p6773_p10 = pneg %p6772_p4 }
 0x141   : > { %p6780_p9 = pnand %p6779_p5, %p6773_p10 }
 0x143   : > { %6783 = shalt.err (!%p6780_p9)
}
 0x144   : > { %6305 = dma.hbm_to_vmem [thread:$0]  (!%p8429_p11), %s8323_s13, 1024, %s672_s19, [#allocation15], %s7035_s24, %s7035_s24, %s7036_s3  }
 0x145   : > { %s6784_s17 = scalar_lea.hbm %s8325_s15, 1024 }
 0x146   : > { %p6785_p13 = scmp.ne.s32.totalorder %s8325_s15, %s6784_s17  ;;  %p6791_p7 = scmp.lt.u32.totalorder %s6784_s17, %s8325_s15 }
 0x148   : > { %p6787_p1 = pnand %p6785_p13, %p8428_p6 }
 0x14a   : > { %p6788_p8 = pneg %p6787_p1 }
 0x14c   : > { %p6793_p12 = pnand %p6791_p7, %p6788_p8 }
 0x14e   : > { %6796 = shalt.err (!%p6793_p12)
}
 0x14f   : > { %s6797_s19 = scalar_lea.vmem %s7493_s21, 1024  ;;  %p6805_p3 = scmp.lt.s32.totalorder %s7493_s21, %s7493_s21 }
 0x150   : > { %p6798_p2 = scmp.ne.s32.totalorder %s7493_s21, %s6797_s19  ;;  %p6806_p0 = scmp.lt.s32.totalorder %s6797_s19, %s6797_s19 }
 0x152   : > { %p6800_p4 = pnand %p6798_p2, %p8428_p6  ;;  %p6807_p5 = por %p6806_p0, %p6805_p3 }
 0x154   : > { %p6801_p10 = pneg %p6800_p4 }
 0x156   : > { %p6808_p9 = pnand %p6807_p5, %p6801_p10 }
 0x158   : > { %6811 = shalt.err (!%p6808_p9)
}
 0x159   : > { %6311 = dma.hbm_to_vmem [thread:$0]  (!%p8429_p11), %s8325_s15, 1024, %s7493_s21, [#allocation18], %s7035_s24, %s7035_s24, %s7036_s3  }
 0x15a   : > { %s7039_s12 = smov [#allocation22]   ;;  %s7040_s10 = smov [#allocation25]  }
 0x15b   : > { %s726_s2 = sshll.u32 %s7039_s12, 4  ;;  %s755_s17 = sshll.u32 %s7040_s10, 4  ;;  %s727_s2 = int_to_ptr.vmem [resolvable:$true] %s726_s2  ;;  %s7542_s17 = int_to_ptr.vmem [resolvable:$true] %s755_s17 }
 0x15c   : > { %s6812_s5 = scalar_lea.hbm %s8328_s18, 1024 }
 0x15d   : > { %p6813_p13 = scmp.ne.s32.totalorder %s8328_s18, %s6812_s5  ;;  %p6819_p7 = scmp.lt.u32.totalorder %s6812_s5, %s8328_s18 }
 0x15f   : > { %p6815_p1 = pnand %p6813_p13, %p8428_p6 }
 0x161   : > { %p6816_p8 = pneg %p6815_p1 }
 0x163   : > { %p6821_p12 = pnand %p6819_p7, %p6816_p8 }
 0x165   : > { %6824 = shalt.err (!%p6821_p12)
}
 0x166   : > { %s6825_s4 = scalar_lea.vmem %s727_s2, 1024  ;;  %p6833_p3 = scmp.lt.s32.totalorder %s727_s2, %s727_s2 }
 0x167   : > { %p6826_p2 = scmp.ne.s32.totalorder %s727_s2, %s6825_s4  ;;  %p6834_p0 = scmp.lt.s32.totalorder %s6825_s4, %s6825_s4 }
 0x169   : > { %p6828_p4 = pnand %p6826_p2, %p8428_p6  ;;  %p6835_p5 = por %p6834_p0, %p6833_p3 }
 0x16b   : > { %p6829_p10 = pneg %p6828_p4 }
 0x16d   : > { %p6836_p9 = pnand %p6835_p5, %p6829_p10 }
 0x16f   : > { %6839 = shalt.err (!%p6836_p9)
}
 0x170   : > { %6317 = dma.hbm_to_vmem [thread:$0]  (!%p8429_p11), %s8328_s18, 1024, %s727_s2, [#allocation21], %s7035_s24, %s7035_s24, %s7036_s3  }
 0x171   : > { %s8432_s5 = sld [smem:[#allocation59_spill]] }
 0x177   : > { %s6840_s27 = scalar_lea.hbm %s8432_s5, 32 }
 0x178   : > { %p6841_p13 = scmp.ne.s32.totalorder %s8432_s5, %s6840_s27  ;;  %p6847_p7 = scmp.lt.u32.totalorder %s6840_s27, %s8432_s5 }
 0x17a   : > { %p6843_p1 = pnand %p6841_p13, %p8428_p6 }
 0x17c   : > { %p6844_p8 = pneg %p6843_p1 }
 0x17e   : > { %p6849_p12 = pnand %p6847_p7, %p6844_p8 }
 0x180   : > { %6852 = shalt.err (!%p6849_p12)
}
 0x181   : > { %s6853_s24 = scalar_lea.vmem %s7542_s17, 32  ;;  %p6861_p3 = scmp.lt.s32.totalorder %s7542_s17, %s7542_s17 }
 0x182   : > { %p6854_p2 = scmp.ne.s32.totalorder %s7542_s17, %s6853_s24  ;;  %p6862_p0 = scmp.lt.s32.totalorder %s6853_s24, %s6853_s24 }
 0x184   : > { %p6856_p4 = pnand %p6854_p2, %p8428_p6  ;;  %p6863_p5 = por %p6862_p0, %p6861_p3 }
 0x186   : > { %p6857_p10 = pneg %p6856_p4 }
 0x188   : > { %p6864_p9 = pnand %p6863_p5, %p6857_p10 }
 0x18a   : > { %6867 = shalt.err (!%p6864_p9)
}
 0x18b   : > { %6323 = dma.hbm_to_vmem [thread:$0]  (!%p8429_p11), %s8432_s5, 32, %s7542_s17, [#allocation24], %s8431_s22, %s8431_s22, %s8430_s9  }
 0x18c   : > { %s8433_s6 = sshll.u32 %s7022_s25, 7  ;;  %s8434_s23 = sld [smem:[#allocation42_spill]] }
 0x18d   : > { %s8435_s27 = sshll.u32 %s7390_s8, 3  ;;  %s773_s20 = scalar_lea.sflag [#allocation3], %s7390_s8 }
 0x18e   : > { %s776_s7 = scalar_lea.vmem [#allocation2], %s8435_s27  ;;  %p8436_p13 = scmp.ne.s32.totalorder %s8426_s29, 0 }
 0x18f   : > { %s783_s19 = sshll.u32 %s776_s7, 4  ;;  %s784_s19 = int_to_ptr.vmem [resolvable:$true] %s783_s19 }
 0x192   : > { %s7596_s14 = scalar_lea.hbm %s8434_s23, %s8433_s6  ;;  %s6873_s17 = scalar_lea.hbm %s8434_s23, 256 }
 0x193   : > { %s6868_s21 = scalar_lea.hbm %s7596_s14, 128  ;;  %p6874_p8 = scmp.lt.u32.totalorder %s7596_s14, %s8434_s23 }
 0x194   : > { %p6869_p6 = scmp.ne.s32.totalorder %s7596_s14, %s6868_s21  ;;  %p6875_p7 = scmp.lt.u32.totalorder %s6873_s17, %s6868_s21 }
 0x195   : > { %p6877_p2 = scmp.lt.u32.totalorder %s6868_s21, %s7596_s14 }
 0x196   : > { %p6871_p1 = pnand %p6869_p6, %p8436_p13  ;;  %p6876_p12 = por %p6875_p7, %p6874_p8 }
 0x198   : > { %p6872_p11 = pneg %p6871_p1  ;;  %p6878_p4 = por %p6877_p2, %p6876_p12 }
 0x19a   : > { %p6879_p10 = pnand %p6878_p4, %p6872_p11 }
 0x19c   : > { %6882 = shalt.err (!%p6879_p10)
}
 0x19d   : > { %s6883_s3 = scalar_lea.vmem %s784_s19, 128  ;;  %s7041_s2 = smov [#allocation2]  }
 0x19e   : > { %p6884_p3 = scmp.ne.s32.totalorder %s784_s19, %s6883_s3  ;;  %s6888_s6 = sshll.u32 %s7041_s2, 4  ;;  %s6889_s6 = int_to_ptr.vmem [resolvable:$false] %s6888_s6 }
 0x19f   : > { %s6890_s12 = scalar_lea.vmem %s6889_s6, 256  ;;  %p6891_p9 = scmp.lt.s32.totalorder %s784_s19, %s6889_s6 }
 0x1a0   : > { %p6886_p0 = pnand %p6884_p3, %p8436_p13  ;;  %p6892_p6 = scmp.lt.s32.totalorder %s6890_s12, %s6883_s3 }
 0x1a2   : > { %p6887_p5 = pneg %p6886_p0  ;;  %p6893_p1 = por %p6892_p6, %p6891_p9 }
 0x1a4   : > { %p6894_p7 = pnand %p6893_p1, %p6887_p5 }
 0x1a6   : > { %6897 = shalt.err (!%p6894_p7)
}
 0x1a7   : > { %p8437_p8 = scmp.ne.s32.totalorder %s8424_s1, 0  ;;  %s5493_s10 = sshll.u32 %s7022_s25, 4 }
 0x1a8   : > { %s817_s27 = scalar_lea.vmem [#allocation7], %s7390_s8  ;;  %s8438_s22 = sld [smem:[#allocation45_spill]] }
 0x1a9   : > { %6327 = dma.hbm_to_vmem [thread:$0]  (!%p8437_p8), %s7596_s14, 128, %s784_s19, %s773_s20  }
 0x1aa   : > { %s824_s7 = sshll.u32 %s817_s27, 4  ;;  %s825_s7 = int_to_ptr.vmem [resolvable:$true] %s824_s7 }
 0x1ae   : > { %s822_s17 = scalar_lea.hbm %s8438_s22, %s5493_s10  ;;  %s6903_s2 = scalar_lea.hbm %s8438_s22, 32 }
 0x1af   : > { %s6898_s4 = scalar_lea.hbm %s822_s17, 16  ;;  %p6904_p4 = scmp.lt.u32.totalorder %s822_s17, %s8438_s22 }
 0x1b0   : > { %p6899_p11 = scmp.ne.s32.totalorder %s822_s17, %s6898_s4  ;;  %p6905_p10 = scmp.lt.u32.totalorder %s6903_s2, %s6898_s4 }
 0x1b1   : > { %p6907_p0 = scmp.lt.u32.totalorder %s6898_s4, %s822_s17 }
 0x1b2   : > { %p6901_p12 = pnand %p6899_p11, %p8436_p13  ;;  %p6906_p3 = por %p6905_p10, %p6904_p4 }
 0x1b4   : > { %p6902_p2 = pneg %p6901_p12  ;;  %p6908_p5 = por %p6907_p0, %p6906_p3 }
 0x1b6   : > { %p6909_p9 = pnand %p6908_p5, %p6902_p2 }
 0x1b8   : > { %6912 = shalt.err (!%p6909_p9)
}
 0x1b9   : > { %s6913_s8 = scalar_lea.vmem %s825_s7, 16  ;;  %s7042_s14 = smov [#allocation7]  }
 0x1ba   : > { %p6914_p6 = scmp.ne.s32.totalorder %s825_s7, %s6913_s8  ;;  %s6918_s19 = sshll.u32 %s7042_s14, 4  ;;  %s6919_s19 = int_to_ptr.vmem [resolvable:$false] %s6918_s19 }
 0x1bb   : > { %s6920_s20 = scalar_lea.vmem %s6919_s19, 32  ;;  %p6921_p11 = scmp.lt.s32.totalorder %s825_s7, %s6919_s19 }
 0x1bc   : > { %p6916_p1 = pnand %p6914_p6, %p8436_p13  ;;  %p6922_p12 = scmp.lt.s32.totalorder %s6920_s20, %s6913_s8 }
 0x1be   : > { %p6917_p7 = pneg %p6916_p1  ;;  %p6923_p8 = por %p6922_p12, %p6921_p11 }
 0x1c0   : > { %p6924_p4 = pnand %p6923_p8, %p6917_p7 }
 0x1c2   : > { %6927 = shalt.err (!%p6924_p4)
}
 0x1c3   : > { %p8439_p10 = scmp.ne.s32.totalorder %s8424_s1, 0  ;;  %s8440_s10 = sld [smem:[#allocation38_spill]] }
 0x1c5   : > { %6333 = dma.hbm_to_vmem [thread:$0]  (!%p8439_p10), %s822_s17, 16, %s825_s7, %s7420_s16  }
 0x1c9   : > { %p8441_p2 = scmp.ne.s32.totalorder %s8440_s10, 0 }
 0x1ca   : > { %s7639_s29 = sand.u32 (!%p8441_p2), 1, %s7014_s30   ;;  %p8442_p13 = scmp.ne.s32.totalorder (!%p8441_p2), %s8420_s0, 0 }
 0x1cb   : > { %833 = sbr.rel (%p8441_p2) target bundleno = 8963 (0x2303), region = 112  ;;  %s7642_s27 = sshll.u32 (!%p8441_p2), %s7639_s29, 3 }
 0x1cc   : > { %s836_s21 = scalar_lea.sflag (!%p8441_p2), [#allocation3], %s7639_s29  ;;  %s839_s9 = scalar_lea.vmem (!%p8441_p2), [#allocation2], %s7642_s27 }
 0x1d2   : > { %6973 = dma.done.wait (%p8442_p13), %s836_s21, 128  }
 0x1d3   : > { %6975 = vsyncadd (%p8442_p13), %s836_s21, 4294967168  ;;  %s844_s16 = sand.u32 1, %s7195_s26   ;;  %s848_s7 = scalar_lea.vmem [#allocation5], %s7642_s27 }
 0x1d4   : > { %s845_s1 = scalar_lea.sflag [#allocation6], %s844_s16 }
 0x1d5   : > { %6977 = dma.done.wait (%p8442_p13), %s845_s1, 144  }
 0x1d6   : > { %6979 = vsyncadd (%p8442_p13), %s845_s1, 4294967152  ;;  %s856_s17 = scalar_lea.vmem [#allocation7], %s7639_s29  ;;  %p8443_p8 = scmp.eq.s32.totalorder %s7195_s26, 0 }
 0x1d8   : > { %6981 = dma.done.wait (%p8443_p8), [#allocation9], 64   ;;  %p8444_p3 = pmov %p8443_p8 }
 0x1da   : > { %6983 = vsyncadd (%p8444_p3), [#allocation9], 4294967232  ;;  %p8445_p0 = pmov %p8444_p3 }
 0x1dc   : > { %6985 = dma.done.wait (%p8445_p0), [#allocation12], 1056   ;;  %p8446_p5 = pmov %p8445_p0 }
 0x1dd   : > { %p8447_p9 = pmov %p8445_p0 }
 0x1de   : > { %6987 = vsyncadd (%p8446_p5), [#allocation12], 4294966240 }
 0x1df   : > { %6989 = dma.done.wait (%p8447_p9), [#allocation15], 1056   ;;  %p8448_p6 = pmov %p8445_p0 }
 0x1e0   : > { %p8449_p1 = pmov %p8445_p0 }
 0x1e1   : > { %6991 = vsyncadd (%p8448_p6), [#allocation15], 4294966240 }
 0x1e2   : > { %6993 = dma.done.wait (%p8449_p1), [#allocation18], 1056   ;;  %p8450_p7 = pmov %p8445_p0 }
 0x1e3   : > { %p8451_p11 = pmov %p8445_p0 }
 0x1e4   : > { %6995 = vsyncadd (%p8450_p7), [#allocation18], 4294966240 }
 0x1e5   : > { %6997 = dma.done.wait (%p8451_p11), [#allocation21], 1056   ;;  %p8452_p12 = pmov %p8445_p0 }
 0x1e6   : > { %p8453_p4 = pmov %p8445_p0 }
 0x1e7   : > { %6999 = vsyncadd (%p8452_p12), [#allocation21], 4294966240 }
 0x1e8   : > { %7001 = dma.done.wait (%p8453_p4), [#allocation24], 64   ;;  %p8454_p10 = pmov %p8445_p0 }
 0x1e9   : > { %v7043_v0 = vmov 0.0|0.0   ;;  %vm7044_vm0 = vmmov 0   ;;  %v7045_v1 = vmov 0.0   ;;  %s8455_s24 = sld [smem:[#allocation46_spill]]  ;;  %s8457_s21 = sld [smem:[#allocation48_spill]]  ;;  %v7708_v10 = vld [vmem:[%s839_s9] sm:$0xff] }
 0x1ea   : > { %7003 = vsyncadd (%p8454_p10), [#allocation24], 4294967232  ;;  %6123 = vmatprep.subr.bf16.mxu1 %v7043_v0  ;;  %5779 = vmatprep.mubr.msk.f32.mxu1 %vm7044_vm0, %v7045_v1  ;;  %vm1008_vm1 = vcmask 261120   ;;  %v5512_v17 = vld [vmem:[#allocation10] ss:$0 sm:$0xff]  ;;  %vm1178_vm2 = vcmask 64512  }
 0x1eb   : > { %5793 = vmatprep.subr.mxu0 %v7045_v1  ;;  %5795 = vmatprep.mubr.msk.f32.mxu0 %vm7044_vm0, %v7045_v1  ;;  %v5510_v21 = vld [vmem:[#allocation8] ss:$0 sm:$0xff]  ;;  %s7046_s9 = smov 112   ;;  %s7047_s6 = smov 120   ;;  %vm1836_vm3 = vcmask 130048   ;;  %vm1838_vm4 = vcmask 195584  }
 0x1ec   : > { %s8383_s12 = smov 104   ;;  %p979_p2 = scmp.lt.s32.totalorder %s7195_s26, 1  ;;  %vm3008_vm5 = vcmask 523264  }
 0x1ed   : > { %s8458_s20 = sld [smem:[#allocation44_spill]]  ;;  %s8381_s16 = smov 96  }
 0x1ee   : > { %s980_s8 = scalar_select %p979_p2, %s7195_s26, 1 }
 0x1ef   : > { %s8456_s3 = smov %s8455_s24  ;;  %v986_v2 = vld [vmem:[%s8455_s24] sm:$0xff]  ;;  %v992_v9 = vld [vmem:[%s8457_s21 + $0x8] sm:$0xff]  ;;  %v993_v12 = vld [vmem:[%s8457_s21 + $0x10] sm:$0xff]  ;;  %s8459_s4 = sld [smem:[#allocation50_spill]] }
 0x1f0   : > { %v987_v3 = vld [vmem:[%s8456_s3 + $0x8] sm:$0xff]  ;;  %v988_v4 = vld [vmem:[%s8456_s3 + $0x10] sm:$0xff]  ;;  %v989_v6 = vld [vmem:[%s8456_s3 + $0x18] sm:$0xff]  ;;  %s8379_s1 = smov 8   ;;  %s8377_s0 = smov 16  }
 0x1f1   : > { %v6124_v5 = vpack.c.bf16 %v987_v3, %v986_v2  ;;  %v6127_v7 = vpack.c.bf16 %v989_v6, %v988_v4  ;;  %v991_v8 = vld [vmem:[%s8457_s21] sm:$0xff]  ;;  %v994_v13 = vld [vmem:[%s8457_s21 + $0x18] sm:$0xff]  ;;  %s8462_s19 = sld [smem:[#allocation56_spill]]  ;;  %s8464_s14 = sld [smem:[#allocation60_spill]] }
 0x1f2   : > { %v6130_v11 = vpack.c.bf16 %v992_v9, %v991_v8  ;;  %v6133_v14 = vpack.c.bf16 %v994_v13, %v993_v12  ;;  %s8467_s24 = smov 16   ;;  %p8471_p8 = scmp.ne.s32.totalorder %s8421_s28, 0 }
 0x1f3   : > { %6125 = vmatpush3.bf16.msra.mxu1 %v6124_v5  ;;  %s981_s10 = scalar_lea.vmem %s8458_s20, %s980_s8  ;;  %s8461_s8 = sld [smem:[#allocation52_spill]] }
 0x1f4   : > { %6126 = vmatprep.subr.bf16.mxu1 %v7043_v0  ;;  %v7767_v29 = vld [vmem:[%s981_s10] ss:$0 sm:$0xff]  ;;  %s8465_s20 = smov 96   ;;  %s8466_s10 = smov 8  }
 0x1f5   : > { %s8460_s2 = smov %s8459_s4 }
 0x1f7   : > { %6128 = vmatpush3.bf16.msra.mxu1 %v6127_v7 }
 0x1f8   : > { %6129 = vmatprep.subr.bf16.mxu1 %v7043_v0 }
 0x1fa   : > { %5780 = vmatmul.mubr.msk.f32.vlgmr.msra.gmra.mrb[0].mxu1 %vm1008_vm1, %v7708_v10 }
 0x1fb   : > { %6131 = vmatpush3.bf16.msra.mxu1 %v6130_v11  ;;  %5790 = vmatprep.mubr.msk.f32.mxu1 %vm7044_vm0, %v7045_v1 }
 0x1fc   : > { %6132 = vmatprep.subr.bf16.mxu1 %v7043_v0 }
 0x1ff   : > { %6134 = vmatpush3.bf16.msra.mxu1 %v6133_v14 }
 0x200   : > { %5798 = vmatprep.subr.mxu1 %v7045_v1 }
 0x202   : > { %5791 = vmatmul.mubr.msk.f32.vlgmr.msra.gmra.mrb[2].mxu1 %vm1008_vm1, %v7708_v10 }
 0x203   : > { %5800 = vmatprep.mubr.msk.f32.mxu1 %vm7044_vm0, %v7045_v1 }
 0x2cd   : > { %v1078_v15 = vpop.f32.mrb[0].mxu1 }
 0x2ce   : > { %v5781_v16 = vpop.f32.mrb[1].mxu1  ;;  %v1079_v22 = vadd.f32 %v5510_v21, %v1078_v15 }
 0x2d5   : > { %v1154_v18 = vpop.f32.mrb[2].mxu1 }
 0x2d6   : > { %v1155_v19 = vadd.f32 %v5512_v17, %v1154_v18  ;;  %v5792_v20 = vpop.f32.mrb[3].mxu1 }
 0x2d8   : > { %1168 = vrot.lane.b32.xlu1 %v1155_v19, %s7046_s9  ;;  %1166 = vrot.lane.b32.xlu0 %v1155_v19, %s7047_s6 }
 0x2d9   : > { %5794 = vmatpush3.xpose.msk.msra.mxu0 %vm1178_vm2, %v1155_v19 }
 0x2da   : > { %5803 = vmatprep.subr.mxu0 %v7045_v1 }
 0x2dc   : > { %5796 = vmatmul.mubr.msk.f32.vlgmr.msra.gmra.mrb[0].mxu0 %vm1178_vm2, %v1079_v22  ;;  %1170 = vrot.lane.b32.xlu1 %v1155_v19, %s8383_s12 }
 0x2dd   : > { %1159 = vrot.lane.b32.xlu0 %v1079_v22, %s7047_s6  ;;  %5805 = vmatprep.mubr.msk.f32.mxu0 %vm7044_vm0, %v7045_v1 }
 0x2e0   : > { %1163 = vrot.lane.b32.xlu1 %v1079_v22, %s8383_s12 }
 0x2e1   : > { %1161 = vrot.lane.b32.xlu0 %v1079_v22, %s7046_s9 }
 0x34a   : > { %v7738_v23 = vpop.permute.xlu1 %1168  ;;  %v7740_v24 = vpop.permute.xlu0 %1166 }
 0x34b   : > { %5799 = vmatpush3.xpose.msk.msra.mxu1 %vm1178_vm2, %v7740_v24  ;;  %5804 = vmatpush3.xpose.msk.msra.mxu0 %vm1178_vm2, %v7738_v23 }
 0x34c   : > { %5808 = vmatprep.subr.mxu1 %v7045_v1  ;;  %5813 = vmatprep.subr.mxu0 %v7045_v1 }
 0x34e   : > { %v7748_v25 = vpop.permute.xlu1 %1170 }
 0x34f   : > { %v1160_v26 = vpop.permute.xlu0 %1159 }
 0x350   : > { %5801 = vmatmul.mubr.msk.f32.vlgmr.msra.gmra.mrb[4].mxu1 %vm1178_vm2, %v1160_v26  ;;  %v998_v26 = vld [vmem:[%s8460_s2 + $0x10] sm:$0xff] }
 0x351   : > { %5809 = vmatpush3.xpose.msk.msra.mxu1 %vm1178_vm2, %v7748_v25  ;;  %5810 = vmatprep.mubr.msk.f32.mxu1 %vm7044_vm0, %v7045_v1 }
 0x352   : > { %v1164_v27 = vpop.permute.xlu1 %1163  ;;  %5818 = vmatprep.subr.mxu1 %v7045_v1 }
 0x353   : > { %v1162_v28 = vpop.permute.xlu0 %1161 }
 0x354   : > { %5806 = vmatmul.mubr.msk.f32.vlgmr.msra.gmra.mrb[2].mxu0 %vm1178_vm2, %v1162_v28  ;;  %5811 = vmatmul.mubr.msk.f32.vlgmr.msra.gmra.mrb[6].mxu1 %vm1178_vm2, %v1164_v27  ;;  %v999_v27 = vld [vmem:[%s8460_s2 + $0x18] sm:$0xff] }
 0x355   : > { %5815 = vmatprep.mubr.msk.f32.mxu0 %vm7044_vm0, %v7045_v1  ;;  %5820 = vmatprep.mubr.msk.f32.mxu1 %vm7044_vm0, %v7045_v1  ;;  %v6139_v28 = vpack.c.bf16 %v999_v27, %v998_v26 }
 0x3af   : > { %v1249_v30 = vpop.f32.mrb[0].mxu0 }
 0x3b0   : > { %v1250_v31 = vadd.f32 %v7767_v29, %v1249_v30  ;;  %v5797_v32 = vpop.f32.mrb[1].mxu0 }
 0x3b2   : > { %v1475_v33 = vsel %vm1178_vm2, %v1250_v31, -inf }
 0x3b3   : > { %1476 = vmax.xlane.f32.xlu0 %v1475_v33 }
 0x423   : > { %v1323_v34 = vpop.f32.mrb[4].mxu1 }
 0x424   : > { %v1324_v35 = vadd.f32 %v7767_v29, %v1323_v34  ;;  %v5802_v36 = vpop.f32.mrb[5].mxu1 }
 0x426   : > { %v1478_v37 = vsel %vm1178_vm2, %v1324_v35, -inf }
 0x427   : > { %v1397_v38 = vpop.f32.mrb[2].mxu0  ;;  %1479 = vmax.xlane.f32.xlu1 %v1478_v37  ;;  %v1471_v39 = vpop.f32.mrb[6].mxu1 }
 0x428   : > { %v1398_v40 = vadd.f32 %v7767_v29, %v1397_v38  ;;  %v5807_v41 = vpop.f32.mrb[3].mxu0  ;;  %v5812_v42 = vpop.f32.mrb[7].mxu1  ;;  %v1472_v43 = vadd.f32 %v7767_v29, %v1471_v39 }
 0x429   : > { %v5527_v42 = vld [vmem:[#allocation11] ss:$0 sm:$0xff] }
 0x42a   : > { %v1481_v44 = vsel %vm1178_vm2, %v1398_v40, -inf  ;;  %v1484_v45 = vsel %vm1178_vm2, %v1472_v43, -inf }
 0x42b   : > { %1482 = vmax.xlane.f32.xlu0 %v1481_v44 }
 0x42f   : > { %1485 = vmax.xlane.f32.xlu0 %v1484_v45 }
 0x438   : > { %1519 = vrot.lane.b32.xlu1 %v1155_v19, %s8381_s16 }
 0x440   : > { %v1477_v46 = vpop.xlane.xlu0 %1476 }
 0x441   : > { %v1487_v47 = vsub.f32 %v1250_v31, %v1477_v46 }
 0x443   : > { %v1491_v48 = vmul.f32 1.442695, %v1487_v47 }
 0x445   : > { %6422 = vpow2.f32 %v1491_v48 }
 0x44f   : > { %v6423_v49 = vpop.eup %6422 }
 0x450   : > { %v1499_v50 = vsel %vm1178_vm2, %v6423_v49, 0.0 }
 0x45c   : > { %1500 = vadd.xlane.f32.xlu1 %v1499_v50 }
 0x4b4   : > { %v1480_v51 = vpop.xlane.xlu1 %1479 }
 0x4b5   : > { %v1488_v52 = vsub.f32 %v1324_v35, %v1480_v51 }
 0x4b7   : > { %v1493_v53 = vmul.f32 1.442695, %v1488_v52 }
 0x4b8   : > { %v1483_v54 = vpop.xlane.xlu0 %1482  ;;  %v1520_v55 = vpop.permute.xlu1 %1519 }
 0x4b9   : > { %6424 = vpow2.f32 %v1493_v53  ;;  %v1489_v56 = vsub.f32 %v1398_v40, %v1483_v54  ;;  %5814 = vmatpush3.msra.mxu0 %v1520_v55  ;;  %v1949_v53 = vld [vmem:[#allocation16] sm:$0xff]  ;;  %v1950_v54 = vld [vmem:[#allocation16 + $0x8] sm:$0xff] }
 0x4ba   : > { %5823 = vmatprep.subr.mxu0 %v7045_v1  ;;  %v6148_v55 = vpack.c.bf16 %v1950_v54, %v1949_v53 }
 0x4bb   : > { %v1495_v57 = vmul.f32 1.442695, %v1489_v56  ;;  %v1951_v56 = vld [vmem:[#allocation16 + $0x10] sm:$0xff] }
 0x4bc   : > { %v1486_v58 = vpop.xlane.xlu0 %1485 }
 0x4bd   : > { %6426 = vpow2.f32 %v1495_v57  ;;  %v1490_v59 = vsub.f32 %v1472_v43, %v1486_v58  ;;  %v1952_v57 = vld [vmem:[#allocation16 + $0x18] sm:$0xff] }
 0x4be   : > { %v1944_v58 = vld [vmem:[#allocation13] sm:$0xff] }
 0x4bf   : > { %v1497_v60 = vmul.f32 1.442695, %v1490_v59  ;;  %v1945_v59 = vld [vmem:[#allocation13 + $0x8] sm:$0xff] }
 0x4c1   : > { %6428 = vpow2.f32 %v1497_v60  ;;  %v7834_v60 = vld [vmem:[%s848_s7] sm:$0xff]  ;;  %s8463_s7 = sld [smem:[#allocation58_spill]] }
 0x4c3   : > { %v6425_v61 = vpop.eup %6424 }
 0x4c4   : > { %v1502_v62 = vsel %vm1178_vm2, %v6425_v61, 0.0 }
 0x4c5   : > { %1503 = vadd.xlane.f32.xlu0 %v1502_v62  ;;  %v1946_v62 = vld [vmem:[#allocation13 + $0x10] sm:$0xff] }
 0x4c7   : > { %v6427_v63 = vpop.eup %6426 }
 0x4c8   : > { %v1505_v2 = vsel %vm1178_vm2, %v6427_v63, 0.0 }
 0x4c9   : > { %1506 = vadd.xlane.f32.xlu1 %v1505_v2 }
 0x4cb   : > { %v6429_v3 = vpop.eup %6428 }
 0x4cc   : > { %v1508_v4 = vsel %vm1178_vm2, %v6429_v3, 0.0 }
 0x4cd   : > { %1509 = vadd.xlane.f32.xlu0 %v1508_v4 }
 0x4da   : > { %1671 = vrot.lane.b32.xlu1 %v7738_v23, %s8381_s16  ;;  %v996_v23 = vld [vmem:[%s8459_s4] sm:$0xff]  ;;  %s8375_s4 = smov 24  }
 0x4de   : > { %1747 = vrot.lane.b32.xlu1 %v7748_v25, %s8381_s16 }
 0x4e3   : > { %1595 = vrot.lane.b32.xlu0 %v7740_v24, %s8381_s16  ;;  %v997_v24 = vld [vmem:[%s8460_s2 + $0x8] sm:$0xff] }
 0x4e4   : > { %v6136_v25 = vpack.c.bf16 %v997_v24, %v996_v23  ;;  %v5529_v23 = vld [vmem:[#allocation14] ss:$0 sm:$0xff] }
 0x4e9   : > { %v1501_v5 = vpop.xlane.xlu1 %1500 }
 0x4ea   : > { %6430 = vrcp.f32 %v1501_v5  ;;  %v1934_v5 = vlaneseq }
 0x4f4   : > { %v6431_v6 = vpop.eup %6430 }
 0x4f5   : > { %v1515_v7 = vmul.f32 %v6431_v6, %v6423_v49 }
 0x4f7   : > { %5816 = vmatmul.mubr.msk.f32.vlgmr.msra.gmra.mrb[4].mxu0 %vm1178_vm2, %v1515_v7  ;;  %v1935_v7 = vshrl.u32 %v1934_v5, 7 }
 0x4f8   : > { %5825 = vmatprep.mubr.msk.f32.mxu0 %vm7044_vm0, %v7045_v1 }
 0x552   : > { %v1504_v8 = vpop.xlane.xlu0 %1503 }
 0x553   : > { %6432 = vrcp.f32 %v1504_v8  ;;  %v7842_v8 = vsub.s32 0, %v1935_v7 }
 0x556   : > { %v1507_v9 = vpop.xlane.xlu1 %1506 }
 0x557   : > { %6434 = vrcp.f32 %v1507_v9  ;;  %v1001_v9 = vld [vmem:[%s8461_s8] sm:$0x3] }
 0x55a   : > { %v1672_v11 = vpop.permute.xlu1 %1671  ;;  %v1510_v12 = vpop.xlane.xlu0 %1509 }
 0x55b   : > { %6436 = vrcp.f32 %v1510_v12  ;;  %5824 = vmatpush3.msra.mxu0 %v1672_v11  ;;  %v7847_v11 = vsub.s32 1, %v1935_v7  ;;  %v1937_v12 = vrot.slane %v1001_v9, %v7842_v8 }
 0x55c   : > { %6135 = vmatprep.subr.bf16.mxu0 %v7043_v0 }
 0x55d   : > { %v6433_v13 = vpop.eup %6432 }
 0x55e   : > { %v1516_v14 = vmul.f32 %v6433_v13, %v6425_v61  ;;  %v1596_v15 = vpop.permute.xlu0 %1595  ;;  %v1748_v16 = vpop.permute.xlu1 %1747  ;;  %v6142_v61 = vpack.c.bf16 %v1945_v59, %v1944_v58 }
 0x55f   : > { %5819 = vmatpush3.msra.mxu1 %v1596_v15  ;;  %v1942_v15 = vrot.slane %v1001_v9, %v7847_v11 }
 0x560   : > { %5821 = vmatmul.mubr.msk.f32.vlgmr.msra.gmra.mrb[8].mxu1 %vm1178_vm2, %v1516_v14  ;;  %5828 = vmatprep.subr.mxu1 %v7045_v1 }
 0x561   : > { %v6435_v17 = vpop.eup %6434  ;;  %5829 = vmatpush3.msra.mxu1 %v1748_v16  ;;  %5830 = vmatprep.mubr.msk.f32.mxu1 %vm7044_vm0, %v7045_v1 }
 0x562   : > { %v1517_v18 = vmul.f32 %v6435_v17, %v6427_v63  ;;  %6141 = vmatprep.subr.bf16.mxu1 %v7043_v0  ;;  %v1947_v63 = vld [vmem:[#allocation13 + $0x18] sm:$0xff] }
 0x563   : > { %v6145_v2 = vpack.c.bf16 %v1947_v63, %v1946_v62 }
 0x564   : > { %5826 = vmatmul.mubr.msk.f32.vlgmr.msra.gmra.mrb[6].mxu0 %vm1178_vm2, %v1517_v18  ;;  %v5531_v18 = vld [vmem:[#allocation17] ss:$0 sm:$0xff] }
 0x565   : > { %v6437_v19 = vpop.eup %6436  ;;  %5841 = vmatprep.mubr.msk.f32.mxu0 %vm7044_vm0, %v7045_v1  ;;  %6137 = vmatpush3.bf16.msra.mxu0 %v6136_v25 }
 0x566   : > { %v1518_v20 = vmul.f32 %v6437_v19, %v6429_v3  ;;  %6138 = vmatprep.subr.bf16.mxu0 %v7043_v0 }
 0x568   : > { %5831 = vmatmul.mubr.msk.f32.vlgmr.msra.gmra.mrb[10].mxu1 %vm1178_vm2, %v1518_v20 }
 0x569   : > { %5852 = vmatprep.mubr.msk.f32.mxu1 %vm7044_vm0, %v7045_v1  ;;  %6140 = vmatpush3.bf16.msra.mxu0 %v6139_v28 }
 0x56a   : > { %6147 = vmatprep.subr.bf16.mxu0 %v7043_v0  ;;  %6143 = vmatpush3.bf16.msra.mxu1 %v6142_v61 }
 0x56b   : > { %6144 = vmatprep.subr.bf16.mxu1 %v7043_v0 }
 0x56e   : > { %6146 = vmatpush3.bf16.msra.mxu1 %v6145_v2 }
 0x56f   : > { %5866 = vmatprep.subr.mxu1 %v7045_v1 }
 0x5ca   : > { %v1591_v21 = vpop.f32.mrb[4].mxu0 }
 0x5cb   : > { %v5817_v22 = vpop.f32.mrb[5].mxu0 }
 0x633   : > { %v1667_v30 = vpop.f32.mrb[8].mxu1 }
 0x634   : > { %1824 = vrot.lane.b32.xlu0 %v1667_v30, %s8379_s1  ;;  %v5822_v31 = vpop.f32.mrb[9].mxu1 }
 0x637   : > { %v1743_v32 = vpop.f32.mrb[6].mxu0 }
 0x638   : > { %1828 = vrot.lane.b32.xlu1 %v1743_v32, %s8377_s0  ;;  %v5827_v33 = vpop.f32.mrb[7].mxu0 }
 0x639   : > { %v7891_v33 = vld [vmem:[%s856_s17] ss:$0 sm:$0xff]  ;;  %s5616_s17 = sshll.u32 %s7195_s26, 7  ;;  %s7053_s26 = smov [#allocation26]  }
 0x63b   : > { %v1819_v34 = vpop.f32.mrb[10].mxu1 }
 0x63c   : > { %1832 = vrot.lane.b32.xlu0 %v1819_v34, %s8375_s4  ;;  %v5832_v35 = vpop.f32.mrb[11].mxu1 }
 0x6a6   : > { %v1825_v36 = vpop.permute.xlu0 %1824 }
 0x6a7   : > { %v1835_v38 = vsel %vm1178_vm2, %v1591_v21, %v1825_v36 }
 0x6aa   : > { %v1829_v37 = vpop.permute.xlu1 %1828 }
 0x6ab   : > { %v1837_v39 = vsel %vm1836_vm3, %v1835_v38, %v1829_v37 }
 0x6ae   : > { %v1833_v40 = vpop.permute.xlu0 %1832 }
 0x6af   : > { %v1839_v41 = vsel %vm1838_vm4, %v1837_v39, %v1833_v40 }
 0x6b0   : > { %5842 = vmatmul.mubr.msk.f32.vlgmr.msra.gmra.mrb[8].mxu0 %vm1008_vm1, %v1839_v41 }
 0x6b1   : > { %5863 = vmatprep.mubr.msk.f32.mxu0 %vm7044_vm0, %v7045_v1  ;;  %6149 = vmatpush3.bf16.msra.mxu0 %v6148_v55 }
 0x6b2   : > { %6150 = vmatprep.subr.bf16.mxu0 %v7043_v0 }
 0x783   : > { %v1915_v43 = vpop.f32.mrb[8].mxu0 }
 0x784   : > { %v1916_v44 = vadd.f32 %v5527_v42, %v1915_v43  ;;  %v5843_v45 = vpop.f32.mrb[9].mxu0 }
 0x786   : > { %v1919_v46 = vadd.f32 %v1916_v44, %v7708_v10  ;;  %v6151_v10 = vpack.c.bf16 %v1952_v57, %v1951_v56 }
 0x788   : > { %v1920_v47 = vsel %vm1008_vm1, %v1919_v46, 0.0  ;;  %6152 = vmatpush3.bf16.msra.mxu0 %v6151_v10 }
 0x789   : > { %1921 = vadd.xlane.f32.xlu1 %v1920_v47  ;;  %5876 = vmatprep.subr.mxu0 %v7045_v1 }
 0x78b   : > { %5864 = vmatmul.mubr.msk.f32.vlgmr.msra.gmra.mrb[10].mxu0 %vm1008_vm1, %v7834_v60 }
 0x78c   : > { %5878 = vmatprep.mubr.msk.f32.mxu0 %vm7044_vm0, %v7045_v1 }
 0x816   : > { %v1922_v48 = vpop.xlane.xlu1 %1921 }
 0x817   : > { %v1924_v49 = vmul.f32 0.03125, %v1922_v48 }
 0x819   : > { %v1925_v50 = vsub.f32 %v1919_v46, %v1924_v49 }
 0x81b   : > { %v1926_v51 = vmul.f32 %v1925_v50, %v1925_v50 }
 0x81d   : > { %v1927_v52 = vsel %vm1008_vm1, %v1926_v51, 0.0 }
 0x81e   : > { %1928 = vadd.xlane.f32.xlu0 %v1927_v52 }
 0x85e   : > { %v2114_v19 = vpop.f32.mrb[10].mxu0 }
 0x85f   : > { %v2115_v20 = vadd.f32 %v5531_v18, %v2114_v19  ;;  %v5865_v21 = vpop.f32.mrb[11].mxu0 }
 0x861   : > { %2126 = vrot.lane.b32.xlu0 %v2115_v20, %s7047_s6  ;;  %2128 = vrot.lane.b32.xlu1 %v2115_v20, %s7046_s9 }
 0x865   : > { %2130 = vrot.lane.b32.xlu0 %v2115_v20, %s8383_s12 }
 0x8ab   : > { %v1929_v3 = vpop.xlane.xlu0 %1928 }
 0x8ac   : > { %v1930_v4 = vmul.f32 0.03125, %v1929_v3 }
 0x8ae   : > { %v1931_v6 = vadd.f32 1e-12, %v1930_v4 }
 0x8b0   : > { %6438 = vrsqrt.f32 %v1931_v6 }
 0x8ba   : > { %v6439_v13 = vpop.eup %6438 }
 0x8bb   : > { %v1933_v14 = vmul.f32 %v6439_v13, %v1925_v50 }
 0x8bd   : > { %v1938_v16 = vmul.f32 %v1937_v12, %v1933_v14 }
 0x8bf   : > { %v7851_v17 = vadd.f32 %v1942_v15, %v1938_v16 }
 0x8c1   : > { %5853 = vmatmul.mubr.msk.f32.vlgmr.msra.gmra.mrb[12].mxu1 %vm1008_vm1, %v7851_v17 }
 0x8c2   : > { %5868 = vmatprep.mubr.msk.f32.mxu1 %vm7044_vm0, %v7045_v1  ;;  %5867 = vmatpush3.xpose.msk.msra.mxu1 %vm1178_vm2, %v2115_v20 }
 0x8c3   : > { %5871 = vmatprep.subr.mxu1 %v7045_v1 }
 0x8d3   : > { %v7862_v22 = vpop.permute.xlu1 %2128  ;;  %v2127_v27 = vpop.permute.xlu0 %2126 }
 0x8d4   : > { %5877 = vmatpush3.xpose.msk.msra.mxu0 %vm1178_vm2, %v7862_v22 }
 0x8d5   : > { %5886 = vmatprep.subr.mxu0 %v7045_v1 }
 0x8d7   : > { %v7875_v28 = vpop.permute.xlu0 %2130 }
 0x994   : > { %v2035_v24 = vpop.f32.mrb[12].mxu1 }
 0x995   : > { %v2036_v25 = vadd.f32 %v5529_v23, %v2035_v24  ;;  %v5854_v26 = vpop.f32.mrb[13].mxu1 }
 0x997   : > { %2123 = vrot.lane.b32.xlu0 %v2036_v25, %s8383_s12  ;;  %2119 = vrot.lane.b32.xlu1 %v2036_v25, %s7047_s6 }
 0x998   : > { %5869 = vmatmul.mubr.msk.f32.vlgmr.msra.gmra.mrb[14].mxu1 %vm1178_vm2, %v2036_v25 }
 0x999   : > { %5872 = vmatpush3.xpose.msk.msra.mxu1 %vm1178_vm2, %v2127_v27  ;;  %5873 = vmatprep.mubr.msk.f32.mxu1 %vm7044_vm0, %v7045_v1 }
 0x99a   : > { %5881 = vmatprep.subr.mxu1 %v7045_v1 }
 0x99b   : > { %2121 = vrot.lane.b32.xlu1 %v2036_v25, %s7046_s9 }
 0xa09   : > { %v2120_v30 = vpop.permute.xlu1 %2119  ;;  %v2124_v31 = vpop.permute.xlu0 %2123 }
 0xa0a   : > { %5874 = vmatmul.mubr.msk.f32.vlgmr.msra.gmra.mrb[16].mxu1 %vm1178_vm2, %v2120_v30  ;;  %v1955_v30 = vld [vmem:[#allocation19 + $0x8] sm:$0xff] }
 0xa0b   : > { %5882 = vmatpush3.xpose.msk.msra.mxu1 %vm1178_vm2, %v7875_v28  ;;  %5883 = vmatprep.mubr.msk.f32.mxu1 %vm7044_vm0, %v7045_v1 }
 0xa0c   : > { %5891 = vmatprep.subr.mxu1 %v7045_v1 }
 0xa0d   : > { %v2122_v32 = vpop.permute.xlu1 %2121 }
 0xa0e   : > { %5879 = vmatmul.mubr.msk.f32.vlgmr.msra.gmra.mrb[12].mxu0 %vm1178_vm2, %v2122_v32  ;;  %5884 = vmatmul.mubr.msk.f32.vlgmr.msra.gmra.mrb[18].mxu1 %vm1178_vm2, %v2124_v31 }
 0xa0f   : > { %5888 = vmatprep.mubr.msk.f32.mxu0 %vm7044_vm0, %v7045_v1  ;;  %5893 = vmatprep.mubr.msk.f32.mxu1 %vm7044_vm0, %v7045_v1 }
 0xa6b   : > { %v2208_v34 = vpop.f32.mrb[14].mxu1 }
 0xa6c   : > { %v2209_v35 = vadd.f32 %v7891_v33, %v2208_v34  ;;  %v5870_v36 = vpop.f32.mrb[15].mxu1 }
 0xa6d   : > { %v1957_v36 = vld [vmem:[#allocation19 + $0x18] sm:$0xff] }
 0xa6e   : > { %v2434_v37 = vsel %vm1178_vm2, %v2209_v35, -inf }
 0xa6f   : > { %2435 = vmax.xlane.f32.xlu1 %v2434_v37 }
 0xadd   : > { %v2282_v38 = vpop.f32.mrb[16].mxu1 }
 0xade   : > { %v2283_v39 = vadd.f32 %v7891_v33, %v2282_v38  ;;  %v5875_v40 = vpop.f32.mrb[17].mxu1 }
 0xae0   : > { %v2437_v41 = vsel %vm1178_vm2, %v2283_v39, -inf }
 0xae1   : > { %v2356_v42 = vpop.f32.mrb[12].mxu0  ;;  %2438 = vmax.xlane.f32.xlu0 %v2437_v41  ;;  %v2430_v43 = vpop.f32.mrb[18].mxu1 }
 0xae2   : > { %v2357_v44 = vadd.f32 %v7891_v33, %v2356_v42  ;;  %v2431_v45 = vadd.f32 %v7891_v33, %v2430_v43  ;;  %v5880_v46 = vpop.f32.mrb[13].mxu0  ;;  %v5885_v47 = vpop.f32.mrb[19].mxu1 }
 0xae4   : > { %v2440_v48 = vsel %vm1178_vm2, %v2357_v44, -inf  ;;  %v2443_v49 = vsel %vm1178_vm2, %v2431_v45, -inf }
 0xae5   : > { %2441 = vmax.xlane.f32.xlu0 %v2440_v48  ;;  %2444 = vmax.xlane.f32.xlu1 %v2443_v49 }
 0xaf6   : > { %2554 = vrot.lane.b32.xlu1 %v2127_v27, %s8381_s16 }
 0xafb   : > { %2478 = vrot.lane.b32.xlu0 %v2115_v20, %s8381_s16 }
 0xafc   : > { %v2436_v50 = vpop.xlane.xlu1 %2435 }
 0xafd   : > { %v2446_v51 = vsub.f32 %v2209_v35, %v2436_v50  ;;  %v1956_v35 = vld [vmem:[#allocation19 + $0x10] sm:$0xff]  ;;  %v5546_v50 = vld [vmem:[#allocation20] ss:$0 sm:$0xff] }
 0xafe   : > { %v6157_v37 = vpack.c.bf16 %v1957_v36, %v1956_v35 }
 0xaff   : > { %v2450_v52 = vmul.f32 1.442695, %v2446_v51 }
 0xb01   : > { %6440 = vpow2.f32 %v2450_v52 }
 0xb0b   : > { %v6441_v53 = vpop.eup %6440 }
 0xb0c   : > { %v2458_v54 = vsel %vm1178_vm2, %v6441_v53, 0.0 }
 0xb1a   : > { %2459 = vadd.xlane.f32.xlu0 %v2458_v54 }
 0xb6e   : > { %v2439_v55 = vpop.xlane.xlu0 %2438 }
 0xb6f   : > { %v2447_v56 = vsub.f32 %v2283_v39, %v2439_v55 }
 0xb71   : > { %v2452_v57 = vmul.f32 1.442695, %v2447_v56 }
 0xb72   : > { %v2442_v10 = vpop.xlane.xlu0 %2441  ;;  %v2445_v58 = vpop.xlane.xlu1 %2444 }
 0xb73   : > { %6442 = vpow2.f32 %v2452_v57  ;;  %v2448_v59 = vsub.f32 %v2357_v44, %v2442_v10  ;;  %v2449_v61 = vsub.f32 %v2431_v45, %v2445_v58 }
 0xb75   : > { %v2454_v62 = vmul.f32 1.442695, %v2448_v59  ;;  %v2456_v63 = vmul.f32 1.442695, %v2449_v61  ;;  %v2900_v61 = vld [vmem:[#allocation22] sm:$0xff] }
 0xb76   : > { %v2479_v2 = vpop.permute.xlu0 %2478  ;;  %v2555_v3 = vpop.permute.xlu1 %2554 }
 0xb77   : > { %6444 = vpow2.f32 %v2454_v62  ;;  %5887 = vmatpush3.msra.mxu0 %v2479_v2  ;;  %5892 = vmatpush3.msra.mxu1 %v2555_v3  ;;  %v2901_v62 = vld [vmem:[#allocation22 + $0x8] sm:$0xff]  ;;  %v2902_v2 = vld [vmem:[#allocation22 + $0x10] sm:$0xff]  ;;  %v2903_v3 = vld [vmem:[#allocation22 + $0x18] sm:$0xff] }
 0xb78   : > { %6446 = vpow2.f32 %v2456_v63  ;;  %5896 = vmatprep.subr.mxu0 %v7045_v1  ;;  %5901 = vmatprep.subr.mxu1 %v7045_v1  ;;  %v6160_v63 = vpack.c.bf16 %v2901_v62, %v2900_v61 }
 0xb7d   : > { %v6443_v4 = vpop.eup %6442 }
 0xb7e   : > { %v2461_v5 = vsel %vm1178_vm2, %v6443_v4, 0.0 }
 0xb7f   : > { %2462 = vadd.xlane.f32.xlu1 %v2461_v5 }
 0xb81   : > { %v6445_v6 = vpop.eup %6444 }
 0xb82   : > { %v6447_v7 = vpop.eup %6446  ;;  %v2464_v9 = vsel %vm1178_vm2, %v6445_v6, 0.0 }
 0xb83   : > { %2465 = vadd.xlane.f32.xlu0 %v2464_v9  ;;  %v2467_v12 = vsel %vm1178_vm2, %v6447_v7, 0.0 }
 0xb84   : > { %2468 = vadd.xlane.f32.xlu1 %v2467_v12 }
 0xb95   : > { %2630 = vrot.lane.b32.xlu1 %v7862_v22, %s8381_s16 }
 0xb99   : > { %2706 = vrot.lane.b32.xlu0 %v7875_v28, %s8381_s16  ;;  %v1954_v28 = vld [vmem:[#allocation19] sm:$0xff] }
 0xb9a   : > { %v6154_v31 = vpack.c.bf16 %v1955_v30, %v1954_v28  ;;  %v3000_v28 = vld [vmem:[%s8463_s7 + $0x38] sm:$0xff] }
 0xba7   : > { %v2460_v13 = vpop.xlane.xlu0 %2459 }
 0xba8   : > { %6448 = vrcp.f32 %v2460_v13 }
 0xbb2   : > { %v6449_v14 = vpop.eup %6448 }
 0xbb3   : > { %v2474_v15 = vmul.f32 %v6449_v14, %v6441_v53 }
 0xbb5   : > { %5889 = vmatmul.mubr.msk.f32.vlgmr.msra.gmra.mrb[14].mxu0 %vm1178_vm2, %v2474_v15 }
 0xbb6   : > { %5898 = vmatprep.mubr.msk.f32.mxu0 %vm7044_vm0, %v7045_v1 }
 0xc0c   : > { %v2463_v16 = vpop.xlane.xlu1 %2462 }
 0xc0d   : > { %6450 = vrcp.f32 %v2463_v16 }
 0xc10   : > { %v2466_v18 = vpop.xlane.xlu0 %2465 }
 0xc11   : > { %6452 = vrcp.f32 %v2466_v18  ;;  %v2469_v19 = vpop.xlane.xlu1 %2468  ;;  %v2993_v18 = vld [vmem:[%s8463_s7] sm:$0xff] }
 0xc12   : > { %6454 = vrcp.f32 %v2469_v19  ;;  %v2994_v19 = vld [vmem:[%s8463_s7 + $0x8] sm:$0xff] }
 0xc14   : > { %v2707_v23 = vpop.permute.xlu0 %2706 }
 0xc15   : > { %v2631_v20 = vpop.permute.xlu1 %2630 }
 0xc16   : > { %5897 = vmatpush3.msra.mxu0 %v2631_v20  ;;  %v6166_v20 = vpack.c.bf16 %v2994_v19, %v2993_v18  ;;  %v5565_v19 = vld [vmem:[#allocation8 + $0x1] ss:$0 sm:$0xff] }
 0xc17   : > { %v6451_v21 = vpop.eup %6450  ;;  %6153 = vmatprep.subr.bf16.mxu0 %v7043_v0 }
 0xc18   : > { %v2475_v22 = vmul.f32 %v6451_v21, %v6443_v4  ;;  %v6163_v4 = vpack.c.bf16 %v2903_v3, %v2902_v2  ;;  %v2995_v21 = vld [vmem:[%s8463_s7 + $0x10] sm:$0xff]  ;;  %v3082_v3 = vld [vmem:[%s8464_s14] sm:$0x3] }
 0xc1a   : > { %5894 = vmatmul.mubr.msk.f32.vlgmr.msra.gmra.mrb[20].mxu1 %vm1178_vm2, %v2475_v22  ;;  %v2996_v22 = vld [vmem:[%s8463_s7 + $0x18] sm:$0xff] }
 0xc1b   : > { %v6453_v24 = vpop.eup %6452  ;;  %5902 = vmatpush3.msra.mxu1 %v2707_v23  ;;  %5903 = vmatprep.mubr.msk.f32.mxu1 %vm7044_vm0, %v7045_v1  ;;  %v6169_v23 = vpack.c.bf16 %v2996_v22, %v2995_v21 }
 0xc1c   : > { %v6455_v25 = vpop.eup %6454  ;;  %v2476_v26 = vmul.f32 %v6453_v24, %v6445_v6  ;;  %6159 = vmatprep.subr.bf16.mxu1 %v7043_v0  ;;  %v2997_v24 = vld [vmem:[%s8463_s7 + $0x20] sm:$0xff] }
 0xc1d   : > { %v2477_v27 = vmul.f32 %v6455_v25, %v6447_v7  ;;  %v1959_v7 = vld [vmem:[%s8462_s19] sm:$0x3]  ;;  %v2998_v25 = vld [vmem:[%s8463_s7 + $0x28] sm:$0xff] }
 0xc1e   : > { %5899 = vmatmul.mubr.msk.f32.vlgmr.msra.gmra.mrb[16].mxu0 %vm1178_vm2, %v2476_v26  ;;  %v2893_v9 = vrot.slane %v1959_v7, %v7842_v8  ;;  %v2898_v14 = vrot.slane %v1959_v7, %v7847_v11  ;;  %v6172_v26 = vpack.c.bf16 %v2998_v25, %v2997_v24  ;;  %v5556_v7 = vld [vmem:[%s8457_s21 + $0x20] sm:$0xff] }
 0xc1f   : > { %5904 = vmatmul.mubr.msk.f32.vlgmr.msra.gmra.mrb[22].mxu1 %vm1178_vm2, %v2477_v27  ;;  %5914 = vmatprep.mubr.msk.f32.mxu0 %vm7044_vm0, %v7045_v1  ;;  %v2999_v27 = vld [vmem:[%s8463_s7 + $0x30] sm:$0xff] }
 0xc20   : > { %5925 = vmatprep.mubr.msk.f32.mxu1 %vm7044_vm0, %v7045_v1  ;;  %6155 = vmatpush3.bf16.msra.mxu0 %v6154_v31  ;;  %v6175_v30 = vpack.c.bf16 %v3000_v28, %v2999_v27  ;;  %v5548_v31 = vld [vmem:[#allocation23] ss:$0 sm:$0xff] }
 0xc21   : > { %6156 = vmatprep.subr.bf16.mxu0 %v7043_v0  ;;  %6161 = vmatpush3.bf16.msra.mxu1 %v6160_v63 }
 0xc22   : > { %6162 = vmatprep.subr.bf16.mxu1 %v7043_v0 }
 0xc24   : > { %6158 = vmatpush3.bf16.msra.mxu0 %v6157_v37 }
 0xc25   : > { %6165 = vmatprep.subr.bf16.mxu0 %v7043_v0  ;;  %6164 = vmatpush3.bf16.msra.mxu1 %v6163_v4  ;;  %v3100_v4 = vrot.slane %v3082_v3, %v7842_v8 }
 0xc26   : > { %6177 = vmatprep.subr.bf16.mxu1 %v7043_v0 }
 0xc88   : > { %v2550_v32 = vpop.f32.mrb[14].mxu0 }
 0xc89   : > { %v5890_v34 = vpop.f32.mrb[15].mxu0 }
 0xced   : > { %v2626_v38 = vpop.f32.mrb[20].mxu1 }
 0xcee   : > { %2783 = vrot.lane.b32.xlu1 %v2626_v38, %s8379_s1  ;;  %v5895_v39 = vpop.f32.mrb[21].mxu1  ;;  %s8469_s1 = smov 104  }
 0xcf1   : > { %v2702_v40 = vpop.f32.mrb[16].mxu0 }
 0xcf2   : > { %v2778_v41 = vpop.f32.mrb[22].mxu1  ;;  %2787 = vrot.lane.b32.xlu0 %v2702_v40, %s8377_s0  ;;  %v5900_v42 = vpop.f32.mrb[17].mxu0  ;;  %s8470_s0 = sld [smem:[#allocation61_spill]] }
 0xcf3   : > { %2791 = vrot.lane.b32.xlu1 %v2778_v41, %s8375_s4  ;;  %v5905_v43 = vpop.f32.mrb[23].mxu1  ;;  %s8468_s4 = smov 24  }
 0xcf8   : > { %s8265_s16 = scalar_lea.hbm %s8470_s0, %s5616_s17 }
 0xd60   : > { %v2784_v44 = vpop.permute.xlu1 %2783 }
 0xd61   : > { %v2794_v45 = vsel %vm1178_vm2, %v2550_v32, %v2784_v44 }
 0xd64   : > { %v2788_v46 = vpop.permute.xlu0 %2787 }
 0xd65   : > { %v2795_v47 = vsel %vm1836_vm3, %v2794_v45, %v2788_v46  ;;  %v2792_v48 = vpop.permute.xlu1 %2791  ;;  %v5550_v45 = vld [vmem:[#allocation25] ss:$0 sm:$0xff] }
 0xd66   : > { %v2796_v49 = vsel %vm1838_vm4, %v2795_v47, %v2792_v48 }
 0xd67   : > { %5915 = vmatmul.mubr.msk.f32.vlgmr.msra.gmra.mrb[18].mxu0 %vm1008_vm1, %v2796_v49 }
 0xd68   : > { %5944 = vmatprep.mubr.msk.f32.mxu0 %vm7044_vm0, %v7045_v1  ;;  %6167 = vmatpush3.bf16.msra.mxu0 %v6166_v20 }
 0xd69   : > { %6168 = vmatprep.subr.bf16.mxu0 %v7043_v0 }
 0xd6c   : > { %6170 = vmatpush3.bf16.msra.mxu0 %v6169_v23  ;;  %v5567_v23 = vld [vmem:[#allocation10 + $0x1] ss:$0 sm:$0xff] }
 0xd6d   : > { %6171 = vmatprep.subr.bf16.mxu0 %v7043_v0 }
 0xd70   : > { %6173 = vmatpush3.bf16.msra.mxu0 %v6172_v26 }
 0xd71   : > { %6174 = vmatprep.subr.bf16.mxu0 %v7043_v0 }
 0xd74   : > { %6176 = vmatpush3.bf16.msra.mxu0 %v6175_v30 }
 0xd75   : > { %5969 = vmatprep.subr.mxu0 %v7045_v1 }
 0xe3a   : > { %v2872_v51 = vpop.f32.mrb[18].mxu0 }
 0xe3b   : > { %v2873_v52 = vadd.f32 %v5546_v50, %v2872_v51  ;;  %v5916_v53 = vpop.f32.mrb[19].mxu0 }
 0xe3d   : > { %v2876_v54 = vadd.f32 %v2873_v52, %v7851_v17 }
 0xe3f   : > { %v2877_v55 = vsel %vm1008_vm1, %v2876_v54, 0.0 }
 0xe40   : > { %2878 = vadd.xlane.f32.xlu0 %v2877_v55 }
 0xecd   : > { %v2879_v56 = vpop.xlane.xlu0 %2878 }
 0xece   : > { %v2880_v57 = vmul.f32 0.03125, %v2879_v56  ;;  %v5552_v56 = vld [vmem:[%s8456_s3 + $0x20] sm:$0xff] }
 0xed0   : > { %v2881_v10 = vsub.f32 %v2876_v54, %v2880_v57  ;;  %v5553_v57 = vld [vmem:[%s8456_s3 + $0x28] sm:$0xff] }
 0xed2   : > { %v2882_v58 = vmul.f32 %v2881_v10, %v2881_v10 }
 0xed4   : > { %v2883_v59 = vsel %vm1008_vm1, %v2882_v58, 0.0  ;;  %v5554_v58 = vld [vmem:[%s8456_s3 + $0x30] sm:$0xff] }
 0xed5   : > { %2884 = vadd.xlane.f32.xlu1 %v2883_v59  ;;  %v5555_v59 = vld [vmem:[%s8456_s3 + $0x38] sm:$0xff] }
 0xed6   : > { %v6181_v61 = vpack.c.bf16 %v5555_v59, %v5554_v58 }
 0xf62   : > { %v2885_v17 = vpop.xlane.xlu1 %2884 }
 0xf63   : > { %v2886_v5 = vmul.f32 0.03125, %v2885_v17 }
 0xf65   : > { %v2887_v6 = vadd.f32 1e-12, %v2886_v5 }
 0xf67   : > { %6456 = vrsqrt.f32 %v2887_v6  ;;  %v3105_v6 = vrot.slane %v3082_v3, %v7847_v11 }
 0xf71   : > { %v6457_v12 = vpop.eup %6456 }
 0xf72   : > { %v2889_v13 = vmul.f32 %v6457_v12, %v2881_v10  ;;  %v6178_v10 = vpack.c.bf16 %v5553_v57, %v5552_v56 }
 0xf74   : > { %v2894_v15 = vmul.f32 %v2893_v9, %v2889_v13  ;;  %v5557_v9 = vld [vmem:[%s8457_s21 + $0x28] sm:$0xff] }
 0xf75   : > { %v6184_v13 = vpack.c.bf16 %v5557_v9, %v5556_v7 }
 0xf76   : > { %v2899_v16 = vadd.f32 %v2898_v14, %v2894_v15  ;;  %v5558_v15 = vld [vmem:[%s8457_s21 + $0x30] sm:$0xff] }
 0xf78   : > { %5926 = vmatmul.mubr.msk.f32.vlgmr.msra.gmra.mrb[24].mxu1 %vm1008_vm1, %v2899_v16 }
 0xf79   : > { %5955 = vmatprep.mubr.msk.f32.mxu1 %vm7044_vm0, %v7045_v1  ;;  %6179 = vmatpush3.bf16.msra.mxu1 %v6178_v10 }
 0xf7a   : > { %6180 = vmatprep.subr.bf16.mxu1 %v7043_v0 }
 0xf7d   : > { %6182 = vmatpush3.bf16.msra.mxu1 %v6181_v61 }
 0xf7e   : > { %6183 = vmatprep.subr.bf16.mxu1 %v7043_v0 }
0x104b   : > { %v2980_v32 = vpop.f32.mrb[24].mxu1 }
0x104c   : > { %v2981_v34 = vadd.f32 %v5548_v31, %v2980_v32  ;;  %v5927_v35 = vpop.f32.mrb[25].mxu1 }
0x104e   : > { %v2985_v36 = vmul.f32 0.044715, %v2981_v34  ;;  %v2984_v42 = vmul.f32 0.5, %v2981_v34 }
0x1050   : > { %v2986_v37 = vmul.f32 %v2985_v36, %v2981_v34 }
0x1052   : > { %v2987_v38 = vmul.f32 %v2986_v37, %v2981_v34 }
0x1054   : > { %v2988_v39 = vadd.f32 %v2987_v38, %v2981_v34 }
0x1056   : > { %v2989_v40 = vmul.f32 0.7978846, %v2988_v39 }
0x1058   : > { %6458 = vtanh.f32 %v2989_v40 }
0x1062   : > { %v6459_v41 = vpop.eup %6458 }
0x1063   : > { %v2991_v43 = vadd.f32 1.0, %v6459_v41 }
0x1065   : > { %v2992_v44 = vmul.f32 %v2991_v43, %v2984_v42 }
0x1067   : > { %5945 = vmatmul.mubr.msk.f32.vlgmr.msra.gmra.mrb[20].mxu0 %vm3008_vm5, %v2992_v44 }
0x1068   : > { %5971 = vmatprep.mubr.msk.f32.mxu0 %vm7044_vm0, %v7045_v1 }
0x113a   : > { %v3078_v46 = vpop.f32.mrb[20].mxu0 }
0x113b   : > { %v3079_v47 = vadd.f32 %v5550_v45, %v3078_v46  ;;  %v5946_v48 = vpop.f32.mrb[21].mxu0 }
0x113d   : > { %v3083_v49 = vadd.f32 %v3079_v47, %v2899_v16  ;;  %v5559_v16 = vld [vmem:[%s8457_s21 + $0x38] sm:$0xff] }
0x113e   : > { %v6187_v18 = vpack.c.bf16 %v5559_v16, %v5558_v15 }
0x113f   : > { %v3084_v50 = vsel %vm1008_vm1, %v3083_v49, 0.0 }
0x1140   : > { %3085 = vadd.xlane.f32.xlu0 %v3084_v50 }
0x11cd   : > { %v3086_v51 = vpop.xlane.xlu0 %3085 }
0x11ce   : > { %v3087_v52 = vmul.f32 0.03125, %v3086_v51 }
0x11d0   : > { %v3088_v53 = vsub.f32 %v3083_v49, %v3087_v52 }
0x11d2   : > { %v3089_v54 = vmul.f32 %v3088_v53, %v3088_v53 }
0x11d4   : > { %v3090_v55 = vsel %vm1008_vm1, %v3089_v54, 0.0 }
0x11d5   : > { %3091 = vadd.xlane.f32.xlu0 %v3090_v55 }
0x1262   : > { %v3092_v62 = vpop.xlane.xlu0 %3091 }
0x1263   : > { %v3093_v63 = vmul.f32 0.03125, %v3092_v62 }
0x1265   : > { %v3094_v2 = vadd.f32 1e-12, %v3093_v63 }
0x1267   : > { %6460 = vrsqrt.f32 %v3094_v2 }
0x1271   : > { %v6461_v17 = vpop.eup %6460 }
0x1272   : > { %v3096_v5 = vmul.f32 %v6461_v17, %v3088_v53 }
0x1274   : > { %v3101_v12 = vmul.f32 %v3100_v4, %v3096_v5 }
0x1276   : > { %v8009_v14 = vadd.f32 %v3105_v6, %v3101_v12 }
0x1278   : > { %5956 = vmatmul.mubr.msk.f32.vlgmr.msra.gmra.mrb[26].mxu1 %vm1008_vm1, %v8009_v14 }
0x1279   : > { %6185 = vmatpush3.bf16.msra.mxu1 %v6184_v13  ;;  %5966 = vmatprep.mubr.msk.f32.mxu1 %vm7044_vm0, %v7045_v1 }
0x127a   : > { %6186 = vmatprep.subr.bf16.mxu1 %v7043_v0 }
0x127d   : > { %6188 = vmatpush3.bf16.msra.mxu1 %v6187_v18 }
0x127e   : > { %5974 = vmatprep.subr.mxu1 %v7045_v1 }
0x1280   : > { %5967 = vmatmul.mubr.msk.f32.vlgmr.msra.gmra.mrb[28].mxu1 %vm1008_vm1, %v8009_v14 }
0x1281   : > { %5976 = vmatprep.mubr.msk.f32.mxu1 %vm7044_vm0, %v7045_v1 }
0x134b   : > { %v3205_v20 = vpop.f32.mrb[26].mxu1 }
0x134c   : > { %v3206_v21 = vadd.f32 %v5565_v19, %v3205_v20  ;;  %v5957_v22 = vpop.f32.mrb[27].mxu1 }
0x134e   : > { %3286 = vrot.lane.b32.xlu0 %v3206_v21, %s7047_s6 }
0x1352   : > { %3288 = vrot.lane.b32.xlu0 %v3206_v21, %s7046_s9 }
0x1353   : > { %v3281_v24 = vpop.f32.mrb[28].mxu1 }
0x1354   : > { %v3282_v25 = vadd.f32 %v5567_v23, %v3281_v24  ;;  %v5968_v26 = vpop.f32.mrb[29].mxu1 }
0x1356   : > { %3293 = vrot.lane.b32.xlu1 %v3282_v25, %s7047_s6  ;;  %5970 = vmatpush3.xpose.msk.msra.mxu0 %vm1178_vm2, %v3282_v25 }
0x1357   : > { %5979 = vmatprep.subr.mxu0 %v7045_v1 }
0x1359   : > { %5972 = vmatmul.mubr.msk.f32.vlgmr.msra.gmra.mrb[22].mxu0 %vm1178_vm2, %v3206_v21 }
0x135a   : > { %3295 = vrot.lane.b32.xlu1 %v3282_v25, %s7046_s9  ;;  %5981 = vmatprep.mubr.msk.f32.mxu0 %vm7044_vm0, %v7045_v1 }
0x135e   : > { %3297 = vrot.lane.b32.xlu1 %v3282_v25, %s8383_s12 }
0x1362   : > { %3290 = vrot.lane.b32.xlu1 %v3206_v21, %s8383_s12 }
0x13c0   : > { %v3287_v28 = vpop.permute.xlu0 %3286 }
0x13c4   : > { %v3289_v31 = vpop.permute.xlu0 %3288 }
0x13c8   : > { %v8038_v27 = vpop.permute.xlu1 %3293 }
0x13c9   : > { %5975 = vmatpush3.xpose.msk.msra.mxu1 %vm1178_vm2, %v8038_v27 }
0x13ca   : > { %5984 = vmatprep.subr.mxu1 %v7045_v1 }
0x13cc   : > { %5977 = vmatmul.mubr.msk.f32.vlgmr.msra.gmra.mrb[30].mxu1 %vm1178_vm2, %v3287_v28  ;;  %v8044_v30 = vpop.permute.xlu1 %3295 }
0x13cd   : > { %5980 = vmatpush3.xpose.msk.msra.mxu0 %vm1178_vm2, %v8044_v30  ;;  %5986 = vmatprep.mubr.msk.f32.mxu1 %vm7044_vm0, %v7045_v1 }
0x13ce   : > { %5989 = vmatprep.subr.mxu0 %v7045_v1 }
0x13d0   : > { %v3298_v32 = vpop.permute.xlu1 %3297  ;;  %5982 = vmatmul.mubr.msk.f32.vlgmr.msra.gmra.mrb[24].mxu0 %vm1178_vm2, %v3289_v31  ;;  %v5560_v31 = vld [vmem:[%s8460_s2 + $0x20] sm:$0xff] }
0x13d1   : > { %5985 = vmatpush3.xpose.msk.msra.mxu1 %vm1178_vm2, %v3298_v32  ;;  %5991 = vmatprep.mubr.msk.f32.mxu0 %vm7044_vm0, %v7045_v1 }
0x13d2   : > { %5994 = vmatprep.subr.mxu1 %v7045_v1 }
0x13d4   : > { %v3291_v34 = vpop.permute.xlu1 %3290 }
0x13d5   : > { %5987 = vmatmul.mubr.msk.f32.vlgmr.msra.gmra.mrb[32].mxu1 %vm1178_vm2, %v3291_v34 }
0x13d6   : > { %5996 = vmatprep.mubr.msk.f32.mxu1 %vm7044_vm0, %v7045_v1 }
0x142c   : > { %v3369_v35 = vpop.f32.mrb[22].mxu0 }
0x142d   : > { %v3370_v36 = vadd.f32 %v7767_v29, %v3369_v35  ;;  %v5973_v37 = vpop.f32.mrb[23].mxu0  ;;  %v5562_v35 = vld [vmem:[%s8460_s2 + $0x30] sm:$0xff] }
0x142f   : > { %v3595_v38 = vsel %vm1178_vm2, %v3370_v36, -inf }
0x1430   : > { %3596 = vmax.xlane.f32.xlu0 %v3595_v38 }
0x149f   : > { %v3443_v39 = vpop.f32.mrb[30].mxu1 }
0x14a0   : > { %v3444_v40 = vadd.f32 %v7767_v29, %v3443_v39  ;;  %v5978_v41 = vpop.f32.mrb[31].mxu1 }
0x14a2   : > { %v3598_v42 = vsel %vm1178_vm2, %v3444_v40, -inf }
0x14a3   : > { %v3517_v43 = vpop.f32.mrb[24].mxu0  ;;  %3599 = vmax.xlane.f32.xlu1 %v3598_v42 }
0x14a4   : > { %v3518_v44 = vadd.f32 %v7767_v29, %v3517_v43  ;;  %v5983_v45 = vpop.f32.mrb[25].mxu0 }
0x14a6   : > { %v3601_v46 = vsel %vm1178_vm2, %v3518_v44, -inf }
0x14a7   : > { %3602 = vmax.xlane.f32.xlu0 %v3601_v46 }
0x14a8   : > { %v3591_v47 = vpop.f32.mrb[32].mxu1 }
0x14a9   : > { %v3592_v48 = vadd.f32 %v7767_v29, %v3591_v47  ;;  %v5988_v49 = vpop.f32.mrb[33].mxu1 }
0x14ab   : > { %v3604_v50 = vsel %vm1178_vm2, %v3592_v48, -inf }
0x14ac   : > { %3605 = vmax.xlane.f32.xlu0 %v3604_v50  ;;  %v5581_v50 = vld [vmem:[#allocation11 + $0x1] ss:$0 sm:$0xff] }
0x14b4   : > { %3639 = vrot.lane.b32.xlu1 %v3282_v25, %s8465_s20 }
0x14bd   : > { %v3597_v51 = vpop.xlane.xlu0 %3596 }
0x14be   : > { %v3607_v52 = vsub.f32 %v3370_v36, %v3597_v51  ;;  %v5563_v36 = vld [vmem:[%s8460_s2 + $0x38] sm:$0xff] }
0x14bf   : > { %v6193_v37 = vpack.c.bf16 %v5563_v36, %v5562_v35 }
0x14c0   : > { %v3611_v53 = vmul.f32 1.442695, %v3607_v52 }
0x14c2   : > { %6462 = vpow2.f32 %v3611_v53 }
0x14cc   : > { %v6463_v54 = vpop.eup %6462 }
0x14cd   : > { %v3619_v55 = vsel %vm1178_vm2, %v6463_v54, 0.0 }
0x14d8   : > { %3620 = vadd.xlane.f32.xlu1 %v3619_v55 }
0x1530   : > { %v3600_v56 = vpop.xlane.xlu1 %3599 }
0x1531   : > { %v3608_v57 = vsub.f32 %v3444_v40, %v3600_v56 }
0x1533   : > { %v3613_v10 = vmul.f32 1.442695, %v3608_v57 }
0x1534   : > { %v3603_v58 = vpop.xlane.xlu0 %3602  ;;  %v3640_v59 = vpop.permute.xlu1 %3639 }
0x1535   : > { %6464 = vpow2.f32 %v3613_v10  ;;  %v3609_v29 = vsub.f32 %v3518_v44, %v3603_v58  ;;  %5990 = vmatpush3.msra.mxu0 %v3640_v59 }
0x1536   : > { %5999 = vmatprep.subr.mxu0 %v7045_v1 }
0x1537   : > { %v3615_v61 = vmul.f32 1.442695, %v3609_v29  ;;  %v4069_v29 = vld [vmem:[#allocation16 + $0x20] sm:$0xff] }
0x1539   : > { %6466 = vpow2.f32 %v3615_v61  ;;  %v3606_v62 = vpop.xlane.xlu0 %3605  ;;  %v4070_v61 = vld [vmem:[#allocation16 + $0x28] sm:$0xff] }
0x153a   : > { %v3610_v63 = vsub.f32 %v3592_v48, %v3606_v62  ;;  %v6202_v62 = vpack.c.bf16 %v4070_v61, %v4069_v29 }
0x153c   : > { %v3617_v2 = vmul.f32 1.442695, %v3610_v63  ;;  %v4071_v63 = vld [vmem:[#allocation16 + $0x30] sm:$0xff] }
0x153e   : > { %6468 = vpow2.f32 %v3617_v2  ;;  %v4072_v2 = vld [vmem:[#allocation16 + $0x38] sm:$0xff] }
0x153f   : > { %v6465_v3 = vpop.eup %6464 }
0x1540   : > { %v3622_v4 = vsel %vm1178_vm2, %v6465_v3, 0.0 }
0x1541   : > { %3623 = vadd.xlane.f32.xlu0 %v3622_v4  ;;  %v4063_v4 = vld [vmem:[#allocation13 + $0x28] sm:$0xff] }
0x1543   : > { %v6467_v17 = vpop.eup %6466 }
0x1544   : > { %v3625_v5 = vsel %vm1178_vm2, %v6467_v17, 0.0 }
0x1545   : > { %3626 = vadd.xlane.f32.xlu1 %v3625_v5  ;;  %v4064_v5 = vld [vmem:[#allocation13 + $0x30] sm:$0xff] }
0x1548   : > { %v6469_v6 = vpop.eup %6468 }
0x1549   : > { %v3628_v7 = vsel %vm1178_vm2, %v6469_v6, 0.0 }
0x154a   : > { %3629 = vadd.xlane.f32.xlu0 %v3628_v7 }
0x1556   : > { %3791 = vrot.lane.b32.xlu1 %v8044_v30, %s8465_s20 }
0x155a   : > { %3867 = vrot.lane.b32.xlu1 %v3298_v32, %s8465_s20  ;;  %v5561_v32 = vld [vmem:[%s8460_s2 + $0x28] sm:$0xff] }
0x155b   : > { %v6190_v34 = vpack.c.bf16 %v5561_v32, %v5560_v31 }
0x1560   : > { %3715 = vrot.lane.b32.xlu0 %v8038_v27, %s8465_s20 }
0x1565   : > { %v3621_v9 = vpop.xlane.xlu1 %3620 }
0x1566   : > { %6470 = vrcp.f32 %v3621_v9 }
0x1570   : > { %v6471_v12 = vpop.eup %6470 }
0x1571   : > { %v3635_v13 = vmul.f32 %v6471_v12, %v6463_v54 }
0x1573   : > { %5992 = vmatmul.mubr.msk.f32.vlgmr.msra.gmra.mrb[26].mxu0 %vm1178_vm2, %v3635_v13 }
0x1574   : > { %6001 = vmatprep.mubr.msk.f32.mxu0 %vm7044_vm0, %v7045_v1 }
0x15ce   : > { %v3624_v15 = vpop.xlane.xlu0 %3623 }
0x15cf   : > { %6472 = vrcp.f32 %v3624_v15 }
0x15d2   : > { %v3627_v16 = vpop.xlane.xlu1 %3626 }
0x15d3   : > { %6474 = vrcp.f32 %v3627_v16 }
0x15d6   : > { %v3792_v18 = vpop.permute.xlu1 %3791 }
0x15d7   : > { %6000 = vmatpush3.msra.mxu0 %v3792_v18  ;;  %v3630_v19 = vpop.xlane.xlu0 %3629 }
0x15d8   : > { %6476 = vrcp.f32 %v3630_v19  ;;  %6189 = vmatprep.subr.bf16.mxu0 %v7043_v0 }
0x15d9   : > { %v6473_v20 = vpop.eup %6472 }
0x15da   : > { %v3636_v21 = vmul.f32 %v6473_v20, %v6465_v3  ;;  %v3868_v24 = vpop.permute.xlu1 %3867  ;;  %v6205_v3 = vpack.c.bf16 %v4072_v2, %v4071_v63 }
0x15db   : > { %v3716_v22 = vpop.permute.xlu0 %3715 }
0x15dc   : > { %5995 = vmatpush3.msra.mxu1 %v3716_v22  ;;  %v5586_v22 = vld [vmem:[#allocation17 + $0x1] ss:$0 sm:$0xff] }
0x15dd   : > { %v6475_v23 = vpop.eup %6474  ;;  %5997 = vmatmul.mubr.msk.f32.vlgmr.msra.gmra.mrb[34].mxu1 %vm1178_vm2, %v3636_v21  ;;  %6004 = vmatprep.subr.mxu1 %v7045_v1 }
0x15de   : > { %v3637_v25 = vmul.f32 %v6475_v23, %v6467_v17  ;;  %6005 = vmatpush3.msra.mxu1 %v3868_v24  ;;  %6006 = vmatprep.mubr.msk.f32.mxu1 %vm7044_vm0, %v7045_v1 }
0x15df   : > { %6195 = vmatprep.subr.bf16.mxu1 %v7043_v0 }
0x15e0   : > { %6002 = vmatmul.mubr.msk.f32.vlgmr.msra.gmra.mrb[28].mxu0 %vm1178_vm2, %v3637_v25 }
0x15e1   : > { %6017 = vmatprep.mubr.msk.f32.mxu0 %vm7044_vm0, %v7045_v1  ;;  %6191 = vmatpush3.bf16.msra.mxu0 %v6190_v34 }
0x15e2   : > { %v6477_v26 = vpop.eup %6476  ;;  %6192 = vmatprep.subr.bf16.mxu0 %v7043_v0 }
0x15e3   : > { %v3638_v27 = vmul.f32 %v6477_v26, %v6469_v6  ;;  %v4065_v6 = vld [vmem:[#allocation13 + $0x38] sm:$0xff] }
0x15e4   : > { %v6199_v7 = vpack.c.bf16 %v4065_v6, %v4064_v5 }
0x15e5   : > { %6007 = vmatmul.mubr.msk.f32.vlgmr.msra.gmra.mrb[36].mxu1 %vm1178_vm2, %v3638_v27  ;;  %6194 = vmatpush3.bf16.msra.mxu0 %v6193_v37  ;;  %v5584_v27 = vld [vmem:[#allocation14 + $0x1] ss:$0 sm:$0xff] }
0x15e6   : > { %6028 = vmatprep.mubr.msk.f32.mxu1 %vm7044_vm0, %v7045_v1  ;;  %6201 = vmatprep.subr.bf16.mxu0 %v7043_v0 }
0x1646   : > { %v3711_v28 = vpop.f32.mrb[26].mxu0 }
0x1647   : > { %v5993_v30 = vpop.f32.mrb[27].mxu0 }
0x16b0   : > { %v3787_v38 = vpop.f32.mrb[34].mxu1 }
0x16b1   : > { %3944 = vrot.lane.b32.xlu0 %v3787_v38, %s8466_s10  ;;  %v5998_v39 = vpop.f32.mrb[35].mxu1 }
0x16b3   : > { %v3863_v40 = vpop.f32.mrb[28].mxu0 }
0x16b4   : > { %3948 = vrot.lane.b32.xlu1 %v3863_v40, %s8467_s24  ;;  %v6003_v41 = vpop.f32.mrb[29].mxu0 }
0x16b8   : > { %v3939_v42 = vpop.f32.mrb[36].mxu1 }
0x16b9   : > { %3952 = vrot.lane.b32.xlu0 %v3939_v42, %s8468_s4  ;;  %v6008_v43 = vpop.f32.mrb[37].mxu1 }
0x1723   : > { %v3945_v44 = vpop.permute.xlu0 %3944 }
0x1724   : > { %v3955_v46 = vsel %vm1178_vm2, %v3711_v28, %v3945_v44 }
0x1726   : > { %v3949_v45 = vpop.permute.xlu1 %3948 }
0x1727   : > { %v3956_v47 = vsel %vm1836_vm3, %v3955_v46, %v3949_v45 }
0x172b   : > { %v3953_v48 = vpop.permute.xlu0 %3952 }
0x172c   : > { %v3957_v49 = vsel %vm1838_vm4, %v3956_v47, %v3953_v48 }
0x172d   : > { %6018 = vmatmul.mubr.msk.f32.vlgmr.msra.gmra.mrb[30].mxu0 %vm1008_vm1, %v3957_v49 }
0x172e   : > { %6039 = vmatprep.mubr.msk.f32.mxu0 %vm7044_vm0, %v7045_v1  ;;  %6203 = vmatpush3.bf16.msra.mxu0 %v6202_v62 }
0x172f   : > { %6204 = vmatprep.subr.bf16.mxu0 %v7043_v0 }
0x1732   : > { %6206 = vmatpush3.bf16.msra.mxu0 %v6205_v3 }
0x1733   : > { %6052 = vmatprep.subr.mxu0 %v7045_v1 }
0x1735   : > { %6040 = vmatmul.mubr.msk.f32.vlgmr.msra.gmra.mrb[32].mxu0 %vm1008_vm1, %v7834_v60  ;;  %v5564_v60 = vld [vmem:[%s8461_s8 + $0x2] sm:$0x3] }
0x1736   : > { %6054 = vmatprep.mubr.msk.f32.mxu0 %vm7044_vm0, %v7045_v1  ;;  %v4054_v15 = vrot.slane %v5564_v60, %v7842_v8  ;;  %v4059_v19 = vrot.slane %v5564_v60, %v7847_v11 }
0x1800   : > { %v4033_v51 = vpop.f32.mrb[30].mxu0 }
0x1801   : > { %v4034_v52 = vadd.f32 %v5581_v50, %v4033_v51  ;;  %v6019_v53 = vpop.f32.mrb[31].mxu0 }
0x1803   : > { %v4037_v54 = vadd.f32 %v4034_v52, %v8009_v14  ;;  %v4062_v14 = vld [vmem:[#allocation13 + $0x20] sm:$0xff] }
0x1804   : > { %v6196_v17 = vpack.c.bf16 %v4063_v4, %v4062_v14 }
0x1805   : > { %v4038_v55 = vsel %vm1008_vm1, %v4037_v54, 0.0 }
0x1806   : > { %4039 = vadd.xlane.f32.xlu1 %v4038_v55  ;;  %6197 = vmatpush3.bf16.msra.mxu1 %v6196_v17 }
0x1807   : > { %6198 = vmatprep.subr.bf16.mxu1 %v7043_v0 }
0x1808   : > { %v4235_v23 = vpop.f32.mrb[32].mxu0 }
0x1809   : > { %v4236_v24 = vadd.f32 %v5586_v22, %v4235_v23  ;;  %v6041_v25 = vpop.f32.mrb[33].mxu0 }
0x180a   : > { %6200 = vmatpush3.bf16.msra.mxu1 %v6199_v7 }
0x180b   : > { %6042 = vmatprep.subr.mxu1 %v7045_v1 }
0x1817   : > { %4249 = vrot.lane.b32.xlu1 %v4236_v24, %s7046_s9 }
0x1893   : > { %v4040_v56 = vpop.xlane.xlu1 %4039 }
0x1894   : > { %v4041_v57 = vmul.f32 0.03125, %v4040_v56 }
0x1896   : > { %v4042_v10 = vsub.f32 %v4037_v54, %v4041_v57 }
0x1897   : > { %v8143_v26 = vpop.permute.xlu1 %4249 }
0x1898   : > { %v4043_v58 = vmul.f32 %v4042_v10, %v4042_v10  ;;  %6053 = vmatpush3.xpose.msk.msra.mxu0 %vm1178_vm2, %v8143_v26 }
0x1899   : > { %6062 = vmatprep.subr.mxu0 %v7045_v1 }
0x189a   : > { %v4044_v59 = vsel %vm1008_vm1, %v4043_v58, 0.0 }
0x189b   : > { %4045 = vadd.xlane.f32.xlu0 %v4044_v59 }
0x18b1   : > { %4247 = vrot.lane.b32.xlu0 %v4236_v24, %s7047_s6 }
0x18b5   : > { %4251 = vrot.lane.b32.xlu0 %v4236_v24, %s8469_s1 }
0x1928   : > { %v4046_v9 = vpop.xlane.xlu0 %4045 }
0x1929   : > { %v4047_v12 = vmul.f32 0.03125, %v4046_v9 }
0x192b   : > { %v4048_v13 = vadd.f32 1e-12, %v4047_v12 }
0x192c   : > { %v4248_v32 = vpop.permute.xlu0 %4247 }
0x192d   : > { %6478 = vrsqrt.f32 %v4048_v13 }
0x1930   : > { %v8156_v34 = vpop.permute.xlu0 %4251 }
0x1937   : > { %v6479_v16 = vpop.eup %6478 }
0x1938   : > { %v4050_v18 = vmul.f32 %v6479_v16, %v4042_v10 }
0x193a   : > { %v4055_v20 = vmul.f32 %v4054_v15, %v4050_v18 }
0x193c   : > { %v8132_v21 = vadd.f32 %v4059_v19, %v4055_v20 }
0x193e   : > { %6029 = vmatmul.mubr.msk.f32.vlgmr.msra.gmra.mrb[38].mxu1 %vm1008_vm1, %v8132_v21 }
0x193f   : > { %6044 = vmatprep.mubr.msk.f32.mxu1 %vm7044_vm0, %v7045_v1  ;;  %6043 = vmatpush3.xpose.msk.msra.mxu1 %vm1178_vm2, %v4236_v24 }
0x1940   : > { %6047 = vmatprep.subr.mxu1 %v7045_v1 }
0x1a11   : > { %v4159_v28 = vpop.f32.mrb[38].mxu1 }
0x1a12   : > { %v4160_v30 = vadd.f32 %v5584_v27, %v4159_v28  ;;  %v6030_v31 = vpop.f32.mrb[39].mxu1 }
0x1a13   : > { %v4077_v31 = vld [vmem:[#allocation19 + $0x28] sm:$0xff] }
0x1a14   : > { %4244 = vrot.lane.b32.xlu0 %v4160_v30, %s8469_s1  ;;  %4240 = vrot.lane.b32.xlu1 %v4160_v30, %s7047_s6  ;;  %s978_s1 = scalar_lea.vmem [#allocation26], %s7642_s27  ;;  %s6932_s27 = sshll.u32 %s7053_s26, 4  ;;  %s6933_s27 = int_to_ptr.vmem [resolvable:$false] %s6932_s27 }
0x1a15   : > { %6045 = vmatmul.mubr.msk.f32.vlgmr.msra.gmra.mrb[40].mxu1 %vm1178_vm2, %v4160_v30 }
0x1a16   : > { %6048 = vmatpush3.xpose.msk.msra.mxu1 %vm1178_vm2, %v4248_v32  ;;  %6049 = vmatprep.mubr.msk.f32.mxu1 %vm7044_vm0, %v7045_v1 }
0x1a17   : > { %6057 = vmatprep.subr.mxu1 %v7045_v1 }
0x1a18   : > { %4242 = vrot.lane.b32.xlu1 %v4160_v30, %s7046_s9  ;;  %v4076_v30 = vld [vmem:[#allocation19 + $0x20] sm:$0xff]  ;;  %s5241_s9 = sshll.u32 %s978_s1, 4  ;;  %s8267_s9 = int_to_ptr.vmem [resolvable:$true] %s5241_s9 }
0x1a19   : > { %p6935_p5 = scmp.lt.s32.totalorder %s8267_s9, %s6933_s27 }
0x1a86   : > { %v4241_v35 = vpop.permute.xlu1 %4240  ;;  %v4245_v36 = vpop.permute.xlu0 %4244 }
0x1a87   : > { %6050 = vmatmul.mubr.msk.f32.vlgmr.msra.gmra.mrb[42].mxu1 %vm1178_vm2, %v4241_v35 }
0x1a88   : > { %6058 = vmatpush3.xpose.msk.msra.mxu1 %vm1178_vm2, %v8156_v34  ;;  %6059 = vmatprep.mubr.msk.f32.mxu1 %vm7044_vm0, %v7045_v1 }
0x1a89   : > { %6067 = vmatprep.subr.mxu1 %v7045_v1 }
0x1a8a   : > { %v4243_v37 = vpop.permute.xlu1 %4242 }
0x1a8b   : > { %6055 = vmatmul.mubr.msk.f32.vlgmr.msra.gmra.mrb[34].mxu0 %vm1178_vm2, %v4243_v37  ;;  %6060 = vmatmul.mubr.msk.f32.vlgmr.msra.gmra.mrb[44].mxu1 %vm1178_vm2, %v4245_v36  ;;  %v4078_v36 = vld [vmem:[#allocation19 + $0x30] sm:$0xff]  ;;  %v4079_v37 = vld [vmem:[#allocation19 + $0x38] sm:$0xff] }
0x1a8c   : > { %6064 = vmatprep.mubr.msk.f32.mxu0 %vm7044_vm0, %v7045_v1  ;;  %6069 = vmatprep.mubr.msk.f32.mxu1 %vm7044_vm0, %v7045_v1 }
0x1ae8   : > { %v4323_v38 = vpop.f32.mrb[40].mxu1 }
0x1ae9   : > { %v4324_v39 = vadd.f32 %v7891_v33, %v4323_v38  ;;  %v6046_v40 = vpop.f32.mrb[41].mxu1  ;;  %v6211_v38 = vpack.c.bf16 %v4079_v37, %v4078_v36 }
0x1aeb   : > { %v4549_v41 = vsel %vm1178_vm2, %v4324_v39, -inf }
0x1aec   : > { %4550 = vmax.xlane.f32.xlu1 %v4549_v41 }
0x1b5a   : > { %v4397_v42 = vpop.f32.mrb[42].mxu1 }
0x1b5b   : > { %v4398_v43 = vadd.f32 %v7891_v33, %v4397_v42  ;;  %v6051_v44 = vpop.f32.mrb[43].mxu1 }
0x1b5d   : > { %v4552_v45 = vsel %vm1178_vm2, %v4398_v43, -inf }
0x1b5e   : > { %v4471_v46 = vpop.f32.mrb[34].mxu0  ;;  %4553 = vmax.xlane.f32.xlu0 %v4552_v45  ;;  %v4545_v47 = vpop.f32.mrb[44].mxu1 }
0x1b5f   : > { %v4472_v48 = vadd.f32 %v7891_v33, %v4471_v46  ;;  %v4546_v49 = vadd.f32 %v7891_v33, %v4545_v47  ;;  %v6056_v50 = vpop.f32.mrb[35].mxu0  ;;  %v6061_v51 = vpop.f32.mrb[45].mxu1 }
0x1b60   : > { %v5600_v51 = vld [vmem:[#allocation20 + $0x1] ss:$0 sm:$0xff] }
0x1b61   : > { %v4555_v52 = vsel %vm1178_vm2, %v4472_v48, -inf  ;;  %v4558_v53 = vsel %vm1178_vm2, %v4546_v49, -inf }
0x1b62   : > { %4556 = vmax.xlane.f32.xlu0 %v4555_v52  ;;  %4559 = vmax.xlane.f32.xlu1 %v4558_v53 }
0x1b73   : > { %4669 = vrot.lane.b32.xlu1 %v4248_v32, %s8465_s20  ;;  %v6208_v32 = vpack.c.bf16 %v4077_v31, %v4076_v30 }
0x1b78   : > { %4593 = vrot.lane.b32.xlu0 %v4236_v24, %s8465_s20 }
0x1b79   : > { %v4551_v54 = vpop.xlane.xlu1 %4550 }
0x1b7a   : > { %v4561_v55 = vsub.f32 %v4324_v39, %v4551_v54 }
0x1b7c   : > { %v4565_v56 = vmul.f32 1.442695, %v4561_v55 }
0x1b7e   : > { %6480 = vpow2.f32 %v4565_v56 }
0x1b88   : > { %v6481_v57 = vpop.eup %6480 }
0x1b89   : > { %v4573_v10 = vsel %vm1178_vm2, %v6481_v57, 0.0 }
0x1b97   : > { %4574 = vadd.xlane.f32.xlu0 %v4573_v10 }
0x1beb   : > { %v4554_v33 = vpop.xlane.xlu0 %4553 }
0x1bec   : > { %v4562_v58 = vsub.f32 %v4398_v43, %v4554_v33 }
0x1bee   : > { %v4567_v59 = vmul.f32 1.442695, %v4562_v58 }
0x1bef   : > { %v4557_v29 = vpop.xlane.xlu0 %4556  ;;  %v4560_v61 = vpop.xlane.xlu1 %4559 }
0x1bf0   : > { %6482 = vpow2.f32 %v4567_v59  ;;  %v4563_v62 = vsub.f32 %v4472_v48, %v4557_v29  ;;  %v4564_v63 = vsub.f32 %v4546_v49, %v4560_v61  ;;  %v5016_v29 = vld [vmem:[#allocation22 + $0x20] sm:$0xff]  ;;  %v5017_v61 = vld [vmem:[#allocation22 + $0x28] sm:$0xff] }
0x1bf2   : > { %v4569_v2 = vmul.f32 1.442695, %v4563_v62  ;;  %v4571_v3 = vmul.f32 1.442695, %v4564_v63  ;;  %v6214_v62 = vpack.c.bf16 %v5017_v61, %v5016_v29  ;;  %v5019_v63 = vld [vmem:[#allocation22 + $0x38] sm:$0xff] }
0x1bf3   : > { %v4594_v14 = vpop.permute.xlu0 %4593  ;;  %v4670_v4 = vpop.permute.xlu1 %4669 }
0x1bf4   : > { %6484 = vpow2.f32 %v4569_v2  ;;  %6063 = vmatpush3.msra.mxu0 %v4594_v14  ;;  %6068 = vmatpush3.msra.mxu1 %v4670_v4  ;;  %v5583_v4 = vld [vmem:[%s8462_s19 + $0x2] sm:$0x3] }
0x1bf5   : > { %6486 = vpow2.f32 %v4571_v3  ;;  %6072 = vmatprep.subr.mxu0 %v7045_v1  ;;  %6077 = vmatprep.subr.mxu1 %v7045_v1 }
0x1bfa   : > { %v6483_v17 = vpop.eup %6482 }
0x1bfb   : > { %v4576_v5 = vsel %vm1178_vm2, %v6483_v17, 0.0 }
0x1bfc   : > { %4577 = vadd.xlane.f32.xlu1 %v4576_v5 }
0x1bfe   : > { %v6485_v6 = vpop.eup %6484 }
0x1bff   : > { %v6487_v7 = vpop.eup %6486  ;;  %v4579_v9 = vsel %vm1178_vm2, %v6485_v6, 0.0 }
0x1c00   : > { %4580 = vadd.xlane.f32.xlu0 %v4579_v9  ;;  %v4582_v12 = vsel %vm1178_vm2, %v6487_v7, 0.0 }
0x1c01   : > { %4583 = vadd.xlane.f32.xlu1 %v4582_v12 }
0x1c12   : > { %4745 = vrot.lane.b32.xlu1 %v8143_v26, %s8465_s20 }
0x1c16   : > { %4821 = vrot.lane.b32.xlu0 %v8156_v34, %s8465_s20 }
0x1c24   : > { %v4575_v13 = vpop.xlane.xlu0 %4574 }
0x1c25   : > { %6488 = vrcp.f32 %v4575_v13  ;;  %v5604_v13 = vld [vmem:[%s8463_s7 + $0x40] sm:$0xff] }
0x1c2f   : > { %v6489_v60 = vpop.eup %6488 }
0x1c30   : > { %v4589_v15 = vmul.f32 %v6489_v60, %v6481_v57  ;;  %v5605_v60 = vld [vmem:[%s8463_s7 + $0x48] sm:$0xff] }
0x1c32   : > { %6065 = vmatmul.mubr.msk.f32.vlgmr.msra.gmra.mrb[36].mxu0 %vm1178_vm2, %v4589_v15  ;;  %v6220_v15 = vpack.c.bf16 %v5605_v60, %v5604_v13 }
0x1c33   : > { %6074 = vmatprep.mubr.msk.f32.mxu0 %vm7044_vm0, %v7045_v1 }
0x1c89   : > { %v4578_v16 = vpop.xlane.xlu1 %4577 }
0x1c8a   : > { %6490 = vrcp.f32 %v4578_v16  ;;  %v5606_v16 = vld [vmem:[%s8463_s7 + $0x50] sm:$0xff] }
0x1c8d   : > { %v4581_v18 = vpop.xlane.xlu0 %4580 }
0x1c8e   : > { %6492 = vrcp.f32 %v4581_v18  ;;  %v4584_v19 = vpop.xlane.xlu1 %4583  ;;  %v5607_v18 = vld [vmem:[%s8463_s7 + $0x58] sm:$0xff] }
0x1c8f   : > { %6494 = vrcp.f32 %v4584_v19  ;;  %v6223_v19 = vpack.c.bf16 %v5607_v18, %v5606_v16 }
0x1c91   : > { %v4822_v24 = vpop.permute.xlu0 %4821 }
0x1c92   : > { %v4746_v20 = vpop.permute.xlu1 %4745 }
0x1c93   : > { %6073 = vmatpush3.msra.mxu0 %v4746_v20  ;;  %v5608_v20 = vld [vmem:[%s8463_s7 + $0x60] sm:$0xff] }
0x1c94   : > { %v6491_v22 = vpop.eup %6490  ;;  %6207 = vmatprep.subr.bf16.mxu0 %v7043_v0 }
0x1c95   : > { %v4590_v23 = vmul.f32 %v6491_v22, %v6483_v17  ;;  %v5008_v17 = vrot.slane %v5583_v4, %v7842_v8  ;;  %v5609_v22 = vld [vmem:[%s8463_s7 + $0x68] sm:$0xff] }
0x1c97   : > { %6070 = vmatmul.mubr.msk.f32.vlgmr.msra.gmra.mrb[46].mxu1 %vm1178_vm2, %v4590_v23  ;;  %v6226_v23 = vpack.c.bf16 %v5609_v22, %v5608_v20 }
0x1c98   : > { %v6493_v25 = vpop.eup %6492  ;;  %6078 = vmatpush3.msra.mxu1 %v4822_v24  ;;  %6079 = vmatprep.mubr.msk.f32.mxu1 %vm7044_vm0, %v7045_v1  ;;  %v5610_v24 = vld [vmem:[%s8463_s7 + $0x70] sm:$0xff] }
0x1c99   : > { %v6495_v26 = vpop.eup %6494  ;;  %v4591_v27 = vmul.f32 %v6493_v25, %v6485_v6  ;;  %6213 = vmatprep.subr.bf16.mxu1 %v7043_v0  ;;  %v5611_v25 = vld [vmem:[%s8463_s7 + $0x78] sm:$0xff] }
0x1c9a   : > { %v4592_v28 = vmul.f32 %v6495_v26, %v6487_v7  ;;  %v5013_v7 = vrot.slane %v5583_v4, %v7847_v11  ;;  %v6229_v26 = vpack.c.bf16 %v5611_v25, %v5610_v24 }
0x1c9b   : > { %6075 = vmatmul.mubr.msk.f32.vlgmr.msra.gmra.mrb[38].mxu0 %vm1178_vm2, %v4591_v27  ;;  %v5602_v27 = vld [vmem:[#allocation23 + $0x1] ss:$0 sm:$0xff] }
0x1c9c   : > { %6080 = vmatmul.mubr.msk.f32.vlgmr.msra.gmra.mrb[48].mxu1 %vm1178_vm2, %v4592_v28  ;;  %6090 = vmatprep.mubr.msk.f32.mxu0 %vm7044_vm0, %v7045_v1 }
0x1c9d   : > { %6101 = vmatprep.mubr.msk.f32.mxu1 %vm7044_vm0, %v7045_v1  ;;  %6209 = vmatpush3.bf16.msra.mxu0 %v6208_v32 }
0x1c9e   : > { %6210 = vmatprep.subr.bf16.mxu0 %v7043_v0  ;;  %6215 = vmatpush3.bf16.msra.mxu1 %v6214_v62 }
0x1c9f   : > { %6216 = vmatprep.subr.bf16.mxu1 %v7043_v0 }
0x1ca1   : > { %6212 = vmatpush3.bf16.msra.mxu0 %v6211_v38 }
0x1ca2   : > { %6219 = vmatprep.subr.bf16.mxu0 %v7043_v0 }
0x1d05   : > { %v4665_v34 = vpop.f32.mrb[36].mxu0 }
0x1d06   : > { %v6066_v35 = vpop.f32.mrb[37].mxu0 }
0x1d6a   : > { %v4741_v39 = vpop.f32.mrb[46].mxu1 }
0x1d6b   : > { %4898 = vrot.lane.b32.xlu1 %v4741_v39, %s8466_s10  ;;  %v6071_v40 = vpop.f32.mrb[47].mxu1  ;;  %s5228_s10 = scalar_lea.sflag [#allocation4], %s7639_s29 }
0x1d6e   : > { %v4817_v41 = vpop.f32.mrb[38].mxu0 }
0x1d6f   : > { %v4893_v42 = vpop.f32.mrb[48].mxu1  ;;  %4902 = vrot.lane.b32.xlu0 %v4817_v41, %s8467_s24  ;;  %v6076_v43 = vpop.f32.mrb[39].mxu0  ;;  %s6928_s24 = scalar_lea.vmem %s8267_s9, 128 }
0x1d70   : > { %4906 = vrot.lane.b32.xlu1 %v4893_v42, %s8468_s4  ;;  %v6081_v44 = vpop.f32.mrb[49].mxu1  ;;  %v5612_v42 = vld [vmem:[#allocation25 + $0x1] ss:$0 sm:$0xff]  ;;  %p6929_p13 = scmp.ne.s32.totalorder %s8267_s9, %s6928_s24  ;;  %s6934_s4 = scalar_lea.vmem %s6933_s27, 256 }
0x1d71   : > { %p6936_p9 = scmp.lt.s32.totalorder %s6934_s4, %s6928_s24 }
0x1d72   : > { %p6930_p3 = pnand %p6929_p13, %p8471_p8 }
0x1d73   : > { %p6937_p6 = por %p6936_p9, %p6935_p5 }
0x1d74   : > { %p6931_p0 = pneg %p6930_p3 }
0x1d76   : > { %p6938_p1 = pnand %p6937_p6, %p6931_p0 }
0x1ddd   : > { %v4899_v45 = vpop.permute.xlu1 %4898 }
0x1dde   : > { %v4909_v46 = vsel %vm1178_vm2, %v4665_v34, %v4899_v45 }
0x1de1   : > { %v4903_v47 = vpop.permute.xlu0 %4902 }
0x1de2   : > { %v4910_v48 = vsel %vm1836_vm3, %v4909_v46, %v4903_v47  ;;  %v4907_v49 = vpop.permute.xlu1 %4906 }
0x1de3   : > { %v4911_v50 = vsel %vm1838_vm4, %v4910_v48, %v4907_v49 }
0x1de4   : > { %6091 = vmatmul.mubr.msk.f32.vlgmr.msra.gmra.mrb[40].mxu0 %vm1008_vm1, %v4911_v50 }
0x1de5   : > { %6120 = vmatprep.mubr.msk.f32.mxu0 %vm7044_vm0, %v7045_v1  ;;  %v5018_v1 = vld [vmem:[#allocation22 + $0x30] sm:$0xff]  ;;  %6221 = vmatpush3.bf16.msra.mxu0 %v6220_v15 }
0x1de6   : > { %v6217_v2 = vpack.c.bf16 %v5019_v63, %v5018_v1  ;;  %6222 = vmatprep.subr.bf16.mxu0 %v7043_v0 }
0x1de8   : > { %6218 = vmatpush3.bf16.msra.mxu1 %v6217_v2 }
0x1de9   : > { %6224 = vmatpush3.bf16.msra.mxu0 %v6223_v19 }
0x1dea   : > { %6225 = vmatprep.subr.bf16.mxu0 %v7043_v0 }
0x1ded   : > { %6227 = vmatpush3.bf16.msra.mxu0 %v6226_v23 }
0x1dee   : > { %6228 = vmatprep.subr.bf16.mxu0 %v7043_v0 }
0x1df1   : > { %6230 = vmatpush3.bf16.msra.mxu0 %v6229_v26 }
0x1eb7   : > { %v4987_v52 = vpop.f32.mrb[40].mxu0 }
0x1eb8   : > { %v4988_v53 = vadd.f32 %v5600_v51, %v4987_v52  ;;  %v6092_v54 = vpop.f32.mrb[41].mxu0 }
0x1eba   : > { %v4991_v55 = vadd.f32 %v4988_v53, %v8132_v21 }
0x1ebc   : > { %v4992_v56 = vsel %vm1008_vm1, %v4991_v55, 0.0 }
0x1ebd   : > { %4993 = vadd.xlane.f32.xlu0 %v4992_v56 }
0x1f4a   : > { %v4994_v57 = vpop.xlane.xlu0 %4993 }
0x1f4b   : > { %v4995_v10 = vmul.f32 0.03125, %v4994_v57 }
0x1f4d   : > { %v4996_v33 = vsub.f32 %v4991_v55, %v4995_v10  ;;  %v5614_v55 = vld [vmem:[%s8464_s14 + $0x2] sm:$0x3] }
0x1f4e   : > { %v5219_v56 = vrot.slane %v5614_v55, %v7842_v8 }
0x1f4f   : > { %v4997_v58 = vmul.f32 %v4996_v33, %v4996_v33 }
0x1f51   : > { %v4998_v59 = vsel %vm1008_vm1, %v4997_v58, 0.0 }
0x1f52   : > { %4999 = vadd.xlane.f32.xlu1 %v4998_v59 }
0x1fdf   : > { %v5000_v21 = vpop.xlane.xlu1 %4999 }
0x1fe0   : > { %v5001_v3 = vmul.f32 0.03125, %v5000_v21 }
0x1fe2   : > { %v5002_v14 = vadd.f32 1e-12, %v5001_v3 }
0x1fe4   : > { %6496 = vrsqrt.f32 %v5002_v14 }
0x1fee   : > { %v6497_v5 = vpop.eup %6496 }
0x1fef   : > { %v5004_v6 = vmul.f32 %v6497_v5, %v4996_v33  ;;  %v5224_v33 = vrot.slane %v5614_v55, %v7847_v11 }
0x1ff1   : > { %v5009_v9 = vmul.f32 %v5008_v17, %v5004_v6 }
0x1ff3   : > { %v5014_v12 = vadd.f32 %v5013_v7, %v5009_v9 }
0x1ff5   : > { %6102 = vmatmul.mubr.msk.f32.vlgmr.msra.gmra.mrb[50].mxu1 %vm1008_vm1, %v5014_v12 }
0x20c8   : > { %v5097_v28 = vpop.f32.mrb[50].mxu1 }
0x20c9   : > { %v5098_v30 = vadd.f32 %v5602_v27, %v5097_v28  ;;  %v6103_v31 = vpop.f32.mrb[51].mxu1 }
0x20cb   : > { %v5102_v32 = vmul.f32 0.044715, %v5098_v30  ;;  %v5101_v39 = vmul.f32 0.5, %v5098_v30 }
0x20cd   : > { %v5103_v34 = vmul.f32 %v5102_v32, %v5098_v30 }
0x20cf   : > { %v5104_v35 = vmul.f32 %v5103_v34, %v5098_v30 }
0x20d1   : > { %v5105_v36 = vadd.f32 %v5104_v35, %v5098_v30 }
0x20d3   : > { %v5106_v37 = vmul.f32 0.7978846, %v5105_v36 }
0x20d5   : > { %6498 = vtanh.f32 %v5106_v37 }
0x20df   : > { %v6499_v38 = vpop.eup %6498 }
0x20e0   : > { %v5108_v40 = vadd.f32 1.0, %v6499_v38 }
0x20e2   : > { %v5109_v41 = vmul.f32 %v5108_v40, %v5101_v39 }
0x20e4   : > { %6121 = vmatmul.mubr.msk.f32.vlgmr.msra.gmra.mrb[42].mxu0 %vm3008_vm5, %v5109_v41 }
0x21b7   : > { %v5196_v43 = vpop.f32.mrb[42].mxu0 }
0x21b8   : > { %v5197_v0 = vadd.f32 %v5612_v42, %v5196_v43  ;;  %v6122_v44 = vpop.f32.mrb[43].mxu0 }
0x21ba   : > { %v5202_v45 = vadd.f32 %v5197_v0, %v5014_v12 }
0x21bc   : > { %v5203_v46 = vsel %vm1008_vm1, %v5202_v45, 0.0 }
0x21bd   : > { %5204 = vadd.xlane.f32.xlu0 %v5203_v46 }
0x224a   : > { %v5205_v47 = vpop.xlane.xlu0 %5204 }
0x224b   : > { %v5206_v48 = vmul.f32 0.03125, %v5205_v47 }
0x224d   : > { %v5207_v49 = vsub.f32 %v5202_v45, %v5206_v48 }
0x224f   : > { %v5208_v50 = vmul.f32 %v5207_v49, %v5207_v49 }
0x2251   : > { %v5209_v51 = vsel %vm1008_vm1, %v5208_v50, 0.0 }
0x2252   : > { %5210 = vadd.xlane.f32.xlu0 %v5209_v51 }
0x22df   : > { %v5211_v52 = vpop.xlane.xlu0 %5210 }
0x22e0   : > { %v5212_v53 = vmul.f32 0.03125, %v5211_v52 }
0x22e2   : > { %v5213_v54 = vadd.f32 1e-12, %v5212_v53 }
0x22e4   : > { %6500 = vrsqrt.f32 %v5213_v54 }
0x22ee   : > { %v6501_v57 = vpop.eup %6500 }
0x22ef   : > { %v5215_v10 = vmul.f32 %v6501_v57, %v5207_v49 }
0x22f1   : > { %v5220_v58 = vmul.f32 %v5219_v56, %v5215_v10 }
0x22f3   : > { %v5225_v59 = vadd.f32 %v5224_v33, %v5220_v58 }
0x22f5   : > { %5226 = vst.msk [vmem:[%s978_s1] sm:$0xff] %vm1008_vm1, %v5225_v59 }
0x22f6   : > { %6941 = shalt.err (!%p6938_p1)
}
0x22f7   : > { %s6942_s29 = scalar_lea.hbm %s8265_s16, 128  ;;  %s6946_s1 = scalar_lea.hbm %s8470_s0, 256 }
0x22f8   : > { %p6943_p7 = scmp.ne.s32.totalorder %s8265_s16, %s6942_s29  ;;  %p6947_p4 = scmp.lt.u32.totalorder %s8265_s16, %s8470_s0 }
0x22f9   : > { %p6948_p10 = scmp.lt.u32.totalorder %s6946_s1, %s6942_s29  ;;  %p6950_p13 = scmp.lt.u32.totalorder %s6942_s29, %s8265_s16 }
0x22fa   : > { %p6944_p11 = pnand %p6943_p7, %p8471_p8 }
0x22fb   : > { %p6949_p2 = por %p6948_p10, %p6947_p4 }
0x22fc   : > { %p6945_p12 = pneg %p6944_p11 }
0x22fd   : > { %p6951_p3 = por %p6950_p13, %p6949_p2 }
0x22ff   : > { %p6952_p0 = pnand %p6951_p3, %p6945_p12 }
0x2301   : > { %6955 = shalt.err (!%p6952_p0)
}
0x2302   : > { %6285 = dma.vmem_to_hbm [thread:$0]  (%p8471_p8), %s8267_s9, 128, %s8265_s16, %s5228_s10  }
0x2303 PF: > { %s8472_s24 = sld [smem:[#allocation36_spill]]  ;;  %s8473_s26 = sld [smem:[#allocation41_spill]] }
0x2304   : > { %p8475_p9 = scmp.ge.s32.totalorder %s7022_s25, 2 }
0x2309   : > { %s5253_s27 = sand.u32 1, %s8472_s24   ;;  %p8474_p5 = scmp.ne.s32.totalorder %s8473_s26, 0 }
0x230a   : > { %s5254_s4 = scalar_lea.sflag [#allocation4], %s5253_s27 }
0x230b   : > { %p6335_p6 = pnand %p8475_p9, %p8474_p5 }
0x230d   : > { %7005 = dma.done.wait (!%p6335_p6), %s5254_s4, 128  }
0x230e   : > { %7007 = vsyncadd (!%p6335_p6), %s5254_s4, 4294967168  ;;  %s8476_s25 = sld [smem:[#allocation39_spill]]  ;;  %s8477_s29 = sld [smem:[#allocation37_spill]] }
0x230f   : > { %s8478_s24 = sld [smem:[#allocation40_spill]]  ;;  %s8479_s4 = smov %s7014_s30 }
0x2314   : > { %p45_p1 = scmp.ge.s32.totalorder %s8476_s25, 4   ;;  %s8480_s30 = smov %s8477_s29 }
0x2316   :  { %47 = sbr.rel (!%p45_p1) target bundleno = 34 (0x22), region = 251 }
0x231d   :  { %5259 = vsyncpa [#allocation3], 1 }
0x231e   :  { %5261 = vsyncpa [#allocation3 + $0x1], 1 }
0x231f   :  { %5262 = vsyncpa [#allocation6], 1 }
0x2320   :  { %5264 = vsyncpa [#allocation6 + $0x1], 1 }
0x2321   :  { %5265 = vsyncpa [#allocation9], 1 }
0x2322   :  { %5266 = vsyncpa [#allocation12], 1 }
0x2323   :  { %5267 = vsyncpa [#allocation15], 1 }
0x2324   :  { %5268 = vsyncpa [#allocation18], 1 }
0x2325   :  { %5269 = vsyncpa [#allocation21], 1 }
0x2326   :  { %5270 = vsyncpa [#allocation24], 1 }
0x2327   :  { %5271 = vsyncpa [#allocation4], 1 }
0x2328   :  { %5273 = vsyncpa [#allocation4 + $0x1], 1 }

</bundles_post_ra>
